<compile_context>
chip_gen: v7x
topology: tpu7x:2x2x1
jax: 0.10.0
libtpu: 0.0.40
codegen_flags: <defaults>
</compile_context>

<pallas_src>
import jax
import jax.numpy as jnp
from jax import lax
from jax.experimental import pallas as pl
from jax.experimental.pallas import tpu as pltpu


# Timesteps per grid step.  8 keeps the per-block f32 pre-gate scratch at
# t_blk*b_tile*4H*4 B (= 16 MiB at H=1024, b_tile=128), which together with the
# ~15 MiB of single-buffered bf16 weights fits the 48 MiB budget on every chip
# (incl. v7x's 64 MiB physical VMEM).  On v5e/v6e (128 MiB VMEM) this can be
# raised to 16-32 to shave per-grid-step overhead further.
_T_BLK = 8
_MAX_B_TILE = 128  # MXU row width -- full utilization of the systolic rows.


def _round_up(x, m):
    return -(-x // m) * m


def _choose_b_tile(batch):
    """Fill the 128-row MXU when the batch allows; otherwise size the tile to
    the sublane-rounded real batch so no recurrence compute is wasted.
    """
    # TODO(synk): on v7x (2 TensorCores), when this yields a single batch tile,
    # split it in two tiles (>=16 rows each) so the "parallel" axis feeds both
    # cores; on single-core v5e/v6e one full-width tile is strictly better.
    return min(_MAX_B_TILE, _round_up(batch, 8))


def _lstm_layer_kernel(x_ref, wih_hbm, whh_hbm, bias_hbm, out_ref,
                       wih_vmem, whh_vmem, bias_vmem, dma_sem,
                       gx_scr, h_scr, c_scr):
    """One LSTM layer.  Grid: (batch_tiles [parallel], time_blocks [arbitrary]).

    x_ref    : (t_blk, b_tile, D) bf16   input block (auto-pipelined)
    wih_hbm  : (D, 4H) bf16  HBM         input->hidden weights (transposed)
    whh_hbm  : (H, 4H) bf16  HBM         hidden->hidden weights (transposed)
    bias_hbm : (1, 4H) f32   HBM         b_ih + b_hh
    out_ref  : (t_blk, b_tile, H)        h_t written to the output sequence
    *_vmem   : single-buffered resident copies of the weights / bias
    gx_scr   : (t_blk, b_tile, 4H) f32   per-block pre-gates (x-projection)
    h_scr/c_scr : (b_tile, H) f32        recurrent state, carried across time
    """
    t_blk, b_tile, _ = x_ref.shape
    H = h_scr.shape[-1]

    @pl.when(pl.program_id(1) == 0)
    def _init():
        # Stage the grid-invariant weights/bias into single-buffered VMEM once
        # per batch tile (correct under megacore sharding of axis 0), and reset
        # the recurrent state.  Scratch zeroing overlaps the weight DMAs.
        wih_cp = pltpu.make_async_copy(wih_hbm, wih_vmem, dma_sem.at[0])
        whh_cp = pltpu.make_async_copy(whh_hbm, whh_vmem, dma_sem.at[1])
        b_cp = pltpu.make_async_copy(bias_hbm, bias_vmem, dma_sem.at[2])
        wih_cp.start()
        whh_cp.start()
        b_cp.start()
        h_scr[...] = jnp.zeros_like(h_scr)
        c_scr[...] = jnp.zeros_like(c_scr)
        wih_cp.wait()
        whh_cp.wait()
        b_cp.wait()

    # Phase 1 -- fused input projection for the whole time block (bias folded
    # in).  No sequential dependence, so it stays off the recurrence's critical
    # path, and the (T, B, 4H) pre-gates never touch HBM.  At b_tile=128 each
    # per-timestep matmul already fills the MXU's 128 LHS rows.
    for t in range(t_blk):
        gx_scr[t] = (
            jnp.dot(x_ref[t], wih_vmem[...], preferred_element_type=jnp.float32)
            + bias_vmem[...])

    # Phase 2 -- serial recurrence.  Only h @ W_hh plus elementwise gate math
    # per step; state is read/modified/written in VMEM scratch (no huge unrolled
    # carry live-ranges), and the weight ref feeds the dot directly so it stays
    # a VMEM-resident MXU operand stream.
    for t in range(t_blk):  # static unroll; t_blk is small
        h = h_scr[...]
        gates = gx_scr[t] + jnp.dot(h.astype(jnp.bfloat16), whh_vmem[...],
                                    preferred_element_type=jnp.float32)
        # PyTorch nn.LSTM gate order: i, f, g, o.  H % 128 == 0 -> lane-aligned.
        i_g = jax.nn.sigmoid(gates[:, 0 * H:1 * H])
        f_g = jax.nn.sigmoid(gates[:, 1 * H:2 * H])
        g_g = jnp.tanh(gates[:, 2 * H:3 * H])
        o_g = jax.nn.sigmoid(gates[:, 3 * H:4 * H])
        c = f_g * c_scr[...] + i_g * g_g
        h = o_g * jnp.tanh(c)
        c_scr[...] = c
        h_scr[...] = h
        out_ref[t] = h.astype(out_ref.dtype)


def _run_lstm_layer(x_tbd, w_ih, w_hh, b_ih, b_hh, *, out_dtype,
                    t_blk=_T_BLK, b_tile=None):
    """x_tbd: (T, B, D) time-major input. Returns (T, B, H) in out_dtype."""
    T, B, D = x_tbd.shape
    H = w_hh.shape[1]                                    # w_hh: (4H, H)
    assert H % 128 == 0, "hidden_dim must be a multiple of 128 (lane alignment)"

    if b_tile is None:
        b_tile = _choose_b_tile(B)

    wih_t = jnp.transpose(w_ih).astype(jnp.bfloat16)     # (D, 4H)
    whh_t = jnp.transpose(w_hh).astype(jnp.bfloat16)     # (H, 4H)
    bias = (b_ih + b_hh).astype(jnp.float32).reshape(1, 4 * H)

    # bf16 activations into the kernel (halves the x HBM stream); the fused
    # projection accumulates in f32 inside the kernel.
    x = x_tbd.astype(jnp.bfloat16)

    # Pad time / batch so they tile evenly; padded rows are sliced off below.
    T_pad = _round_up(T, t_blk)
    B_pad = _round_up(B, b_tile)
    if (T_pad, B_pad) != (T, B):
        x = jnp.pad(x, ((0, T_pad - T), (0, B_pad - B), (0, 0)))

    out = pl.pallas_call(
        _lstm_layer_kernel,
        out_shape=jax.ShapeDtypeStruct((T_pad, B_pad, H), out_dtype),
        grid=(B_pad // b_tile, T_pad // t_blk),
        in_specs=[
            pl.BlockSpec((t_blk, b_tile, D), lambda b, t: (t, b, 0)),
            pl.BlockSpec(memory_space=pl.ANY),   # W_ih^T  (manually staged)
            pl.BlockSpec(memory_space=pl.ANY),   # W_hh^T  (manually staged)
            pl.BlockSpec(memory_space=pl.ANY),   # bias    (manually staged)
        ],
        out_specs=pl.BlockSpec((t_blk, b_tile, H), lambda b, t: (t, b, 0)),
        scratch_shapes=[
            pltpu.VMEM((D, 4 * H), jnp.bfloat16),          # resident W_ih^T
            pltpu.VMEM((H, 4 * H), jnp.bfloat16),          # resident W_hh^T
            pltpu.VMEM((1, 4 * H), jnp.float32),           # resident bias
            pltpu.SemaphoreType.DMA((3,)),                 # weight-staging sems
            pltpu.VMEM((t_blk, b_tile, 4 * H), jnp.float32),  # pre-gates gx
            pltpu.VMEM((b_tile, H), jnp.float32),          # h state
            pltpu.VMEM((b_tile, H), jnp.float32),          # c state
        ],
        compiler_params=pltpu.CompilerParams(
            # Batch tiles are independent (v7x megacore shards them); the time
            # axis carries the recurrence -> sequential.
            dimension_semantics=("parallel", "arbitrary"),
            # Sized for H=1024-class weights + pre-gate scratch at b_tile=128;
            # fits v5e/v6e (128 MiB) and v7x (64 MiB) physical VMEM.
            vmem_limit_bytes=48 * 1024 * 1024,
        ),
    )(x, wih_t, whh_t, bias)

    if (T_pad, B_pad) != (T, B):
        out = out[:T, :B]
    return out


def init_lstm_params(key, input_dim, hidden_dim, num_layers, dtype=jnp.float32):
    """Deterministic init matching nn.LSTM param shapes: U(-1/sqrt(H), 1/sqrt(H))."""
    bound = 1.0 / jnp.sqrt(jnp.asarray(hidden_dim, dtype))
    params = []
    for layer in range(num_layers):
        d_in = input_dim if layer == 0 else hidden_dim
        key, k1, k2, k3, k4 = jax.random.split(key, 5)
        params.append(dict(
            w_ih=jax.random.uniform(k1, (4 * hidden_dim, d_in), dtype, -bound, bound),
            w_hh=jax.random.uniform(k2, (4 * hidden_dim, hidden_dim), dtype, -bound, bound),
            b_ih=jax.random.uniform(k3, (4 * hidden_dim,), dtype, -bound, bound),
            b_hh=jax.random.uniform(k4, (4 * hidden_dim,), dtype, -bound, bound),
        ))
    return params


@jax.jit
def lstm_feature_extractor(x_btd, params):
    """Forward pass of LSTMFeatureExtractor: returns all h_t of the last layer.

    x_btd: (B, T, D) batch_first input, as in the PyTorch module.
    """
    x = jnp.transpose(x_btd, (1, 0, 2))      # -> (T, B, D) time-major, once
    n_layers = len(params)
    for li, p in enumerate(params):
        # Intermediate layers stay bf16 (halved HBM traffic); last layer f32.
        out_dtype = x_btd.dtype if li == n_layers - 1 else jnp.bfloat16
        x = _run_lstm_layer(x, p["w_ih"], p["w_hh"], p["b_ih"], p["b_hh"],
                            out_dtype=out_dtype)
    return jnp.transpose(x, (1, 0, 2))       # -> (B, T, H) batch_first output


def _lstm_reference(x_btd, params):
    """Pure-JAX f32 reference (lax.scan), matching the PyTorch module semantics."""
    x = jnp.transpose(x_btd, (1, 0, 2))  # (T, B, D)
    B = x.shape[1]
    for p in params:
        H = p["w_hh"].shape[1]
        wih_t = p["w_ih"].T
        whh_t = p["w_hh"].T
        bias = p["b_ih"] + p["b_hh"]

        def step(carry, x_t):
            h, c = carry
            gates = x_t @ wih_t + h @ whh_t + bias
            i = jax.nn.sigmoid(gates[:, 0 * H:1 * H])
            f = jax.nn.sigmoid(gates[:, 1 * H:2 * H])
            g = jnp.tanh(gates[:, 2 * H:3 * H])
            o = jax.nn.sigmoid(gates[:, 3 * H:4 * H])
            c = f * c + i * g
            h = o * jnp.tanh(c)
            return (h, c), h

        init = (jnp.zeros((B, H), x.dtype), jnp.zeros((B, H), x.dtype))
        _, x = lax.scan(step, init, x)
    return jnp.transpose(x, (1, 0, 2))


if __name__ == "__main__":
    # Small shapes consistent with the module's forward (batch, seq, input_dim).
    # H is kept a multiple of 128 (mirrors the spec's hidden_dim=1024); the odd
    # B / T exercise the batch / time padding paths of the wrapper.
    B, T, D, H, L = 2, 12, 16, 128, 2

    key = jax.random.PRNGKey(0)
    key, kx, kp = jax.random.split(key, 3)
    x = jax.random.normal(kx, (B, T, D), dtype=jnp.float32)
    params = init_lstm_params(kp, input_dim=D, hidden_dim=H, num_layers=L)

    out = lstm_feature_extractor(x, params)
    out = jax.block_until_ready(out)
    assert out.shape == (B, T, H), out.shape

    # bf16 MXU inputs / intermediate activations vs f32 reference -> loose tol.
    # TODO(synk): re-validate tolerance at production T / hidden_dim=1024 before
    # committing to bf16 activations (and before any fp8 weights on v7x).
    ref = _lstm_reference(x, params)
    assert jnp.allclose(out, ref, rtol=5e-2, atol=5e-2), "mismatch vs reference"

    print("KERNEL_OK")
</pallas_src>

<mosaic_0001>
module attributes {stable_mosaic.version = 11 : i64} {
  func.func @_lstm_layer_kernel(%arg0: i32, %arg1: i32, %arg2: memref<8x8x16xbf16, #tpu.memory_space<vmem>>, %arg3: memref<16x512xbf16, #tpu.memory_space<any>>, %arg4: memref<128x512xbf16, #tpu.memory_space<any>>, %arg5: memref<1x512xf32, #tpu.memory_space<any>>, %arg6: memref<8x8x128xbf16, #tpu.memory_space<vmem>>, %arg7: memref<16x512xbf16, #tpu.memory_space<vmem>>, %arg8: memref<128x512xbf16, #tpu.memory_space<vmem>>, %arg9: memref<1x512xf32, #tpu.memory_space<vmem>>, %arg10: memref<3x!tpu.dma_semaphore, #tpu.memory_space<semaphore_mem>>, %arg11: memref<8x8x512xf32, #tpu.memory_space<vmem>>, %arg12: memref<8x128xf32, #tpu.memory_space<vmem>>, %arg13: memref<8x128xf32, #tpu.memory_space<vmem>>) attributes {dimension_semantics = [#tpu.dimension_semantics<parallel>, #tpu.dimension_semantics<arbitrary>], iteration_bounds = array<i64: 1, 2>, scalar_prefetch = 0 : i64, scratch_operands = 7 : i64, tpu.core_type = #tpu.core_type<tc>, window_params = [{transform_indices = @transform_0, window_bounds = array<i64: 8, 8, 16>}, {}, {}, {}, {transform_indices = @transform_4, window_bounds = array<i64: 8, 8, 128>}]} {
    %c0_i32 = arith.constant 0 : i32
    %0 = arith.cmpi eq, %arg1, %c0_i32 : i32
    %1 = arith.extui %0 : i1 to i32
    %c0_i32_0 = arith.constant 0 : i32
    %2 = arith.cmpi ne, %1, %c0_i32_0 : i32
    scf.if %2 {
      %c0_i32_240 = arith.constant 0 : i32
      %395 = tpu.memref_slice %arg10[%c0_i32_240] : memref<3x!tpu.dma_semaphore, #tpu.memory_space<semaphore_mem>> -> memref<1x!tpu.dma_semaphore, #tpu.memory_space<semaphore_mem>>
      %396 = tpu.memref_squeeze %395 : memref<1x!tpu.dma_semaphore, #tpu.memory_space<semaphore_mem>> -> memref<!tpu.dma_semaphore, #tpu.memory_space<semaphore_mem>>
      tpu.enqueue_dma source(%arg3 : memref<16x512xbf16, #tpu.memory_space<any>>) target(%arg7 : memref<16x512xbf16, #tpu.memory_space<vmem>>) target_semaphore(%396 : memref<!tpu.dma_semaphore, #tpu.memory_space<semaphore_mem>>)
      %c1_i32 = arith.constant 1 : i32
      %397 = tpu.memref_slice %arg10[%c1_i32] : memref<3x!tpu.dma_semaphore, #tpu.memory_space<semaphore_mem>> -> memref<1x!tpu.dma_semaphore, #tpu.memory_space<semaphore_mem>>
      %398 = tpu.memref_squeeze %397 : memref<1x!tpu.dma_semaphore, #tpu.memory_space<semaphore_mem>> -> memref<!tpu.dma_semaphore, #tpu.memory_space<semaphore_mem>>
      tpu.enqueue_dma source(%arg4 : memref<128x512xbf16, #tpu.memory_space<any>>) target(%arg8 : memref<128x512xbf16, #tpu.memory_space<vmem>>) target_semaphore(%398 : memref<!tpu.dma_semaphore, #tpu.memory_space<semaphore_mem>>)
      %c2_i32 = arith.constant 2 : i32
      %399 = tpu.memref_slice %arg10[%c2_i32] : memref<3x!tpu.dma_semaphore, #tpu.memory_space<semaphore_mem>> -> memref<1x!tpu.dma_semaphore, #tpu.memory_space<semaphore_mem>>
      %400 = tpu.memref_squeeze %399 : memref<1x!tpu.dma_semaphore, #tpu.memory_space<semaphore_mem>> -> memref<!tpu.dma_semaphore, #tpu.memory_space<semaphore_mem>>
      tpu.enqueue_dma source(%arg5 : memref<1x512xf32, #tpu.memory_space<any>>) target(%arg9 : memref<1x512xf32, #tpu.memory_space<vmem>>) target_semaphore(%400 : memref<!tpu.dma_semaphore, #tpu.memory_space<semaphore_mem>>)
      %cst_241 = arith.constant 0.000000e+00 : f32
      %401 = vector.broadcast %cst_241 : f32 to vector<8x128xf32>
      %c0_242 = arith.constant 0 : index
      %c0_243 = arith.constant 0 : index
      %402 = vector.load %arg12[%c0_242, %c0_243] : memref<8x128xf32, #tpu.memory_space<vmem>>, vector<8x128xf32>
      tpu.vector_store %arg12[%c0_242, %c0_243], %401 {strides = array<i32>} : memref<8x128xf32, #tpu.memory_space<vmem>>, vector<8x128xf32>,
      %cst_244 = arith.constant 0.000000e+00 : f32
      %403 = vector.broadcast %cst_244 : f32 to vector<8x128xf32>
      %c0_245 = arith.constant 0 : index
      %c0_246 = arith.constant 0 : index
      %404 = vector.load %arg13[%c0_245, %c0_246] : memref<8x128xf32, #tpu.memory_space<vmem>>, vector<8x128xf32>
      tpu.vector_store %arg13[%c0_245, %c0_246], %403 {strides = array<i32>} : memref<8x128xf32, #tpu.memory_space<vmem>>, vector<8x128xf32>,
      %c0_i32_247 = arith.constant 0 : i32
      %405 = tpu.memref_slice %arg10[%c0_i32_247] : memref<3x!tpu.dma_semaphore, #tpu.memory_space<semaphore_mem>> -> memref<1x!tpu.dma_semaphore, #tpu.memory_space<semaphore_mem>>
      %406 = tpu.memref_squeeze %405 : memref<1x!tpu.dma_semaphore, #tpu.memory_space<semaphore_mem>> -> memref<!tpu.dma_semaphore, #tpu.memory_space<semaphore_mem>>
      tpu.wait_dma2 semaphore(%406 : memref<!tpu.dma_semaphore, #tpu.memory_space<semaphore_mem>>) src(%arg3 : memref<16x512xbf16, #tpu.memory_space<any>>) dst(%arg7 : memref<16x512xbf16, #tpu.memory_space<vmem>>)
      %c1_i32_248 = arith.constant 1 : i32
      %407 = tpu.memref_slice %arg10[%c1_i32_248] : memref<3x!tpu.dma_semaphore, #tpu.memory_space<semaphore_mem>> -> memref<1x!tpu.dma_semaphore, #tpu.memory_space<semaphore_mem>>
      %408 = tpu.memref_squeeze %407 : memref<1x!tpu.dma_semaphore, #tpu.memory_space<semaphore_mem>> -> memref<!tpu.dma_semaphore, #tpu.memory_space<semaphore_mem>>
      tpu.wait_dma2 semaphore(%408 : memref<!tpu.dma_semaphore, #tpu.memory_space<semaphore_mem>>) src(%arg4 : memref<128x512xbf16, #tpu.memory_space<any>>) dst(%arg8 : memref<128x512xbf16, #tpu.memory_space<vmem>>)
      %c2_i32_249 = arith.constant 2 : i32
      %409 = tpu.memref_slice %arg10[%c2_i32_249] : memref<3x!tpu.dma_semaphore, #tpu.memory_space<semaphore_mem>> -> memref<1x!tpu.dma_semaphore, #tpu.memory_space<semaphore_mem>>
      %410 = tpu.memref_squeeze %409 : memref<1x!tpu.dma_semaphore, #tpu.memory_space<semaphore_mem>> -> memref<!tpu.dma_semaphore, #tpu.memory_space<semaphore_mem>>
      tpu.wait_dma2 semaphore(%410 : memref<!tpu.dma_semaphore, #tpu.memory_space<semaphore_mem>>) src(%arg5 : memref<1x512xf32, #tpu.memory_space<any>>) dst(%arg9 : memref<1x512xf32, #tpu.memory_space<vmem>>)
    } else {
    }
    %c0 = arith.constant 0 : index
    %c0_1 = arith.constant 0 : index
    %c0_2 = arith.constant 0 : index
    %3 = vector.load %arg2[%c0, %c0_1, %c0_2] : memref<8x8x16xbf16, #tpu.memory_space<vmem>>, vector<1x8x16xbf16>
    %4 = vector.shape_cast %3 : vector<1x8x16xbf16> to vector<8x16xbf16>
    %c0_3 = arith.constant 0 : index
    %c0_4 = arith.constant 0 : index
    %5 = vector.load %arg7[%c0_3, %c0_4] : memref<16x512xbf16, #tpu.memory_space<vmem>>, vector<16x512xbf16>
    %cst = arith.constant dense<0.000000e+00> : vector<8x512xf32>
    %6 = tpu.matmul %4, %5, %cst {dimension_numbers = #tpu.dot_dimension_numbers<[1], [0], [0], [1], [0, 0, 1, 1], [], []>} : vector<8x16xbf16>, vector<16x512xbf16>, vector<8x512xf32> -> vector<8x512xf32>
    %c0_5 = arith.constant 0 : index
    %c0_6 = arith.constant 0 : index
    %7 = vector.load %arg9[%c0_5, %c0_6] : memref<1x512xf32, #tpu.memory_space<vmem>>, vector<1x512xf32>
    %8 = vector.broadcast %7 : vector<1x512xf32> to vector<8x512xf32>
    %9 = arith.addf %6, %8 : vector<8x512xf32>
    %c0_7 = arith.constant 0 : index
    %c0_8 = arith.constant 0 : index
    %c0_9 = arith.constant 0 : index
    %10 = vector.load %arg11[%c0_7, %c0_8, %c0_9] : memref<8x8x512xf32, #tpu.memory_space<vmem>>, vector<1x8x512xf32>
    %11 = vector.shape_cast %10 : vector<1x8x512xf32> to vector<8x512xf32>
    %12 = vector.shape_cast %9 : vector<8x512xf32> to vector<1x8x512xf32>
    tpu.vector_store %arg11[%c0_7, %c0_8, %c0_9], %12 {strides = array<i32>} : memref<8x8x512xf32, #tpu.memory_space<vmem>>, vector<1x8x512xf32>,
    %c1 = arith.constant 1 : index
    %c0_10 = arith.constant 0 : index
    %c0_11 = arith.constant 0 : index
    %13 = vector.load %arg2[%c1, %c0_10, %c0_11] : memref<8x8x16xbf16, #tpu.memory_space<vmem>>, vector<1x8x16xbf16>
    %14 = vector.shape_cast %13 : vector<1x8x16xbf16> to vector<8x16xbf16>
    %c0_12 = arith.constant 0 : index
    %c0_13 = arith.constant 0 : index
    %15 = vector.load %arg7[%c0_12, %c0_13] : memref<16x512xbf16, #tpu.memory_space<vmem>>, vector<16x512xbf16>
    %cst_14 = arith.constant dense<0.000000e+00> : vector<8x512xf32>
    %16 = tpu.matmul %14, %15, %cst_14 {dimension_numbers = #tpu.dot_dimension_numbers<[1], [0], [0], [1], [0, 0, 1, 1], [], []>} : vector<8x16xbf16>, vector<16x512xbf16>, vector<8x512xf32> -> vector<8x512xf32>
    %c0_15 = arith.constant 0 : index
    %c0_16 = arith.constant 0 : index
    %17 = vector.load %arg9[%c0_15, %c0_16] : memref<1x512xf32, #tpu.memory_space<vmem>>, vector<1x512xf32>
    %18 = vector.broadcast %17 : vector<1x512xf32> to vector<8x512xf32>
    %19 = arith.addf %16, %18 : vector<8x512xf32>
    %c1_17 = arith.constant 1 : index
    %c0_18 = arith.constant 0 : index
    %c0_19 = arith.constant 0 : index
    %20 = vector.load %arg11[%c1_17, %c0_18, %c0_19] : memref<8x8x512xf32, #tpu.memory_space<vmem>>, vector<1x8x512xf32>
    %21 = vector.shape_cast %20 : vector<1x8x512xf32> to vector<8x512xf32>
    %22 = vector.shape_cast %19 : vector<8x512xf32> to vector<1x8x512xf32>
    tpu.vector_store %arg11[%c1_17, %c0_18, %c0_19], %22 {strides = array<i32>} : memref<8x8x512xf32, #tpu.memory_space<vmem>>, vector<1x8x512xf32>,
    %c2 = arith.constant 2 : index
    %c0_20 = arith.constant 0 : index
    %c0_21 = arith.constant 0 : index
    %23 = vector.load %arg2[%c2, %c0_20, %c0_21] : memref<8x8x16xbf16, #tpu.memory_space<vmem>>, vector<1x8x16xbf16>
    %24 = vector.shape_cast %23 : vector<1x8x16xbf16> to vector<8x16xbf16>
    %c0_22 = arith.constant 0 : index
    %c0_23 = arith.constant 0 : index
    %25 = vector.load %arg7[%c0_22, %c0_23] : memref<16x512xbf16, #tpu.memory_space<vmem>>, vector<16x512xbf16>
    %cst_24 = arith.constant dense<0.000000e+00> : vector<8x512xf32>
    %26 = tpu.matmul %24, %25, %cst_24 {dimension_numbers = #tpu.dot_dimension_numbers<[1], [0], [0], [1], [0, 0, 1, 1], [], []>} : vector<8x16xbf16>, vector<16x512xbf16>, vector<8x512xf32> -> vector<8x512xf32>
    %c0_25 = arith.constant 0 : index
    %c0_26 = arith.constant 0 : index
    %27 = vector.load %arg9[%c0_25, %c0_26] : memref<1x512xf32, #tpu.memory_space<vmem>>, vector<1x512xf32>
    %28 = vector.broadcast %27 : vector<1x512xf32> to vector<8x512xf32>
    %29 = arith.addf %26, %28 : vector<8x512xf32>
    %c2_27 = arith.constant 2 : index
    %c0_28 = arith.constant 0 : index
    %c0_29 = arith.constant 0 : index
    %30 = vector.load %arg11[%c2_27, %c0_28, %c0_29] : memref<8x8x512xf32, #tpu.memory_space<vmem>>, vector<1x8x512xf32>
    %31 = vector.shape_cast %30 : vector<1x8x512xf32> to vector<8x512xf32>
    %32 = vector.shape_cast %29 : vector<8x512xf32> to vector<1x8x512xf32>
    tpu.vector_store %arg11[%c2_27, %c0_28, %c0_29], %32 {strides = array<i32>} : memref<8x8x512xf32, #tpu.memory_space<vmem>>, vector<1x8x512xf32>,
    %c3 = arith.constant 3 : index
    %c0_30 = arith.constant 0 : index
    %c0_31 = arith.constant 0 : index
    %33 = vector.load %arg2[%c3, %c0_30, %c0_31] : memref<8x8x16xbf16, #tpu.memory_space<vmem>>, vector<1x8x16xbf16>
    %34 = vector.shape_cast %33 : vector<1x8x16xbf16> to vector<8x16xbf16>
    %c0_32 = arith.constant 0 : index
    %c0_33 = arith.constant 0 : index
    %35 = vector.load %arg7[%c0_32, %c0_33] : memref<16x512xbf16, #tpu.memory_space<vmem>>, vector<16x512xbf16>
    %cst_34 = arith.constant dense<0.000000e+00> : vector<8x512xf32>
    %36 = tpu.matmul %34, %35, %cst_34 {dimension_numbers = #tpu.dot_dimension_numbers<[1], [0], [0], [1], [0, 0, 1, 1], [], []>} : vector<8x16xbf16>, vector<16x512xbf16>, vector<8x512xf32> -> vector<8x512xf32>
    %c0_35 = arith.constant 0 : index
    %c0_36 = arith.constant 0 : index
    %37 = vector.load %arg9[%c0_35, %c0_36] : memref<1x512xf32, #tpu.memory_space<vmem>>, vector<1x512xf32>
    %38 = vector.broadcast %37 : vector<1x512xf32> to vector<8x512xf32>
    %39 = arith.addf %36, %38 : vector<8x512xf32>
    %c3_37 = arith.constant 3 : index
    %c0_38 = arith.constant 0 : index
    %c0_39 = arith.constant 0 : index
    %40 = vector.load %arg11[%c3_37, %c0_38, %c0_39] : memref<8x8x512xf32, #tpu.memory_space<vmem>>, vector<1x8x512xf32>
    %41 = vector.shape_cast %40 : vector<1x8x512xf32> to vector<8x512xf32>
    %42 = vector.shape_cast %39 : vector<8x512xf32> to vector<1x8x512xf32>
    tpu.vector_store %arg11[%c3_37, %c0_38, %c0_39], %42 {strides = array<i32>} : memref<8x8x512xf32, #tpu.memory_space<vmem>>, vector<1x8x512xf32>,
    %c4 = arith.constant 4 : index
    %c0_40 = arith.constant 0 : index
    %c0_41 = arith.constant 0 : index
    %43 = vector.load %arg2[%c4, %c0_40, %c0_41] : memref<8x8x16xbf16, #tpu.memory_space<vmem>>, vector<1x8x16xbf16>
    %44 = vector.shape_cast %43 : vector<1x8x16xbf16> to vector<8x16xbf16>
    %c0_42 = arith.constant 0 : index
    %c0_43 = arith.constant 0 : index
    %45 = vector.load %arg7[%c0_42, %c0_43] : memref<16x512xbf16, #tpu.memory_space<vmem>>, vector<16x512xbf16>
    %cst_44 = arith.constant dense<0.000000e+00> : vector<8x512xf32>
    %46 = tpu.matmul %44, %45, %cst_44 {dimension_numbers = #tpu.dot_dimension_numbers<[1], [0], [0], [1], [0, 0, 1, 1], [], []>} : vector<8x16xbf16>, vector<16x512xbf16>, vector<8x512xf32> -> vector<8x512xf32>
    %c0_45 = arith.constant 0 : index
    %c0_46 = arith.constant 0 : index
    %47 = vector.load %arg9[%c0_45, %c0_46] : memref<1x512xf32, #tpu.memory_space<vmem>>, vector<1x512xf32>
    %48 = vector.broadcast %47 : vector<1x512xf32> to vector<8x512xf32>
    %49 = arith.addf %46, %48 : vector<8x512xf32>
    %c4_47 = arith.constant 4 : index
    %c0_48 = arith.constant 0 : index
    %c0_49 = arith.constant 0 : index
    %50 = vector.load %arg11[%c4_47, %c0_48, %c0_49] : memref<8x8x512xf32, #tpu.memory_space<vmem>>, vector<1x8x512xf32>
    %51 = vector.shape_cast %50 : vector<1x8x512xf32> to vector<8x512xf32>
    %52 = vector.shape_cast %49 : vector<8x512xf32> to vector<1x8x512xf32>
    tpu.vector_store %arg11[%c4_47, %c0_48, %c0_49], %52 {strides = array<i32>} : memref<8x8x512xf32, #tpu.memory_space<vmem>>, vector<1x8x512xf32>,
    %c5 = arith.constant 5 : index
    %c0_50 = arith.constant 0 : index
    %c0_51 = arith.constant 0 : index
    %53 = vector.load %arg2[%c5, %c0_50, %c0_51] : memref<8x8x16xbf16, #tpu.memory_space<vmem>>, vector<1x8x16xbf16>
    %54 = vector.shape_cast %53 : vector<1x8x16xbf16> to vector<8x16xbf16>
    %c0_52 = arith.constant 0 : index
    %c0_53 = arith.constant 0 : index
    %55 = vector.load %arg7[%c0_52, %c0_53] : memref<16x512xbf16, #tpu.memory_space<vmem>>, vector<16x512xbf16>
    %cst_54 = arith.constant dense<0.000000e+00> : vector<8x512xf32>
    %56 = tpu.matmul %54, %55, %cst_54 {dimension_numbers = #tpu.dot_dimension_numbers<[1], [0], [0], [1], [0, 0, 1, 1], [], []>} : vector<8x16xbf16>, vector<16x512xbf16>, vector<8x512xf32> -> vector<8x512xf32>
    %c0_55 = arith.constant 0 : index
    %c0_56 = arith.constant 0 : index
    %57 = vector.load %arg9[%c0_55, %c0_56] : memref<1x512xf32, #tpu.memory_space<vmem>>, vector<1x512xf32>
    %58 = vector.broadcast %57 : vector<1x512xf32> to vector<8x512xf32>
    %59 = arith.addf %56, %58 : vector<8x512xf32>
    %c5_57 = arith.constant 5 : index
    %c0_58 = arith.constant 0 : index
    %c0_59 = arith.constant 0 : index
    %60 = vector.load %arg11[%c5_57, %c0_58, %c0_59] : memref<8x8x512xf32, #tpu.memory_space<vmem>>, vector<1x8x512xf32>
    %61 = vector.shape_cast %60 : vector<1x8x512xf32> to vector<8x512xf32>
    %62 = vector.shape_cast %59 : vector<8x512xf32> to vector<1x8x512xf32>
    tpu.vector_store %arg11[%c5_57, %c0_58, %c0_59], %62 {strides = array<i32>} : memref<8x8x512xf32, #tpu.memory_space<vmem>>, vector<1x8x512xf32>,
    %c6 = arith.constant 6 : index
    %c0_60 = arith.constant 0 : index
    %c0_61 = arith.constant 0 : index
    %63 = vector.load %arg2[%c6, %c0_60, %c0_61] : memref<8x8x16xbf16, #tpu.memory_space<vmem>>, vector<1x8x16xbf16>
    %64 = vector.shape_cast %63 : vector<1x8x16xbf16> to vector<8x16xbf16>
    %c0_62 = arith.constant 0 : index
    %c0_63 = arith.constant 0 : index
    %65 = vector.load %arg7[%c0_62, %c0_63] : memref<16x512xbf16, #tpu.memory_space<vmem>>, vector<16x512xbf16>
    %cst_64 = arith.constant dense<0.000000e+00> : vector<8x512xf32>
    %66 = tpu.matmul %64, %65, %cst_64 {dimension_numbers = #tpu.dot_dimension_numbers<[1], [0], [0], [1], [0, 0, 1, 1], [], []>} : vector<8x16xbf16>, vector<16x512xbf16>, vector<8x512xf32> -> vector<8x512xf32>
    %c0_65 = arith.constant 0 : index
    %c0_66 = arith.constant 0 : index
    %67 = vector.load %arg9[%c0_65, %c0_66] : memref<1x512xf32, #tpu.memory_space<vmem>>, vector<1x512xf32>
    %68 = vector.broadcast %67 : vector<1x512xf32> to vector<8x512xf32>
    %69 = arith.addf %66, %68 : vector<8x512xf32>
    %c6_67 = arith.constant 6 : index
    %c0_68 = arith.constant 0 : index
    %c0_69 = arith.constant 0 : index
    %70 = vector.load %arg11[%c6_67, %c0_68, %c0_69] : memref<8x8x512xf32, #tpu.memory_space<vmem>>, vector<1x8x512xf32>
    %71 = vector.shape_cast %70 : vector<1x8x512xf32> to vector<8x512xf32>
    %72 = vector.shape_cast %69 : vector<8x512xf32> to vector<1x8x512xf32>
    tpu.vector_store %arg11[%c6_67, %c0_68, %c0_69], %72 {strides = array<i32>} : memref<8x8x512xf32, #tpu.memory_space<vmem>>, vector<1x8x512xf32>,
    %c7 = arith.constant 7 : index
    %c0_70 = arith.constant 0 : index
    %c0_71 = arith.constant 0 : index
    %73 = vector.load %arg2[%c7, %c0_70, %c0_71] : memref<8x8x16xbf16, #tpu.memory_space<vmem>>, vector<1x8x16xbf16>
    %74 = vector.shape_cast %73 : vector<1x8x16xbf16> to vector<8x16xbf16>
    %c0_72 = arith.constant 0 : index
    %c0_73 = arith.constant 0 : index
    %75 = vector.load %arg7[%c0_72, %c0_73] : memref<16x512xbf16, #tpu.memory_space<vmem>>, vector<16x512xbf16>
    %cst_74 = arith.constant dense<0.000000e+00> : vector<8x512xf32>
    %76 = tpu.matmul %74, %75, %cst_74 {dimension_numbers = #tpu.dot_dimension_numbers<[1], [0], [0], [1], [0, 0, 1, 1], [], []>} : vector<8x16xbf16>, vector<16x512xbf16>, vector<8x512xf32> -> vector<8x512xf32>
    %c0_75 = arith.constant 0 : index
    %c0_76 = arith.constant 0 : index
    %77 = vector.load %arg9[%c0_75, %c0_76] : memref<1x512xf32, #tpu.memory_space<vmem>>, vector<1x512xf32>
    %78 = vector.broadcast %77 : vector<1x512xf32> to vector<8x512xf32>
    %79 = arith.addf %76, %78 : vector<8x512xf32>
    %c7_77 = arith.constant 7 : index
    %c0_78 = arith.constant 0 : index
    %c0_79 = arith.constant 0 : index
    %80 = vector.load %arg11[%c7_77, %c0_78, %c0_79] : memref<8x8x512xf32, #tpu.memory_space<vmem>>, vector<1x8x512xf32>
    %81 = vector.shape_cast %80 : vector<1x8x512xf32> to vector<8x512xf32>
    %82 = vector.shape_cast %79 : vector<8x512xf32> to vector<1x8x512xf32>
    tpu.vector_store %arg11[%c7_77, %c0_78, %c0_79], %82 {strides = array<i32>} : memref<8x8x512xf32, #tpu.memory_space<vmem>>, vector<1x8x512xf32>,
    %c0_80 = arith.constant 0 : index
    %c0_81 = arith.constant 0 : index
    %83 = vector.load %arg12[%c0_80, %c0_81] : memref<8x128xf32, #tpu.memory_space<vmem>>, vector<8x128xf32>
    %c0_82 = arith.constant 0 : index
    %c0_83 = arith.constant 0 : index
    %c0_84 = arith.constant 0 : index
    %84 = vector.load %arg11[%c0_82, %c0_83, %c0_84] : memref<8x8x512xf32, #tpu.memory_space<vmem>>, vector<1x8x512xf32>
    %85 = vector.shape_cast %84 : vector<1x8x512xf32> to vector<8x512xf32>
    %86 = arith.truncf %83 : vector<8x128xf32> to vector<8x128xbf16>
    %c0_85 = arith.constant 0 : index
    %c0_86 = arith.constant 0 : index
    %87 = vector.load %arg8[%c0_85, %c0_86] : memref<128x512xbf16, #tpu.memory_space<vmem>>, vector<128x512xbf16>
    %cst_87 = arith.constant dense<0.000000e+00> : vector<8x512xf32>
    %88 = tpu.matmul %86, %87, %cst_87 {dimension_numbers = #tpu.dot_dimension_numbers<[1], [0], [0], [1], [0, 0, 1, 1], [], []>} : vector<8x128xbf16>, vector<128x512xbf16>, vector<8x512xf32> -> vector<8x512xf32>
    %89 = arith.addf %85, %88 : vector<8x512xf32>
    %90 = vector.extract_strided_slice %89 {offsets = [0, 0], sizes = [8, 128], strides = [1, 1]} : vector<8x512xf32> to vector<8x128xf32>
    %91 = arith.negf %90 : vector<8x128xf32>
    %92 = math.exp %91 : vector<8x128xf32>
    %cst_88 = arith.constant 1.000000e+00 : f32
    %93 = vector.broadcast %cst_88 : f32 to vector<8x128xf32>
    %94 = arith.addf %93, %92 : vector<8x128xf32>
    %95 = arith.divf %93, %94 : vector<8x128xf32>
    %96 = vector.extract_strided_slice %89 {offsets = [0, 128], sizes = [8, 128], strides = [1, 1]} : vector<8x512xf32> to vector<8x128xf32>
    %97 = arith.negf %96 : vector<8x128xf32>
    %98 = math.exp %97 : vector<8x128xf32>
    %cst_89 = arith.constant 1.000000e+00 : f32
    %99 = vector.broadcast %cst_89 : f32 to vector<8x128xf32>
    %100 = arith.addf %99, %98 : vector<8x128xf32>
    %101 = arith.divf %99, %100 : vector<8x128xf32>
    %102 = vector.extract_strided_slice %89 {offsets = [0, 256], sizes = [8, 128], strides = [1, 1]} : vector<8x512xf32> to vector<8x128xf32>
    %103 = math.tanh %102 : vector<8x128xf32>
    %104 = vector.extract_strided_slice %89 {offsets = [0, 384], sizes = [8, 128], strides = [1, 1]} : vector<8x512xf32> to vector<8x128xf32>
    %105 = arith.negf %104 : vector<8x128xf32>
    %106 = math.exp %105 : vector<8x128xf32>
    %cst_90 = arith.constant 1.000000e+00 : f32
    %107 = vector.broadcast %cst_90 : f32 to vector<8x128xf32>
    %108 = arith.addf %107, %106 : vector<8x128xf32>
    %109 = arith.divf %107, %108 : vector<8x128xf32>
    %c0_91 = arith.constant 0 : index
    %c0_92 = arith.constant 0 : index
    %110 = vector.load %arg13[%c0_91, %c0_92] : memref<8x128xf32, #tpu.memory_space<vmem>>, vector<8x128xf32>
    %111 = arith.mulf %101, %110 : vector<8x128xf32>
    %112 = arith.mulf %95, %103 : vector<8x128xf32>
    %113 = arith.addf %111, %112 : vector<8x128xf32>
    %114 = math.tanh %113 : vector<8x128xf32>
    %115 = arith.mulf %109, %114 : vector<8x128xf32>
    %c0_93 = arith.constant 0 : index
    %c0_94 = arith.constant 0 : index
    %116 = vector.load %arg13[%c0_93, %c0_94] : memref<8x128xf32, #tpu.memory_space<vmem>>, vector<8x128xf32>
    tpu.vector_store %arg13[%c0_93, %c0_94], %113 {strides = array<i32>} : memref<8x128xf32, #tpu.memory_space<vmem>>, vector<8x128xf32>,
    %c0_95 = arith.constant 0 : index
    %c0_96 = arith.constant 0 : index
    %117 = vector.load %arg12[%c0_95, %c0_96] : memref<8x128xf32, #tpu.memory_space<vmem>>, vector<8x128xf32>
    tpu.vector_store %arg12[%c0_95, %c0_96], %115 {strides = array<i32>} : memref<8x128xf32, #tpu.memory_space<vmem>>, vector<8x128xf32>,
    %118 = arith.truncf %115 : vector<8x128xf32> to vector<8x128xbf16>
    %c0_97 = arith.constant 0 : index
    %c0_98 = arith.constant 0 : index
    %c0_99 = arith.constant 0 : index
    %119 = vector.load %arg6[%c0_97, %c0_98, %c0_99] : memref<8x8x128xbf16, #tpu.memory_space<vmem>>, vector<1x8x128xbf16>
    %120 = vector.shape_cast %119 : vector<1x8x128xbf16> to vector<8x128xbf16>
    %121 = vector.shape_cast %118 : vector<8x128xbf16> to vector<1x8x128xbf16>
    tpu.vector_store %arg6[%c0_97, %c0_98, %c0_99], %121 {strides = array<i32>} : memref<8x8x128xbf16, #tpu.memory_space<vmem>>, vector<1x8x128xbf16>,
    %c0_100 = arith.constant 0 : index
    %c0_101 = arith.constant 0 : index
    %122 = vector.load %arg12[%c0_100, %c0_101] : memref<8x128xf32, #tpu.memory_space<vmem>>, vector<8x128xf32>
    %c1_102 = arith.constant 1 : index
    %c0_103 = arith.constant 0 : index
    %c0_104 = arith.constant 0 : index
    %123 = vector.load %arg11[%c1_102, %c0_103, %c0_104] : memref<8x8x512xf32, #tpu.memory_space<vmem>>, vector<1x8x512xf32>
    %124 = vector.shape_cast %123 : vector<1x8x512xf32> to vector<8x512xf32>
    %125 = arith.truncf %122 : vector<8x128xf32> to vector<8x128xbf16>
    %c0_105 = arith.constant 0 : index
    %c0_106 = arith.constant 0 : index
    %126 = vector.load %arg8[%c0_105, %c0_106] : memref<128x512xbf16, #tpu.memory_space<vmem>>, vector<128x512xbf16>
    %cst_107 = arith.constant dense<0.000000e+00> : vector<8x512xf32>
    %127 = tpu.matmul %125, %126, %cst_107 {dimension_numbers = #tpu.dot_dimension_numbers<[1], [0], [0], [1], [0, 0, 1, 1], [], []>} : vector<8x128xbf16>, vector<128x512xbf16>, vector<8x512xf32> -> vector<8x512xf32>
    %128 = arith.addf %124, %127 : vector<8x512xf32>
    %129 = vector.extract_strided_slice %128 {offsets = [0, 0], sizes = [8, 128], strides = [1, 1]} : vector<8x512xf32> to vector<8x128xf32>
    %130 = arith.negf %129 : vector<8x128xf32>
    %131 = math.exp %130 : vector<8x128xf32>
    %cst_108 = arith.constant 1.000000e+00 : f32
    %132 = vector.broadcast %cst_108 : f32 to vector<8x128xf32>
    %133 = arith.addf %132, %131 : vector<8x128xf32>
    %134 = arith.divf %132, %133 : vector<8x128xf32>
    %135 = vector.extract_strided_slice %128 {offsets = [0, 128], sizes = [8, 128], strides = [1, 1]} : vector<8x512xf32> to vector<8x128xf32>
    %136 = arith.negf %135 : vector<8x128xf32>
    %137 = math.exp %136 : vector<8x128xf32>
    %cst_109 = arith.constant 1.000000e+00 : f32
    %138 = vector.broadcast %cst_109 : f32 to vector<8x128xf32>
    %139 = arith.addf %138, %137 : vector<8x128xf32>
    %140 = arith.divf %138, %139 : vector<8x128xf32>
    %141 = vector.extract_strided_slice %128 {offsets = [0, 256], sizes = [8, 128], strides = [1, 1]} : vector<8x512xf32> to vector<8x128xf32>
    %142 = math.tanh %141 : vector<8x128xf32>
    %143 = vector.extract_strided_slice %128 {offsets = [0, 384], sizes = [8, 128], strides = [1, 1]} : vector<8x512xf32> to vector<8x128xf32>
    %144 = arith.negf %143 : vector<8x128xf32>
    %145 = math.exp %144 : vector<8x128xf32>
    %cst_110 = arith.constant 1.000000e+00 : f32
    %146 = vector.broadcast %cst_110 : f32 to vector<8x128xf32>
    %147 = arith.addf %146, %145 : vector<8x128xf32>
    %148 = arith.divf %146, %147 : vector<8x128xf32>
    %c0_111 = arith.constant 0 : index
    %c0_112 = arith.constant 0 : index
    %149 = vector.load %arg13[%c0_111, %c0_112] : memref<8x128xf32, #tpu.memory_space<vmem>>, vector<8x128xf32>
    %150 = arith.mulf %140, %149 : vector<8x128xf32>
    %151 = arith.mulf %134, %142 : vector<8x128xf32>
    %152 = arith.addf %150, %151 : vector<8x128xf32>
    %153 = math.tanh %152 : vector<8x128xf32>
    %154 = arith.mulf %148, %153 : vector<8x128xf32>
    %c0_113 = arith.constant 0 : index
    %c0_114 = arith.constant 0 : index
    %155 = vector.load %arg13[%c0_113, %c0_114] : memref<8x128xf32, #tpu.memory_space<vmem>>, vector<8x128xf32>
    tpu.vector_store %arg13[%c0_113, %c0_114], %152 {strides = array<i32>} : memref<8x128xf32, #tpu.memory_space<vmem>>, vector<8x128xf32>,
    %c0_115 = arith.constant 0 : index
    %c0_116 = arith.constant 0 : index
    %156 = vector.load %arg12[%c0_115, %c0_116] : memref<8x128xf32, #tpu.memory_space<vmem>>, vector<8x128xf32>
    tpu.vector_store %arg12[%c0_115, %c0_116], %154 {strides = array<i32>} : memref<8x128xf32, #tpu.memory_space<vmem>>, vector<8x128xf32>,
    %157 = arith.truncf %154 : vector<8x128xf32> to vector<8x128xbf16>
    %c1_117 = arith.constant 1 : index
    %c0_118 = arith.constant 0 : index
    %c0_119 = arith.constant 0 : index
    %158 = vector.load %arg6[%c1_117, %c0_118, %c0_119] : memref<8x8x128xbf16, #tpu.memory_space<vmem>>, vector<1x8x128xbf16>
    %159 = vector.shape_cast %158 : vector<1x8x128xbf16> to vector<8x128xbf16>
    %160 = vector.shape_cast %157 : vector<8x128xbf16> to vector<1x8x128xbf16>
    tpu.vector_store %arg6[%c1_117, %c0_118, %c0_119], %160 {strides = array<i32>} : memref<8x8x128xbf16, #tpu.memory_space<vmem>>, vector<1x8x128xbf16>,
    %c0_120 = arith.constant 0 : index
    %c0_121 = arith.constant 0 : index
    %161 = vector.load %arg12[%c0_120, %c0_121] : memref<8x128xf32, #tpu.memory_space<vmem>>, vector<8x128xf32>
    %c2_122 = arith.constant 2 : index
    %c0_123 = arith.constant 0 : index
    %c0_124 = arith.constant 0 : index
    %162 = vector.load %arg11[%c2_122, %c0_123, %c0_124] : memref<8x8x512xf32, #tpu.memory_space<vmem>>, vector<1x8x512xf32>
    %163 = vector.shape_cast %162 : vector<1x8x512xf32> to vector<8x512xf32>
    %164 = arith.truncf %161 : vector<8x128xf32> to vector<8x128xbf16>
    %c0_125 = arith.constant 0 : index
    %c0_126 = arith.constant 0 : index
    %165 = vector.load %arg8[%c0_125, %c0_126] : memref<128x512xbf16, #tpu.memory_space<vmem>>, vector<128x512xbf16>
    %cst_127 = arith.constant dense<0.000000e+00> : vector<8x512xf32>
    %166 = tpu.matmul %164, %165, %cst_127 {dimension_numbers = #tpu.dot_dimension_numbers<[1], [0], [0], [1], [0, 0, 1, 1], [], []>} : vector<8x128xbf16>, vector<128x512xbf16>, vector<8x512xf32> -> vector<8x512xf32>
    %167 = arith.addf %163, %166 : vector<8x512xf32>
    %168 = vector.extract_strided_slice %167 {offsets = [0, 0], sizes = [8, 128], strides = [1, 1]} : vector<8x512xf32> to vector<8x128xf32>
    %169 = arith.negf %168 : vector<8x128xf32>
    %170 = math.exp %169 : vector<8x128xf32>
    %cst_128 = arith.constant 1.000000e+00 : f32
    %171 = vector.broadcast %cst_128 : f32 to vector<8x128xf32>
    %172 = arith.addf %171, %170 : vector<8x128xf32>
    %173 = arith.divf %171, %172 : vector<8x128xf32>
    %174 = vector.extract_strided_slice %167 {offsets = [0, 128], sizes = [8, 128], strides = [1, 1]} : vector<8x512xf32> to vector<8x128xf32>
    %175 = arith.negf %174 : vector<8x128xf32>
    %176 = math.exp %175 : vector<8x128xf32>
    %cst_129 = arith.constant 1.000000e+00 : f32
    %177 = vector.broadcast %cst_129 : f32 to vector<8x128xf32>
    %178 = arith.addf %177, %176 : vector<8x128xf32>
    %179 = arith.divf %177, %178 : vector<8x128xf32>
    %180 = vector.extract_strided_slice %167 {offsets = [0, 256], sizes = [8, 128], strides = [1, 1]} : vector<8x512xf32> to vector<8x128xf32>
    %181 = math.tanh %180 : vector<8x128xf32>
    %182 = vector.extract_strided_slice %167 {offsets = [0, 384], sizes = [8, 128], strides = [1, 1]} : vector<8x512xf32> to vector<8x128xf32>
    %183 = arith.negf %182 : vector<8x128xf32>
    %184 = math.exp %183 : vector<8x128xf32>
    %cst_130 = arith.constant 1.000000e+00 : f32
    %185 = vector.broadcast %cst_130 : f32 to vector<8x128xf32>
    %186 = arith.addf %185, %184 : vector<8x128xf32>
    %187 = arith.divf %185, %186 : vector<8x128xf32>
    %c0_131 = arith.constant 0 : index
    %c0_132 = arith.constant 0 : index
    %188 = vector.load %arg13[%c0_131, %c0_132] : memref<8x128xf32, #tpu.memory_space<vmem>>, vector<8x128xf32>
    %189 = arith.mulf %179, %188 : vector<8x128xf32>
    %190 = arith.mulf %173, %181 : vector<8x128xf32>
    %191 = arith.addf %189, %190 : vector<8x128xf32>
    %192 = math.tanh %191 : vector<8x128xf32>
    %193 = arith.mulf %187, %192 : vector<8x128xf32>
    %c0_133 = arith.constant 0 : index
    %c0_134 = arith.constant 0 : index
    %194 = vector.load %arg13[%c0_133, %c0_134] : memref<8x128xf32, #tpu.memory_space<vmem>>, vector<8x128xf32>
    tpu.vector_store %arg13[%c0_133, %c0_134], %191 {strides = array<i32>} : memref<8x128xf32, #tpu.memory_space<vmem>>, vector<8x128xf32>,
    %c0_135 = arith.constant 0 : index
    %c0_136 = arith.constant 0 : index
    %195 = vector.load %arg12[%c0_135, %c0_136] : memref<8x128xf32, #tpu.memory_space<vmem>>, vector<8x128xf32>
    tpu.vector_store %arg12[%c0_135, %c0_136], %193 {strides = array<i32>} : memref<8x128xf32, #tpu.memory_space<vmem>>, vector<8x128xf32>,
    %196 = arith.truncf %193 : vector<8x128xf32> to vector<8x128xbf16>
    %c2_137 = arith.constant 2 : index
    %c0_138 = arith.constant 0 : index
    %c0_139 = arith.constant 0 : index
    %197 = vector.load %arg6[%c2_137, %c0_138, %c0_139] : memref<8x8x128xbf16, #tpu.memory_space<vmem>>, vector<1x8x128xbf16>
    %198 = vector.shape_cast %197 : vector<1x8x128xbf16> to vector<8x128xbf16>
    %199 = vector.shape_cast %196 : vector<8x128xbf16> to vector<1x8x128xbf16>
    tpu.vector_store %arg6[%c2_137, %c0_138, %c0_139], %199 {strides = array<i32>} : memref<8x8x128xbf16, #tpu.memory_space<vmem>>, vector<1x8x128xbf16>,
    %c0_140 = arith.constant 0 : index
    %c0_141 = arith.constant 0 : index
    %200 = vector.load %arg12[%c0_140, %c0_141] : memref<8x128xf32, #tpu.memory_space<vmem>>, vector<8x128xf32>
    %c3_142 = arith.constant 3 : index
    %c0_143 = arith.constant 0 : index
    %c0_144 = arith.constant 0 : index
    %201 = vector.load %arg11[%c3_142, %c0_143, %c0_144] : memref<8x8x512xf32, #tpu.memory_space<vmem>>, vector<1x8x512xf32>
    %202 = vector.shape_cast %201 : vector<1x8x512xf32> to vector<8x512xf32>
    %203 = arith.truncf %200 : vector<8x128xf32> to vector<8x128xbf16>
    %c0_145 = arith.constant 0 : index
    %c0_146 = arith.constant 0 : index
    %204 = vector.load %arg8[%c0_145, %c0_146] : memref<128x512xbf16, #tpu.memory_space<vmem>>, vector<128x512xbf16>
    %cst_147 = arith.constant dense<0.000000e+00> : vector<8x512xf32>
    %205 = tpu.matmul %203, %204, %cst_147 {dimension_numbers = #tpu.dot_dimension_numbers<[1], [0], [0], [1], [0, 0, 1, 1], [], []>} : vector<8x128xbf16>, vector<128x512xbf16>, vector<8x512xf32> -> vector<8x512xf32>
    %206 = arith.addf %202, %205 : vector<8x512xf32>
    %207 = vector.extract_strided_slice %206 {offsets = [0, 0], sizes = [8, 128], strides = [1, 1]} : vector<8x512xf32> to vector<8x128xf32>
    %208 = arith.negf %207 : vector<8x128xf32>
    %209 = math.exp %208 : vector<8x128xf32>
    %cst_148 = arith.constant 1.000000e+00 : f32
    %210 = vector.broadcast %cst_148 : f32 to vector<8x128xf32>
    %211 = arith.addf %210, %209 : vector<8x128xf32>
    %212 = arith.divf %210, %211 : vector<8x128xf32>
    %213 = vector.extract_strided_slice %206 {offsets = [0, 128], sizes = [8, 128], strides = [1, 1]} : vector<8x512xf32> to vector<8x128xf32>
    %214 = arith.negf %213 : vector<8x128xf32>
    %215 = math.exp %214 : vector<8x128xf32>
    %cst_149 = arith.constant 1.000000e+00 : f32
    %216 = vector.broadcast %cst_149 : f32 to vector<8x128xf32>
    %217 = arith.addf %216, %215 : vector<8x128xf32>
    %218 = arith.divf %216, %217 : vector<8x128xf32>
    %219 = vector.extract_strided_slice %206 {offsets = [0, 256], sizes = [8, 128], strides = [1, 1]} : vector<8x512xf32> to vector<8x128xf32>
    %220 = math.tanh %219 : vector<8x128xf32>
    %221 = vector.extract_strided_slice %206 {offsets = [0, 384], sizes = [8, 128], strides = [1, 1]} : vector<8x512xf32> to vector<8x128xf32>
    %222 = arith.negf %221 : vector<8x128xf32>
    %223 = math.exp %222 : vector<8x128xf32>
    %cst_150 = arith.constant 1.000000e+00 : f32
    %224 = vector.broadcast %cst_150 : f32 to vector<8x128xf32>
    %225 = arith.addf %224, %223 : vector<8x128xf32>
    %226 = arith.divf %224, %225 : vector<8x128xf32>
    %c0_151 = arith.constant 0 : index
    %c0_152 = arith.constant 0 : index
    %227 = vector.load %arg13[%c0_151, %c0_152] : memref<8x128xf32, #tpu.memory_space<vmem>>, vector<8x128xf32>
    %228 = arith.mulf %218, %227 : vector<8x128xf32>
    %229 = arith.mulf %212, %220 : vector<8x128xf32>
    %230 = arith.addf %228, %229 : vector<8x128xf32>
    %231 = math.tanh %230 : vector<8x128xf32>
    %232 = arith.mulf %226, %231 : vector<8x128xf32>
    %c0_153 = arith.constant 0 : index
    %c0_154 = arith.constant 0 : index
    %233 = vector.load %arg13[%c0_153, %c0_154] : memref<8x128xf32, #tpu.memory_space<vmem>>, vector<8x128xf32>
    tpu.vector_store %arg13[%c0_153, %c0_154], %230 {strides = array<i32>} : memref<8x128xf32, #tpu.memory_space<vmem>>, vector<8x128xf32>,
    %c0_155 = arith.constant 0 : index
    %c0_156 = arith.constant 0 : index
    %234 = vector.load %arg12[%c0_155, %c0_156] : memref<8x128xf32, #tpu.memory_space<vmem>>, vector<8x128xf32>
    tpu.vector_store %arg12[%c0_155, %c0_156], %232 {strides = array<i32>} : memref<8x128xf32, #tpu.memory_space<vmem>>, vector<8x128xf32>,
    %235 = arith.truncf %232 : vector<8x128xf32> to vector<8x128xbf16>
    %c3_157 = arith.constant 3 : index
    %c0_158 = arith.constant 0 : index
    %c0_159 = arith.constant 0 : index
    %236 = vector.load %arg6[%c3_157, %c0_158, %c0_159] : memref<8x8x128xbf16, #tpu.memory_space<vmem>>, vector<1x8x128xbf16>
    %237 = vector.shape_cast %236 : vector<1x8x128xbf16> to vector<8x128xbf16>
    %238 = vector.shape_cast %235 : vector<8x128xbf16> to vector<1x8x128xbf16>
    tpu.vector_store %arg6[%c3_157, %c0_158, %c0_159], %238 {strides = array<i32>} : memref<8x8x128xbf16, #tpu.memory_space<vmem>>, vector<1x8x128xbf16>,
    %c0_160 = arith.constant 0 : index
    %c0_161 = arith.constant 0 : index
    %239 = vector.load %arg12[%c0_160, %c0_161] : memref<8x128xf32, #tpu.memory_space<vmem>>, vector<8x128xf32>
    %c4_162 = arith.constant 4 : index
    %c0_163 = arith.constant 0 : index
    %c0_164 = arith.constant 0 : index
    %240 = vector.load %arg11[%c4_162, %c0_163, %c0_164] : memref<8x8x512xf32, #tpu.memory_space<vmem>>, vector<1x8x512xf32>
    %241 = vector.shape_cast %240 : vector<1x8x512xf32> to vector<8x512xf32>
    %242 = arith.truncf %239 : vector<8x128xf32> to vector<8x128xbf16>
    %c0_165 = arith.constant 0 : index
    %c0_166 = arith.constant 0 : index
    %243 = vector.load %arg8[%c0_165, %c0_166] : memref<128x512xbf16, #tpu.memory_space<vmem>>, vector<128x512xbf16>
    %cst_167 = arith.constant dense<0.000000e+00> : vector<8x512xf32>
    %244 = tpu.matmul %242, %243, %cst_167 {dimension_numbers = #tpu.dot_dimension_numbers<[1], [0], [0], [1], [0, 0, 1, 1], [], []>} : vector<8x128xbf16>, vector<128x512xbf16>, vector<8x512xf32> -> vector<8x512xf32>
    %245 = arith.addf %241, %244 : vector<8x512xf32>
    %246 = vector.extract_strided_slice %245 {offsets = [0, 0], sizes = [8, 128], strides = [1, 1]} : vector<8x512xf32> to vector<8x128xf32>
    %247 = arith.negf %246 : vector<8x128xf32>
    %248 = math.exp %247 : vector<8x128xf32>
    %cst_168 = arith.constant 1.000000e+00 : f32
    %249 = vector.broadcast %cst_168 : f32 to vector<8x128xf32>
    %250 = arith.addf %249, %248 : vector<8x128xf32>
    %251 = arith.divf %249, %250 : vector<8x128xf32>
    %252 = vector.extract_strided_slice %245 {offsets = [0, 128], sizes = [8, 128], strides = [1, 1]} : vector<8x512xf32> to vector<8x128xf32>
    %253 = arith.negf %252 : vector<8x128xf32>
    %254 = math.exp %253 : vector<8x128xf32>
    %cst_169 = arith.constant 1.000000e+00 : f32
    %255 = vector.broadcast %cst_169 : f32 to vector<8x128xf32>
    %256 = arith.addf %255, %254 : vector<8x128xf32>
    %257 = arith.divf %255, %256 : vector<8x128xf32>
    %258 = vector.extract_strided_slice %245 {offsets = [0, 256], sizes = [8, 128], strides = [1, 1]} : vector<8x512xf32> to vector<8x128xf32>
    %259 = math.tanh %258 : vector<8x128xf32>
    %260 = vector.extract_strided_slice %245 {offsets = [0, 384], sizes = [8, 128], strides = [1, 1]} : vector<8x512xf32> to vector<8x128xf32>
    %261 = arith.negf %260 : vector<8x128xf32>
    %262 = math.exp %261 : vector<8x128xf32>
    %cst_170 = arith.constant 1.000000e+00 : f32
    %263 = vector.broadcast %cst_170 : f32 to vector<8x128xf32>
    %264 = arith.addf %263, %262 : vector<8x128xf32>
    %265 = arith.divf %263, %264 : vector<8x128xf32>
    %c0_171 = arith.constant 0 : index
    %c0_172 = arith.constant 0 : index
    %266 = vector.load %arg13[%c0_171, %c0_172] : memref<8x128xf32, #tpu.memory_space<vmem>>, vector<8x128xf32>
    %267 = arith.mulf %257, %266 : vector<8x128xf32>
    %268 = arith.mulf %251, %259 : vector<8x128xf32>
    %269 = arith.addf %267, %268 : vector<8x128xf32>
    %270 = math.tanh %269 : vector<8x128xf32>
    %271 = arith.mulf %265, %270 : vector<8x128xf32>
    %c0_173 = arith.constant 0 : index
    %c0_174 = arith.constant 0 : index
    %272 = vector.load %arg13[%c0_173, %c0_174] : memref<8x128xf32, #tpu.memory_space<vmem>>, vector<8x128xf32>
    tpu.vector_store %arg13[%c0_173, %c0_174], %269 {strides = array<i32>} : memref<8x128xf32, #tpu.memory_space<vmem>>, vector<8x128xf32>,
    %c0_175 = arith.constant 0 : index
    %c0_176 = arith.constant 0 : index
    %273 = vector.load %arg12[%c0_175, %c0_176] : memref<8x128xf32, #tpu.memory_space<vmem>>, vector<8x128xf32>
    tpu.vector_store %arg12[%c0_175, %c0_176], %271 {strides = array<i32>} : memref<8x128xf32, #tpu.memory_space<vmem>>, vector<8x128xf32>,
    %274 = arith.truncf %271 : vector<8x128xf32> to vector<8x128xbf16>
    %c4_177 = arith.constant 4 : index
    %c0_178 = arith.constant 0 : index
    %c0_179 = arith.constant 0 : index
    %275 = vector.load %arg6[%c4_177, %c0_178, %c0_179] : memref<8x8x128xbf16, #tpu.memory_space<vmem>>, vector<1x8x128xbf16>
    %276 = vector.shape_cast %275 : vector<1x8x128xbf16> to vector<8x128xbf16>
    %277 = vector.shape_cast %274 : vector<8x128xbf16> to vector<1x8x128xbf16>
    tpu.vector_store %arg6[%c4_177, %c0_178, %c0_179], %277 {strides = array<i32>} : memref<8x8x128xbf16, #tpu.memory_space<vmem>>, vector<1x8x128xbf16>,
    %c0_180 = arith.constant 0 : index
    %c0_181 = arith.constant 0 : index
    %278 = vector.load %arg12[%c0_180, %c0_181] : memref<8x128xf32, #tpu.memory_space<vmem>>, vector<8x128xf32>
    %c5_182 = arith.constant 5 : index
    %c0_183 = arith.constant 0 : index
    %c0_184 = arith.constant 0 : index
    %279 = vector.load %arg11[%c5_182, %c0_183, %c0_184] : memref<8x8x512xf32, #tpu.memory_space<vmem>>, vector<1x8x512xf32>
    %280 = vector.shape_cast %279 : vector<1x8x512xf32> to vector<8x512xf32>
    %281 = arith.truncf %278 : vector<8x128xf32> to vector<8x128xbf16>
    %c0_185 = arith.constant 0 : index
    %c0_186 = arith.constant 0 : index
    %282 = vector.load %arg8[%c0_185, %c0_186] : memref<128x512xbf16, #tpu.memory_space<vmem>>, vector<128x512xbf16>
    %cst_187 = arith.constant dense<0.000000e+00> : vector<8x512xf32>
    %283 = tpu.matmul %281, %282, %cst_187 {dimension_numbers = #tpu.dot_dimension_numbers<[1], [0], [0], [1], [0, 0, 1, 1], [], []>} : vector<8x128xbf16>, vector<128x512xbf16>, vector<8x512xf32> -> vector<8x512xf32>
    %284 = arith.addf %280, %283 : vector<8x512xf32>
    %285 = vector.extract_strided_slice %284 {offsets = [0, 0], sizes = [8, 128], strides = [1, 1]} : vector<8x512xf32> to vector<8x128xf32>
    %286 = arith.negf %285 : vector<8x128xf32>
    %287 = math.exp %286 : vector<8x128xf32>
    %cst_188 = arith.constant 1.000000e+00 : f32
    %288 = vector.broadcast %cst_188 : f32 to vector<8x128xf32>
    %289 = arith.addf %288, %287 : vector<8x128xf32>
    %290 = arith.divf %288, %289 : vector<8x128xf32>
    %291 = vector.extract_strided_slice %284 {offsets = [0, 128], sizes = [8, 128], strides = [1, 1]} : vector<8x512xf32> to vector<8x128xf32>
    %292 = arith.negf %291 : vector<8x128xf32>
    %293 = math.exp %292 : vector<8x128xf32>
    %cst_189 = arith.constant 1.000000e+00 : f32
    %294 = vector.broadcast %cst_189 : f32 to vector<8x128xf32>
    %295 = arith.addf %294, %293 : vector<8x128xf32>
    %296 = arith.divf %294, %295 : vector<8x128xf32>
    %297 = vector.extract_strided_slice %284 {offsets = [0, 256], sizes = [8, 128], strides = [1, 1]} : vector<8x512xf32> to vector<8x128xf32>
    %298 = math.tanh %297 : vector<8x128xf32>
    %299 = vector.extract_strided_slice %284 {offsets = [0, 384], sizes = [8, 128], strides = [1, 1]} : vector<8x512xf32> to vector<8x128xf32>
    %300 = arith.negf %299 : vector<8x128xf32>
    %301 = math.exp %300 : vector<8x128xf32>
    %cst_190 = arith.constant 1.000000e+00 : f32
    %302 = vector.broadcast %cst_190 : f32 to vector<8x128xf32>
    %303 = arith.addf %302, %301 : vector<8x128xf32>
    %304 = arith.divf %302, %303 : vector<8x128xf32>
    %c0_191 = arith.constant 0 : index
    %c0_192 = arith.constant 0 : index
    %305 = vector.load %arg13[%c0_191, %c0_192] : memref<8x128xf32, #tpu.memory_space<vmem>>, vector<8x128xf32>
    %306 = arith.mulf %296, %305 : vector<8x128xf32>
    %307 = arith.mulf %290, %298 : vector<8x128xf32>
    %308 = arith.addf %306, %307 : vector<8x128xf32>
    %309 = math.tanh %308 : vector<8x128xf32>
    %310 = arith.mulf %304, %309 : vector<8x128xf32>
    %c0_193 = arith.constant 0 : index
    %c0_194 = arith.constant 0 : index
    %311 = vector.load %arg13[%c0_193, %c0_194] : memref<8x128xf32, #tpu.memory_space<vmem>>, vector<8x128xf32>
    tpu.vector_store %arg13[%c0_193, %c0_194], %308 {strides = array<i32>} : memref<8x128xf32, #tpu.memory_space<vmem>>, vector<8x128xf32>,
    %c0_195 = arith.constant 0 : index
    %c0_196 = arith.constant 0 : index
    %312 = vector.load %arg12[%c0_195, %c0_196] : memref<8x128xf32, #tpu.memory_space<vmem>>, vector<8x128xf32>
    tpu.vector_store %arg12[%c0_195, %c0_196], %310 {strides = array<i32>} : memref<8x128xf32, #tpu.memory_space<vmem>>, vector<8x128xf32>,
    %313 = arith.truncf %310 : vector<8x128xf32> to vector<8x128xbf16>
    %c5_197 = arith.constant 5 : index
    %c0_198 = arith.constant 0 : index
    %c0_199 = arith.constant 0 : index
    %314 = vector.load %arg6[%c5_197, %c0_198, %c0_199] : memref<8x8x128xbf16, #tpu.memory_space<vmem>>, vector<1x8x128xbf16>
    %315 = vector.shape_cast %314 : vector<1x8x128xbf16> to vector<8x128xbf16>
    %316 = vector.shape_cast %313 : vector<8x128xbf16> to vector<1x8x128xbf16>
    tpu.vector_store %arg6[%c5_197, %c0_198, %c0_199], %316 {strides = array<i32>} : memref<8x8x128xbf16, #tpu.memory_space<vmem>>, vector<1x8x128xbf16>,
    %c0_200 = arith.constant 0 : index
    %c0_201 = arith.constant 0 : index
    %317 = vector.load %arg12[%c0_200, %c0_201] : memref<8x128xf32, #tpu.memory_space<vmem>>, vector<8x128xf32>
    %c6_202 = arith.constant 6 : index
    %c0_203 = arith.constant 0 : index
    %c0_204 = arith.constant 0 : index
    %318 = vector.load %arg11[%c6_202, %c0_203, %c0_204] : memref<8x8x512xf32, #tpu.memory_space<vmem>>, vector<1x8x512xf32>
    %319 = vector.shape_cast %318 : vector<1x8x512xf32> to vector<8x512xf32>
    %320 = arith.truncf %317 : vector<8x128xf32> to vector<8x128xbf16>
    %c0_205 = arith.constant 0 : index
    %c0_206 = arith.constant 0 : index
    %321 = vector.load %arg8[%c0_205, %c0_206] : memref<128x512xbf16, #tpu.memory_space<vmem>>, vector<128x512xbf16>
    %cst_207 = arith.constant dense<0.000000e+00> : vector<8x512xf32>
    %322 = tpu.matmul %320, %321, %cst_207 {dimension_numbers = #tpu.dot_dimension_numbers<[1], [0], [0], [1], [0, 0, 1, 1], [], []>} : vector<8x128xbf16>, vector<128x512xbf16>, vector<8x512xf32> -> vector<8x512xf32>
    %323 = arith.addf %319, %322 : vector<8x512xf32>
    %324 = vector.extract_strided_slice %323 {offsets = [0, 0], sizes = [8, 128], strides = [1, 1]} : vector<8x512xf32> to vector<8x128xf32>
    %325 = arith.negf %324 : vector<8x128xf32>
    %326 = math.exp %325 : vector<8x128xf32>
    %cst_208 = arith.constant 1.000000e+00 : f32
    %327 = vector.broadcast %cst_208 : f32 to vector<8x128xf32>
    %328 = arith.addf %327, %326 : vector<8x128xf32>
    %329 = arith.divf %327, %328 : vector<8x128xf32>
    %330 = vector.extract_strided_slice %323 {offsets = [0, 128], sizes = [8, 128], strides = [1, 1]} : vector<8x512xf32> to vector<8x128xf32>
    %331 = arith.negf %330 : vector<8x128xf32>
    %332 = math.exp %331 : vector<8x128xf32>
    %cst_209 = arith.constant 1.000000e+00 : f32
    %333 = vector.broadcast %cst_209 : f32 to vector<8x128xf32>
    %334 = arith.addf %333, %332 : vector<8x128xf32>
    %335 = arith.divf %333, %334 : vector<8x128xf32>
    %336 = vector.extract_strided_slice %323 {offsets = [0, 256], sizes = [8, 128], strides = [1, 1]} : vector<8x512xf32> to vector<8x128xf32>
    %337 = math.tanh %336 : vector<8x128xf32>
    %338 = vector.extract_strided_slice %323 {offsets = [0, 384], sizes = [8, 128], strides = [1, 1]} : vector<8x512xf32> to vector<8x128xf32>
    %339 = arith.negf %338 : vector<8x128xf32>
    %340 = math.exp %339 : vector<8x128xf32>
    %cst_210 = arith.constant 1.000000e+00 : f32
    %341 = vector.broadcast %cst_210 : f32 to vector<8x128xf32>
    %342 = arith.addf %341, %340 : vector<8x128xf32>
    %343 = arith.divf %341, %342 : vector<8x128xf32>
    %c0_211 = arith.constant 0 : index
    %c0_212 = arith.constant 0 : index
    %344 = vector.load %arg13[%c0_211, %c0_212] : memref<8x128xf32, #tpu.memory_space<vmem>>, vector<8x128xf32>
    %345 = arith.mulf %335, %344 : vector<8x128xf32>
    %346 = arith.mulf %329, %337 : vector<8x128xf32>
    %347 = arith.addf %345, %346 : vector<8x128xf32>
    %348 = math.tanh %347 : vector<8x128xf32>
    %349 = arith.mulf %343, %348 : vector<8x128xf32>
    %c0_213 = arith.constant 0 : index
    %c0_214 = arith.constant 0 : index
    %350 = vector.load %arg13[%c0_213, %c0_214] : memref<8x128xf32, #tpu.memory_space<vmem>>, vector<8x128xf32>
    tpu.vector_store %arg13[%c0_213, %c0_214], %347 {strides = array<i32>} : memref<8x128xf32, #tpu.memory_space<vmem>>, vector<8x128xf32>,
    %c0_215 = arith.constant 0 : index
    %c0_216 = arith.constant 0 : index
    %351 = vector.load %arg12[%c0_215, %c0_216] : memref<8x128xf32, #tpu.memory_space<vmem>>, vector<8x128xf32>
    tpu.vector_store %arg12[%c0_215, %c0_216], %349 {strides = array<i32>} : memref<8x128xf32, #tpu.memory_space<vmem>>, vector<8x128xf32>,
    %352 = arith.truncf %349 : vector<8x128xf32> to vector<8x128xbf16>
    %c6_217 = arith.constant 6 : index
    %c0_218 = arith.constant 0 : index
    %c0_219 = arith.constant 0 : index
    %353 = vector.load %arg6[%c6_217, %c0_218, %c0_219] : memref<8x8x128xbf16, #tpu.memory_space<vmem>>, vector<1x8x128xbf16>
    %354 = vector.shape_cast %353 : vector<1x8x128xbf16> to vector<8x128xbf16>
    %355 = vector.shape_cast %352 : vector<8x128xbf16> to vector<1x8x128xbf16>
    tpu.vector_store %arg6[%c6_217, %c0_218, %c0_219], %355 {strides = array<i32>} : memref<8x8x128xbf16, #tpu.memory_space<vmem>>, vector<1x8x128xbf16>,
    %c0_220 = arith.constant 0 : index
    %c0_221 = arith.constant 0 : index
    %356 = vector.load %arg12[%c0_220, %c0_221] : memref<8x128xf32, #tpu.memory_space<vmem>>, vector<8x128xf32>
    %c7_222 = arith.constant 7 : index
    %c0_223 = arith.constant 0 : index
    %c0_224 = arith.constant 0 : index
    %357 = vector.load %arg11[%c7_222, %c0_223, %c0_224] : memref<8x8x512xf32, #tpu.memory_space<vmem>>, vector<1x8x512xf32>
    %358 = vector.shape_cast %357 : vector<1x8x512xf32> to vector<8x512xf32>
    %359 = arith.truncf %356 : vector<8x128xf32> to vector<8x128xbf16>
    %c0_225 = arith.constant 0 : index
    %c0_226 = arith.constant 0 : index
    %360 = vector.load %arg8[%c0_225, %c0_226] : memref<128x512xbf16, #tpu.memory_space<vmem>>, vector<128x512xbf16>
    %cst_227 = arith.constant dense<0.000000e+00> : vector<8x512xf32>
    %361 = tpu.matmul %359, %360, %cst_227 {dimension_numbers = #tpu.dot_dimension_numbers<[1], [0], [0], [1], [0, 0, 1, 1], [], []>} : vector<8x128xbf16>, vector<128x512xbf16>, vector<8x512xf32> -> vector<8x512xf32>
    %362 = arith.addf %358, %361 : vector<8x512xf32>
    %363 = vector.extract_strided_slice %362 {offsets = [0, 0], sizes = [8, 128], strides = [1, 1]} : vector<8x512xf32> to vector<8x128xf32>
    %364 = arith.negf %363 : vector<8x128xf32>
    %365 = math.exp %364 : vector<8x128xf32>
    %cst_228 = arith.constant 1.000000e+00 : f32
    %366 = vector.broadcast %cst_228 : f32 to vector<8x128xf32>
    %367 = arith.addf %366, %365 : vector<8x128xf32>
    %368 = arith.divf %366, %367 : vector<8x128xf32>
    %369 = vector.extract_strided_slice %362 {offsets = [0, 128], sizes = [8, 128], strides = [1, 1]} : vector<8x512xf32> to vector<8x128xf32>
    %370 = arith.negf %369 : vector<8x128xf32>
    %371 = math.exp %370 : vector<8x128xf32>
    %cst_229 = arith.constant 1.000000e+00 : f32
    %372 = vector.broadcast %cst_229 : f32 to vector<8x128xf32>
    %373 = arith.addf %372, %371 : vector<8x128xf32>
    %374 = arith.divf %372, %373 : vector<8x128xf32>
    %375 = vector.extract_strided_slice %362 {offsets = [0, 256], sizes = [8, 128], strides = [1, 1]} : vector<8x512xf32> to vector<8x128xf32>
    %376 = math.tanh %375 : vector<8x128xf32>
    %377 = vector.extract_strided_slice %362 {offsets = [0, 384], sizes = [8, 128], strides = [1, 1]} : vector<8x512xf32> to vector<8x128xf32>
    %378 = arith.negf %377 : vector<8x128xf32>
    %379 = math.exp %378 : vector<8x128xf32>
    %cst_230 = arith.constant 1.000000e+00 : f32
    %380 = vector.broadcast %cst_230 : f32 to vector<8x128xf32>
    %381 = arith.addf %380, %379 : vector<8x128xf32>
    %382 = arith.divf %380, %381 : vector<8x128xf32>
    %c0_231 = arith.constant 0 : index
    %c0_232 = arith.constant 0 : index
    %383 = vector.load %arg13[%c0_231, %c0_232] : memref<8x128xf32, #tpu.memory_space<vmem>>, vector<8x128xf32>
    %384 = arith.mulf %374, %383 : vector<8x128xf32>
    %385 = arith.mulf %368, %376 : vector<8x128xf32>
    %386 = arith.addf %384, %385 : vector<8x128xf32>
    %387 = math.tanh %386 : vector<8x128xf32>
    %388 = arith.mulf %382, %387 : vector<8x128xf32>
    %c0_233 = arith.constant 0 : index
    %c0_234 = arith.constant 0 : index
    %389 = vector.load %arg13[%c0_233, %c0_234] : memref<8x128xf32, #tpu.memory_space<vmem>>, vector<8x128xf32>
    tpu.vector_store %arg13[%c0_233, %c0_234], %386 {strides = array<i32>} : memref<8x128xf32, #tpu.memory_space<vmem>>, vector<8x128xf32>,
    %c0_235 = arith.constant 0 : index
    %c0_236 = arith.constant 0 : index
    %390 = vector.load %arg12[%c0_235, %c0_236] : memref<8x128xf32, #tpu.memory_space<vmem>>, vector<8x128xf32>
    tpu.vector_store %arg12[%c0_235, %c0_236], %388 {strides = array<i32>} : memref<8x128xf32, #tpu.memory_space<vmem>>, vector<8x128xf32>,
    %391 = arith.truncf %388 : vector<8x128xf32> to vector<8x128xbf16>
    %c7_237 = arith.constant 7 : index
    %c0_238 = arith.constant 0 : index
    %c0_239 = arith.constant 0 : index
    %392 = vector.load %arg6[%c7_237, %c0_238, %c0_239] : memref<8x8x128xbf16, #tpu.memory_space<vmem>>, vector<1x8x128xbf16>
    %393 = vector.shape_cast %392 : vector<1x8x128xbf16> to vector<8x128xbf16>
    %394 = vector.shape_cast %391 : vector<8x128xbf16> to vector<1x8x128xbf16>
    tpu.vector_store %arg6[%c7_237, %c0_238, %c0_239], %394 {strides = array<i32>} : memref<8x8x128xbf16, #tpu.memory_space<vmem>>, vector<1x8x128xbf16>,
    return
  }
  func.func @transform_0(%arg0: i32, %arg1: i32) -> (i32, i32, i32) {
    %c0_i32 = arith.constant 0 : i32
    %c0_i32_0 = arith.constant 0 : i32
    return %arg1, %arg0, %c0_i32 : i32, i32, i32
  }
  func.func @transform_4(%arg0: i32, %arg1: i32) -> (i32, i32, i32) {
    %c0_i32 = arith.constant 0 : i32
    %c0_i32_0 = arith.constant 0 : i32
    return %arg1, %arg0, %c0_i32 : i32, i32, i32
  }
}

module attributes {stable_mosaic.version = 11 : i64} {
  func.func @_lstm_layer_kernel(%arg0: i32, %arg1: i32, %arg2: memref<8x8x128xbf16, #tpu.memory_space<vmem>>, %arg3: memref<128x512xbf16, #tpu.memory_space<any>>, %arg4: memref<128x512xbf16, #tpu.memory_space<any>>, %arg5: memref<1x512xf32, #tpu.memory_space<any>>, %arg6: memref<8x8x128xf32, #tpu.memory_space<vmem>>, %arg7: memref<128x512xbf16, #tpu.memory_space<vmem>>, %arg8: memref<128x512xbf16, #tpu.memory_space<vmem>>, %arg9: memref<1x512xf32, #tpu.memory_space<vmem>>, %arg10: memref<3x!tpu.dma_semaphore, #tpu.memory_space<semaphore_mem>>, %arg11: memref<8x8x512xf32, #tpu.memory_space<vmem>>, %arg12: memref<8x128xf32, #tpu.memory_space<vmem>>, %arg13: memref<8x128xf32, #tpu.memory_space<vmem>>) attributes {dimension_semantics = [#tpu.dimension_semantics<parallel>, #tpu.dimension_semantics<arbitrary>], iteration_bounds = array<i64: 1, 2>, scalar_prefetch = 0 : i64, scratch_operands = 7 : i64, tpu.core_type = #tpu.core_type<tc>, window_params = [{transform_indices = @transform_0, window_bounds = array<i64: 8, 8, 128>}, {}, {}, {}, {transform_indices = @transform_4, window_bounds = array<i64: 8, 8, 128>}]} {
    %c0_i32 = arith.constant 0 : i32
    %0 = arith.cmpi eq, %arg1, %c0_i32 : i32
    %1 = arith.extui %0 : i1 to i32
    %c0_i32_0 = arith.constant 0 : i32
    %2 = arith.cmpi ne, %1, %c0_i32_0 : i32
    scf.if %2 {
      %c0_i32_240 = arith.constant 0 : i32
      %387 = tpu.memref_slice %arg10[%c0_i32_240] : memref<3x!tpu.dma_semaphore, #tpu.memory_space<semaphore_mem>> -> memref<1x!tpu.dma_semaphore, #tpu.memory_space<semaphore_mem>>
      %388 = tpu.memref_squeeze %387 : memref<1x!tpu.dma_semaphore, #tpu.memory_space<semaphore_mem>> -> memref<!tpu.dma_semaphore, #tpu.memory_space<semaphore_mem>>
      tpu.enqueue_dma source(%arg3 : memref<128x512xbf16, #tpu.memory_space<any>>) target(%arg7 : memref<128x512xbf16, #tpu.memory_space<vmem>>) target_semaphore(%388 : memref<!tpu.dma_semaphore, #tpu.memory_space<semaphore_mem>>)
      %c1_i32 = arith.constant 1 : i32
      %389 = tpu.memref_slice %arg10[%c1_i32] : memref<3x!tpu.dma_semaphore, #tpu.memory_space<semaphore_mem>> -> memref<1x!tpu.dma_semaphore, #tpu.memory_space<semaphore_mem>>
      %390 = tpu.memref_squeeze %389 : memref<1x!tpu.dma_semaphore, #tpu.memory_space<semaphore_mem>> -> memref<!tpu.dma_semaphore, #tpu.memory_space<semaphore_mem>>
      tpu.enqueue_dma source(%arg4 : memref<128x512xbf16, #tpu.memory_space<any>>) target(%arg8 : memref<128x512xbf16, #tpu.memory_space<vmem>>) target_semaphore(%390 : memref<!tpu.dma_semaphore, #tpu.memory_space<semaphore_mem>>)
      %c2_i32 = arith.constant 2 : i32
      %391 = tpu.memref_slice %arg10[%c2_i32] : memref<3x!tpu.dma_semaphore, #tpu.memory_space<semaphore_mem>> -> memref<1x!tpu.dma_semaphore, #tpu.memory_space<semaphore_mem>>
      %392 = tpu.memref_squeeze %391 : memref<1x!tpu.dma_semaphore, #tpu.memory_space<semaphore_mem>> -> memref<!tpu.dma_semaphore, #tpu.memory_space<semaphore_mem>>
      tpu.enqueue_dma source(%arg5 : memref<1x512xf32, #tpu.memory_space<any>>) target(%arg9 : memref<1x512xf32, #tpu.memory_space<vmem>>) target_semaphore(%392 : memref<!tpu.dma_semaphore, #tpu.memory_space<semaphore_mem>>)
      %cst_241 = arith.constant 0.000000e+00 : f32
      %393 = vector.broadcast %cst_241 : f32 to vector<8x128xf32>
      %c0_242 = arith.constant 0 : index
      %c0_243 = arith.constant 0 : index
      %394 = vector.load %arg12[%c0_242, %c0_243] : memref<8x128xf32, #tpu.memory_space<vmem>>, vector<8x128xf32>
      tpu.vector_store %arg12[%c0_242, %c0_243], %393 {strides = array<i32>} : memref<8x128xf32, #tpu.memory_space<vmem>>, vector<8x128xf32>,
      %cst_244 = arith.constant 0.000000e+00 : f32
      %395 = vector.broadcast %cst_244 : f32 to vector<8x128xf32>
      %c0_245 = arith.constant 0 : index
      %c0_246 = arith.constant 0 : index
      %396 = vector.load %arg13[%c0_245, %c0_246] : memref<8x128xf32, #tpu.memory_space<vmem>>, vector<8x128xf32>
      tpu.vector_store %arg13[%c0_245, %c0_246], %395 {strides = array<i32>} : memref<8x128xf32, #tpu.memory_space<vmem>>, vector<8x128xf32>,
      %c0_i32_247 = arith.constant 0 : i32
      %397 = tpu.memref_slice %arg10[%c0_i32_247] : memref<3x!tpu.dma_semaphore, #tpu.memory_space<semaphore_mem>> -> memref<1x!tpu.dma_semaphore, #tpu.memory_space<semaphore_mem>>
      %398 = tpu.memref_squeeze %397 : memref<1x!tpu.dma_semaphore, #tpu.memory_space<semaphore_mem>> -> memref<!tpu.dma_semaphore, #tpu.memory_space<semaphore_mem>>
      tpu.wait_dma2 semaphore(%398 : memref<!tpu.dma_semaphore, #tpu.memory_space<semaphore_mem>>) src(%arg3 : memref<128x512xbf16, #tpu.memory_space<any>>) dst(%arg7 : memref<128x512xbf16, #tpu.memory_space<vmem>>)
      %c1_i32_248 = arith.constant 1 : i32
      %399 = tpu.memref_slice %arg10[%c1_i32_248] : memref<3x!tpu.dma_semaphore, #tpu.memory_space<semaphore_mem>> -> memref<1x!tpu.dma_semaphore, #tpu.memory_space<semaphore_mem>>
      %400 = tpu.memref_squeeze %399 : memref<1x!tpu.dma_semaphore, #tpu.memory_space<semaphore_mem>> -> memref<!tpu.dma_semaphore, #tpu.memory_space<semaphore_mem>>
      tpu.wait_dma2 semaphore(%400 : memref<!tpu.dma_semaphore, #tpu.memory_space<semaphore_mem>>) src(%arg4 : memref<128x512xbf16, #tpu.memory_space<any>>) dst(%arg8 : memref<128x512xbf16, #tpu.memory_space<vmem>>)
      %c2_i32_249 = arith.constant 2 : i32
      %401 = tpu.memref_slice %arg10[%c2_i32_249] : memref<3x!tpu.dma_semaphore, #tpu.memory_space<semaphore_mem>> -> memref<1x!tpu.dma_semaphore, #tpu.memory_space<semaphore_mem>>
      %402 = tpu.memref_squeeze %401 : memref<1x!tpu.dma_semaphore, #tpu.memory_space<semaphore_mem>> -> memref<!tpu.dma_semaphore, #tpu.memory_space<semaphore_mem>>
      tpu.wait_dma2 semaphore(%402 : memref<!tpu.dma_semaphore, #tpu.memory_space<semaphore_mem>>) src(%arg5 : memref<1x512xf32, #tpu.memory_space<any>>) dst(%arg9 : memref<1x512xf32, #tpu.memory_space<vmem>>)
    } else {
    }
    %c0 = arith.constant 0 : index
    %c0_1 = arith.constant 0 : index
    %c0_2 = arith.constant 0 : index
    %3 = vector.load %arg2[%c0, %c0_1, %c0_2] : memref<8x8x128xbf16, #tpu.memory_space<vmem>>, vector<1x8x128xbf16>
    %4 = vector.shape_cast %3 : vector<1x8x128xbf16> to vector<8x128xbf16>
    %c0_3 = arith.constant 0 : index
    %c0_4 = arith.constant 0 : index
    %5 = vector.load %arg7[%c0_3, %c0_4] : memref<128x512xbf16, #tpu.memory_space<vmem>>, vector<128x512xbf16>
    %cst = arith.constant dense<0.000000e+00> : vector<8x512xf32>
    %6 = tpu.matmul %4, %5, %cst {dimension_numbers = #tpu.dot_dimension_numbers<[1], [0], [0], [1], [0, 0, 1, 1], [], []>} : vector<8x128xbf16>, vector<128x512xbf16>, vector<8x512xf32> -> vector<8x512xf32>
    %c0_5 = arith.constant 0 : index
    %c0_6 = arith.constant 0 : index
    %7 = vector.load %arg9[%c0_5, %c0_6] : memref<1x512xf32, #tpu.memory_space<vmem>>, vector<1x512xf32>
    %8 = vector.broadcast %7 : vector<1x512xf32> to vector<8x512xf32>
    %9 = arith.addf %6, %8 : vector<8x512xf32>
    %c0_7 = arith.constant 0 : index
    %c0_8 = arith.constant 0 : index
    %c0_9 = arith.constant 0 : index
    %10 = vector.load %arg11[%c0_7, %c0_8, %c0_9] : memref<8x8x512xf32, #tpu.memory_space<vmem>>, vector<1x8x512xf32>
    %11 = vector.shape_cast %10 : vector<1x8x512xf32> to vector<8x512xf32>
    %12 = vector.shape_cast %9 : vector<8x512xf32> to vector<1x8x512xf32>
    tpu.vector_store %arg11[%c0_7, %c0_8, %c0_9], %12 {strides = array<i32>} : memref<8x8x512xf32, #tpu.memory_space<vmem>>, vector<1x8x512xf32>,
    %c1 = arith.constant 1 : index
    %c0_10 = arith.constant 0 : index
    %c0_11 = arith.constant 0 : index
    %13 = vector.load %arg2[%c1, %c0_10, %c0_11] : memref<8x8x128xbf16, #tpu.memory_space<vmem>>, vector<1x8x128xbf16>
    %14 = vector.shape_cast %13 : vector<1x8x128xbf16> to vector<8x128xbf16>
    %c0_12 = arith.constant 0 : index
    %c0_13 = arith.constant 0 : index
    %15 = vector.load %arg7[%c0_12, %c0_13] : memref<128x512xbf16, #tpu.memory_space<vmem>>, vector<128x512xbf16>
    %cst_14 = arith.constant dense<0.000000e+00> : vector<8x512xf32>
    %16 = tpu.matmul %14, %15, %cst_14 {dimension_numbers = #tpu.dot_dimension_numbers<[1], [0], [0], [1], [0, 0, 1, 1], [], []>} : vector<8x128xbf16>, vector<128x512xbf16>, vector<8x512xf32> -> vector<8x512xf32>
    %c0_15 = arith.constant 0 : index
    %c0_16 = arith.constant 0 : index
    %17 = vector.load %arg9[%c0_15, %c0_16] : memref<1x512xf32, #tpu.memory_space<vmem>>, vector<1x512xf32>
    %18 = vector.broadcast %17 : vector<1x512xf32> to vector<8x512xf32>
    %19 = arith.addf %16, %18 : vector<8x512xf32>
    %c1_17 = arith.constant 1 : index
    %c0_18 = arith.constant 0 : index
    %c0_19 = arith.constant 0 : index
    %20 = vector.load %arg11[%c1_17, %c0_18, %c0_19] : memref<8x8x512xf32, #tpu.memory_space<vmem>>, vector<1x8x512xf32>
    %21 = vector.shape_cast %20 : vector<1x8x512xf32> to vector<8x512xf32>
    %22 = vector.shape_cast %19 : vector<8x512xf32> to vector<1x8x512xf32>
    tpu.vector_store %arg11[%c1_17, %c0_18, %c0_19], %22 {strides = array<i32>} : memref<8x8x512xf32, #tpu.memory_space<vmem>>, vector<1x8x512xf32>,
    %c2 = arith.constant 2 : index
    %c0_20 = arith.constant 0 : index
    %c0_21 = arith.constant 0 : index
    %23 = vector.load %arg2[%c2, %c0_20, %c0_21] : memref<8x8x128xbf16, #tpu.memory_space<vmem>>, vector<1x8x128xbf16>
    %24 = vector.shape_cast %23 : vector<1x8x128xbf16> to vector<8x128xbf16>
    %c0_22 = arith.constant 0 : index
    %c0_23 = arith.constant 0 : index
    %25 = vector.load %arg7[%c0_22, %c0_23] : memref<128x512xbf16, #tpu.memory_space<vmem>>, vector<128x512xbf16>
    %cst_24 = arith.constant dense<0.000000e+00> : vector<8x512xf32>
    %26 = tpu.matmul %24, %25, %cst_24 {dimension_numbers = #tpu.dot_dimension_numbers<[1], [0], [0], [1], [0, 0, 1, 1], [], []>} : vector<8x128xbf16>, vector<128x512xbf16>, vector<8x512xf32> -> vector<8x512xf32>
    %c0_25 = arith.constant 0 : index
    %c0_26 = arith.constant 0 : index
    %27 = vector.load %arg9[%c0_25, %c0_26] : memref<1x512xf32, #tpu.memory_space<vmem>>, vector<1x512xf32>
    %28 = vector.broadcast %27 : vector<1x512xf32> to vector<8x512xf32>
    %29 = arith.addf %26, %28 : vector<8x512xf32>
    %c2_27 = arith.constant 2 : index
    %c0_28 = arith.constant 0 : index
    %c0_29 = arith.constant 0 : index
    %30 = vector.load %arg11[%c2_27, %c0_28, %c0_29] : memref<8x8x512xf32, #tpu.memory_space<vmem>>, vector<1x8x512xf32>
    %31 = vector.shape_cast %30 : vector<1x8x512xf32> to vector<8x512xf32>
    %32 = vector.shape_cast %29 : vector<8x512xf32> to vector<1x8x512xf32>
    tpu.vector_store %arg11[%c2_27, %c0_28, %c0_29], %32 {strides = array<i32>} : memref<8x8x512xf32, #tpu.memory_space<vmem>>, vector<1x8x512xf32>,
    %c3 = arith.constant 3 : index
    %c0_30 = arith.constant 0 : index
    %c0_31 = arith.constant 0 : index
    %33 = vector.load %arg2[%c3, %c0_30, %c0_31] : memref<8x8x128xbf16, #tpu.memory_space<vmem>>, vector<1x8x128xbf16>
    %34 = vector.shape_cast %33 : vector<1x8x128xbf16> to vector<8x128xbf16>
    %c0_32 = arith.constant 0 : index
    %c0_33 = arith.constant 0 : index
    %35 = vector.load %arg7[%c0_32, %c0_33] : memref<128x512xbf16, #tpu.memory_space<vmem>>, vector<128x512xbf16>
    %cst_34 = arith.constant dense<0.000000e+00> : vector<8x512xf32>
    %36 = tpu.matmul %34, %35, %cst_34 {dimension_numbers = #tpu.dot_dimension_numbers<[1], [0], [0], [1], [0, 0, 1, 1], [], []>} : vector<8x128xbf16>, vector<128x512xbf16>, vector<8x512xf32> -> vector<8x512xf32>
    %c0_35 = arith.constant 0 : index
    %c0_36 = arith.constant 0 : index
    %37 = vector.load %arg9[%c0_35, %c0_36] : memref<1x512xf32, #tpu.memory_space<vmem>>, vector<1x512xf32>
    %38 = vector.broadcast %37 : vector<1x512xf32> to vector<8x512xf32>
    %39 = arith.addf %36, %38 : vector<8x512xf32>
    %c3_37 = arith.constant 3 : index
    %c0_38 = arith.constant 0 : index
    %c0_39 = arith.constant 0 : index
    %40 = vector.load %arg11[%c3_37, %c0_38, %c0_39] : memref<8x8x512xf32, #tpu.memory_space<vmem>>, vector<1x8x512xf32>
    %41 = vector.shape_cast %40 : vector<1x8x512xf32> to vector<8x512xf32>
    %42 = vector.shape_cast %39 : vector<8x512xf32> to vector<1x8x512xf32>
    tpu.vector_store %arg11[%c3_37, %c0_38, %c0_39], %42 {strides = array<i32>} : memref<8x8x512xf32, #tpu.memory_space<vmem>>, vector<1x8x512xf32>,
    %c4 = arith.constant 4 : index
    %c0_40 = arith.constant 0 : index
    %c0_41 = arith.constant 0 : index
    %43 = vector.load %arg2[%c4, %c0_40, %c0_41] : memref<8x8x128xbf16, #tpu.memory_space<vmem>>, vector<1x8x128xbf16>
    %44 = vector.shape_cast %43 : vector<1x8x128xbf16> to vector<8x128xbf16>
    %c0_42 = arith.constant 0 : index
    %c0_43 = arith.constant 0 : index
    %45 = vector.load %arg7[%c0_42, %c0_43] : memref<128x512xbf16, #tpu.memory_space<vmem>>, vector<128x512xbf16>
    %cst_44 = arith.constant dense<0.000000e+00> : vector<8x512xf32>
    %46 = tpu.matmul %44, %45, %cst_44 {dimension_numbers = #tpu.dot_dimension_numbers<[1], [0], [0], [1], [0, 0, 1, 1], [], []>} : vector<8x128xbf16>, vector<128x512xbf16>, vector<8x512xf32> -> vector<8x512xf32>
    %c0_45 = arith.constant 0 : index
    %c0_46 = arith.constant 0 : index
    %47 = vector.load %arg9[%c0_45, %c0_46] : memref<1x512xf32, #tpu.memory_space<vmem>>, vector<1x512xf32>
    %48 = vector.broadcast %47 : vector<1x512xf32> to vector<8x512xf32>
    %49 = arith.addf %46, %48 : vector<8x512xf32>
    %c4_47 = arith.constant 4 : index
    %c0_48 = arith.constant 0 : index
    %c0_49 = arith.constant 0 : index
    %50 = vector.load %arg11[%c4_47, %c0_48, %c0_49] : memref<8x8x512xf32, #tpu.memory_space<vmem>>, vector<1x8x512xf32>
    %51 = vector.shape_cast %50 : vector<1x8x512xf32> to vector<8x512xf32>
    %52 = vector.shape_cast %49 : vector<8x512xf32> to vector<1x8x512xf32>
    tpu.vector_store %arg11[%c4_47, %c0_48, %c0_49], %52 {strides = array<i32>} : memref<8x8x512xf32, #tpu.memory_space<vmem>>, vector<1x8x512xf32>,
    %c5 = arith.constant 5 : index
    %c0_50 = arith.constant 0 : index
    %c0_51 = arith.constant 0 : index
    %53 = vector.load %arg2[%c5, %c0_50, %c0_51] : memref<8x8x128xbf16, #tpu.memory_space<vmem>>, vector<1x8x128xbf16>
    %54 = vector.shape_cast %53 : vector<1x8x128xbf16> to vector<8x128xbf16>
    %c0_52 = arith.constant 0 : index
    %c0_53 = arith.constant 0 : index
    %55 = vector.load %arg7[%c0_52, %c0_53] : memref<128x512xbf16, #tpu.memory_space<vmem>>, vector<128x512xbf16>
    %cst_54 = arith.constant dense<0.000000e+00> : vector<8x512xf32>
    %56 = tpu.matmul %54, %55, %cst_54 {dimension_numbers = #tpu.dot_dimension_numbers<[1], [0], [0], [1], [0, 0, 1, 1], [], []>} : vector<8x128xbf16>, vector<128x512xbf16>, vector<8x512xf32> -> vector<8x512xf32>
    %c0_55 = arith.constant 0 : index
    %c0_56 = arith.constant 0 : index
    %57 = vector.load %arg9[%c0_55, %c0_56] : memref<1x512xf32, #tpu.memory_space<vmem>>, vector<1x512xf32>
    %58 = vector.broadcast %57 : vector<1x512xf32> to vector<8x512xf32>
    %59 = arith.addf %56, %58 : vector<8x512xf32>
    %c5_57 = arith.constant 5 : index
    %c0_58 = arith.constant 0 : index
    %c0_59 = arith.constant 0 : index
    %60 = vector.load %arg11[%c5_57, %c0_58, %c0_59] : memref<8x8x512xf32, #tpu.memory_space<vmem>>, vector<1x8x512xf32>
    %61 = vector.shape_cast %60 : vector<1x8x512xf32> to vector<8x512xf32>
    %62 = vector.shape_cast %59 : vector<8x512xf32> to vector<1x8x512xf32>
    tpu.vector_store %arg11[%c5_57, %c0_58, %c0_59], %62 {strides = array<i32>} : memref<8x8x512xf32, #tpu.memory_space<vmem>>, vector<1x8x512xf32>,
    %c6 = arith.constant 6 : index
    %c0_60 = arith.constant 0 : index
    %c0_61 = arith.constant 0 : index
    %63 = vector.load %arg2[%c6, %c0_60, %c0_61] : memref<8x8x128xbf16, #tpu.memory_space<vmem>>, vector<1x8x128xbf16>
    %64 = vector.shape_cast %63 : vector<1x8x128xbf16> to vector<8x128xbf16>
    %c0_62 = arith.constant 0 : index
    %c0_63 = arith.constant 0 : index
    %65 = vector.load %arg7[%c0_62, %c0_63] : memref<128x512xbf16, #tpu.memory_space<vmem>>, vector<128x512xbf16>
    %cst_64 = arith.constant dense<0.000000e+00> : vector<8x512xf32>
    %66 = tpu.matmul %64, %65, %cst_64 {dimension_numbers = #tpu.dot_dimension_numbers<[1], [0], [0], [1], [0, 0, 1, 1], [], []>} : vector<8x128xbf16>, vector<128x512xbf16>, vector<8x512xf32> -> vector<8x512xf32>
    %c0_65 = arith.constant 0 : index
    %c0_66 = arith.constant 0 : index
    %67 = vector.load %arg9[%c0_65, %c0_66] : memref<1x512xf32, #tpu.memory_space<vmem>>, vector<1x512xf32>
    %68 = vector.broadcast %67 : vector<1x512xf32> to vector<8x512xf32>
    %69 = arith.addf %66, %68 : vector<8x512xf32>
    %c6_67 = arith.constant 6 : index
    %c0_68 = arith.constant 0 : index
    %c0_69 = arith.constant 0 : index
    %70 = vector.load %arg11[%c6_67, %c0_68, %c0_69] : memref<8x8x512xf32, #tpu.memory_space<vmem>>, vector<1x8x512xf32>
    %71 = vector.shape_cast %70 : vector<1x8x512xf32> to vector<8x512xf32>
    %72 = vector.shape_cast %69 : vector<8x512xf32> to vector<1x8x512xf32>
    tpu.vector_store %arg11[%c6_67, %c0_68, %c0_69], %72 {strides = array<i32>} : memref<8x8x512xf32, #tpu.memory_space<vmem>>, vector<1x8x512xf32>,
    %c7 = arith.constant 7 : index
    %c0_70 = arith.constant 0 : index
    %c0_71 = arith.constant 0 : index
    %73 = vector.load %arg2[%c7, %c0_70, %c0_71] : memref<8x8x128xbf16, #tpu.memory_space<vmem>>, vector<1x8x128xbf16>
    %74 = vector.shape_cast %73 : vector<1x8x128xbf16> to vector<8x128xbf16>
    %c0_72 = arith.constant 0 : index
    %c0_73 = arith.constant 0 : index
    %75 = vector.load %arg7[%c0_72, %c0_73] : memref<128x512xbf16, #tpu.memory_space<vmem>>, vector<128x512xbf16>
    %cst_74 = arith.constant dense<0.000000e+00> : vector<8x512xf32>
    %76 = tpu.matmul %74, %75, %cst_74 {dimension_numbers = #tpu.dot_dimension_numbers<[1], [0], [0], [1], [0, 0, 1, 1], [], []>} : vector<8x128xbf16>, vector<128x512xbf16>, vector<8x512xf32> -> vector<8x512xf32>
    %c0_75 = arith.constant 0 : index
    %c0_76 = arith.constant 0 : index
    %77 = vector.load %arg9[%c0_75, %c0_76] : memref<1x512xf32, #tpu.memory_space<vmem>>, vector<1x512xf32>
    %78 = vector.broadcast %77 : vector<1x512xf32> to vector<8x512xf32>
    %79 = arith.addf %76, %78 : vector<8x512xf32>
    %c7_77 = arith.constant 7 : index
    %c0_78 = arith.constant 0 : index
    %c0_79 = arith.constant 0 : index
    %80 = vector.load %arg11[%c7_77, %c0_78, %c0_79] : memref<8x8x512xf32, #tpu.memory_space<vmem>>, vector<1x8x512xf32>
    %81 = vector.shape_cast %80 : vector<1x8x512xf32> to vector<8x512xf32>
    %82 = vector.shape_cast %79 : vector<8x512xf32> to vector<1x8x512xf32>
    tpu.vector_store %arg11[%c7_77, %c0_78, %c0_79], %82 {strides = array<i32>} : memref<8x8x512xf32, #tpu.memory_space<vmem>>, vector<1x8x512xf32>,
    %c0_80 = arith.constant 0 : index
    %c0_81 = arith.constant 0 : index
    %83 = vector.load %arg12[%c0_80, %c0_81] : memref<8x128xf32, #tpu.memory_space<vmem>>, vector<8x128xf32>
    %c0_82 = arith.constant 0 : index
    %c0_83 = arith.constant 0 : index
    %c0_84 = arith.constant 0 : index
    %84 = vector.load %arg11[%c0_82, %c0_83, %c0_84] : memref<8x8x512xf32, #tpu.memory_space<vmem>>, vector<1x8x512xf32>
    %85 = vector.shape_cast %84 : vector<1x8x512xf32> to vector<8x512xf32>
    %86 = arith.truncf %83 : vector<8x128xf32> to vector<8x128xbf16>
    %c0_85 = arith.constant 0 : index
    %c0_86 = arith.constant 0 : index
    %87 = vector.load %arg8[%c0_85, %c0_86] : memref<128x512xbf16, #tpu.memory_space<vmem>>, vector<128x512xbf16>
    %cst_87 = arith.constant dense<0.000000e+00> : vector<8x512xf32>
    %88 = tpu.matmul %86, %87, %cst_87 {dimension_numbers = #tpu.dot_dimension_numbers<[1], [0], [0], [1], [0, 0, 1, 1], [], []>} : vector<8x128xbf16>, vector<128x512xbf16>, vector<8x512xf32> -> vector<8x512xf32>
    %89 = arith.addf %85, %88 : vector<8x512xf32>
    %90 = vector.extract_strided_slice %89 {offsets = [0, 0], sizes = [8, 128], strides = [1, 1]} : vector<8x512xf32> to vector<8x128xf32>
    %91 = arith.negf %90 : vector<8x128xf32>
    %92 = math.exp %91 : vector<8x128xf32>
    %cst_88 = arith.constant 1.000000e+00 : f32
    %93 = vector.broadcast %cst_88 : f32 to vector<8x128xf32>
    %94 = arith.addf %93, %92 : vector<8x128xf32>
    %95 = arith.divf %93, %94 : vector<8x128xf32>
    %96 = vector.extract_strided_slice %89 {offsets = [0, 128], sizes = [8, 128], strides = [1, 1]} : vector<8x512xf32> to vector<8x128xf32>
    %97 = arith.negf %96 : vector<8x128xf32>
    %98 = math.exp %97 : vector<8x128xf32>
    %cst_89 = arith.constant 1.000000e+00 : f32
    %99 = vector.broadcast %cst_89 : f32 to vector<8x128xf32>
    %100 = arith.addf %99, %98 : vector<8x128xf32>
    %101 = arith.divf %99, %100 : vector<8x128xf32>
    %102 = vector.extract_strided_slice %89 {offsets = [0, 256], sizes = [8, 128], strides = [1, 1]} : vector<8x512xf32> to vector<8x128xf32>
    %103 = math.tanh %102 : vector<8x128xf32>
    %104 = vector.extract_strided_slice %89 {offsets = [0, 384], sizes = [8, 128], strides = [1, 1]} : vector<8x512xf32> to vector<8x128xf32>
    %105 = arith.negf %104 : vector<8x128xf32>
    %106 = math.exp %105 : vector<8x128xf32>
    %cst_90 = arith.constant 1.000000e+00 : f32
    %107 = vector.broadcast %cst_90 : f32 to vector<8x128xf32>
    %108 = arith.addf %107, %106 : vector<8x128xf32>
    %109 = arith.divf %107, %108 : vector<8x128xf32>
    %c0_91 = arith.constant 0 : index
    %c0_92 = arith.constant 0 : index
    %110 = vector.load %arg13[%c0_91, %c0_92] : memref<8x128xf32, #tpu.memory_space<vmem>>, vector<8x128xf32>
    %111 = arith.mulf %101, %110 : vector<8x128xf32>
    %112 = arith.mulf %95, %103 : vector<8x128xf32>
    %113 = arith.addf %111, %112 : vector<8x128xf32>
    %114 = math.tanh %113 : vector<8x128xf32>
    %115 = arith.mulf %109, %114 : vector<8x128xf32>
    %c0_93 = arith.constant 0 : index
    %c0_94 = arith.constant 0 : index
    %116 = vector.load %arg13[%c0_93, %c0_94] : memref<8x128xf32, #tpu.memory_space<vmem>>, vector<8x128xf32>
    tpu.vector_store %arg13[%c0_93, %c0_94], %113 {strides = array<i32>} : memref<8x128xf32, #tpu.memory_space<vmem>>, vector<8x128xf32>,
    %c0_95 = arith.constant 0 : index
    %c0_96 = arith.constant 0 : index
    %117 = vector.load %arg12[%c0_95, %c0_96] : memref<8x128xf32, #tpu.memory_space<vmem>>, vector<8x128xf32>
    tpu.vector_store %arg12[%c0_95, %c0_96], %115 {strides = array<i32>} : memref<8x128xf32, #tpu.memory_space<vmem>>, vector<8x128xf32>,
    %c0_97 = arith.constant 0 : index
    %c0_98 = arith.constant 0 : index
    %c0_99 = arith.constant 0 : index
    %118 = vector.load %arg6[%c0_97, %c0_98, %c0_99] : memref<8x8x128xf32, #tpu.memory_space<vmem>>, vector<1x8x128xf32>
    %119 = vector.shape_cast %118 : vector<1x8x128xf32> to vector<8x128xf32>
    %120 = vector.shape_cast %115 : vector<8x128xf32> to vector<1x8x128xf32>
    tpu.vector_store %arg6[%c0_97, %c0_98, %c0_99], %120 {strides = array<i32>} : memref<8x8x128xf32, #tpu.memory_space<vmem>>, vector<1x8x128xf32>,
    %c0_100 = arith.constant 0 : index
    %c0_101 = arith.constant 0 : index
    %121 = vector.load %arg12[%c0_100, %c0_101] : memref<8x128xf32, #tpu.memory_space<vmem>>, vector<8x128xf32>
    %c1_102 = arith.constant 1 : index
    %c0_103 = arith.constant 0 : index
    %c0_104 = arith.constant 0 : index
    %122 = vector.load %arg11[%c1_102, %c0_103, %c0_104] : memref<8x8x512xf32, #tpu.memory_space<vmem>>, vector<1x8x512xf32>
    %123 = vector.shape_cast %122 : vector<1x8x512xf32> to vector<8x512xf32>
    %124 = arith.truncf %121 : vector<8x128xf32> to vector<8x128xbf16>
    %c0_105 = arith.constant 0 : index
    %c0_106 = arith.constant 0 : index
    %125 = vector.load %arg8[%c0_105, %c0_106] : memref<128x512xbf16, #tpu.memory_space<vmem>>, vector<128x512xbf16>
    %cst_107 = arith.constant dense<0.000000e+00> : vector<8x512xf32>
    %126 = tpu.matmul %124, %125, %cst_107 {dimension_numbers = #tpu.dot_dimension_numbers<[1], [0], [0], [1], [0, 0, 1, 1], [], []>} : vector<8x128xbf16>, vector<128x512xbf16>, vector<8x512xf32> -> vector<8x512xf32>
    %127 = arith.addf %123, %126 : vector<8x512xf32>
    %128 = vector.extract_strided_slice %127 {offsets = [0, 0], sizes = [8, 128], strides = [1, 1]} : vector<8x512xf32> to vector<8x128xf32>
    %129 = arith.negf %128 : vector<8x128xf32>
    %130 = math.exp %129 : vector<8x128xf32>
    %cst_108 = arith.constant 1.000000e+00 : f32
    %131 = vector.broadcast %cst_108 : f32 to vector<8x128xf32>
    %132 = arith.addf %131, %130 : vector<8x128xf32>
    %133 = arith.divf %131, %132 : vector<8x128xf32>
    %134 = vector.extract_strided_slice %127 {offsets = [0, 128], sizes = [8, 128], strides = [1, 1]} : vector<8x512xf32> to vector<8x128xf32>
    %135 = arith.negf %134 : vector<8x128xf32>
    %136 = math.exp %135 : vector<8x128xf32>
    %cst_109 = arith.constant 1.000000e+00 : f32
    %137 = vector.broadcast %cst_109 : f32 to vector<8x128xf32>
    %138 = arith.addf %137, %136 : vector<8x128xf32>
    %139 = arith.divf %137, %138 : vector<8x128xf32>
    %140 = vector.extract_strided_slice %127 {offsets = [0, 256], sizes = [8, 128], strides = [1, 1]} : vector<8x512xf32> to vector<8x128xf32>
    %141 = math.tanh %140 : vector<8x128xf32>
    %142 = vector.extract_strided_slice %127 {offsets = [0, 384], sizes = [8, 128], strides = [1, 1]} : vector<8x512xf32> to vector<8x128xf32>
    %143 = arith.negf %142 : vector<8x128xf32>
    %144 = math.exp %143 : vector<8x128xf32>
    %cst_110 = arith.constant 1.000000e+00 : f32
    %145 = vector.broadcast %cst_110 : f32 to vector<8x128xf32>
    %146 = arith.addf %145, %144 : vector<8x128xf32>
    %147 = arith.divf %145, %146 : vector<8x128xf32>
    %c0_111 = arith.constant 0 : index
    %c0_112 = arith.constant 0 : index
    %148 = vector.load %arg13[%c0_111, %c0_112] : memref<8x128xf32, #tpu.memory_space<vmem>>, vector<8x128xf32>
    %149 = arith.mulf %139, %148 : vector<8x128xf32>
    %150 = arith.mulf %133, %141 : vector<8x128xf32>
    %151 = arith.addf %149, %150 : vector<8x128xf32>
    %152 = math.tanh %151 : vector<8x128xf32>
    %153 = arith.mulf %147, %152 : vector<8x128xf32>
    %c0_113 = arith.constant 0 : index
    %c0_114 = arith.constant 0 : index
    %154 = vector.load %arg13[%c0_113, %c0_114] : memref<8x128xf32, #tpu.memory_space<vmem>>, vector<8x128xf32>
    tpu.vector_store %arg13[%c0_113, %c0_114], %151 {strides = array<i32>} : memref<8x128xf32, #tpu.memory_space<vmem>>, vector<8x128xf32>,
    %c0_115 = arith.constant 0 : index
    %c0_116 = arith.constant 0 : index
    %155 = vector.load %arg12[%c0_115, %c0_116] : memref<8x128xf32, #tpu.memory_space<vmem>>, vector<8x128xf32>
    tpu.vector_store %arg12[%c0_115, %c0_116], %153 {strides = array<i32>} : memref<8x128xf32, #tpu.memory_space<vmem>>, vector<8x128xf32>,
    %c1_117 = arith.constant 1 : index
    %c0_118 = arith.constant 0 : index
    %c0_119 = arith.constant 0 : index
    %156 = vector.load %arg6[%c1_117, %c0_118, %c0_119] : memref<8x8x128xf32, #tpu.memory_space<vmem>>, vector<1x8x128xf32>
    %157 = vector.shape_cast %156 : vector<1x8x128xf32> to vector<8x128xf32>
    %158 = vector.shape_cast %153 : vector<8x128xf32> to vector<1x8x128xf32>
    tpu.vector_store %arg6[%c1_117, %c0_118, %c0_119], %158 {strides = array<i32>} : memref<8x8x128xf32, #tpu.memory_space<vmem>>, vector<1x8x128xf32>,
    %c0_120 = arith.constant 0 : index
    %c0_121 = arith.constant 0 : index
    %159 = vector.load %arg12[%c0_120, %c0_121] : memref<8x128xf32, #tpu.memory_space<vmem>>, vector<8x128xf32>
    %c2_122 = arith.constant 2 : index
    %c0_123 = arith.constant 0 : index
    %c0_124 = arith.constant 0 : index
    %160 = vector.load %arg11[%c2_122, %c0_123, %c0_124] : memref<8x8x512xf32, #tpu.memory_space<vmem>>, vector<1x8x512xf32>
    %161 = vector.shape_cast %160 : vector<1x8x512xf32> to vector<8x512xf32>
    %162 = arith.truncf %159 : vector<8x128xf32> to vector<8x128xbf16>
    %c0_125 = arith.constant 0 : index
    %c0_126 = arith.constant 0 : index
    %163 = vector.load %arg8[%c0_125, %c0_126] : memref<128x512xbf16, #tpu.memory_space<vmem>>, vector<128x512xbf16>
    %cst_127 = arith.constant dense<0.000000e+00> : vector<8x512xf32>
    %164 = tpu.matmul %162, %163, %cst_127 {dimension_numbers = #tpu.dot_dimension_numbers<[1], [0], [0], [1], [0, 0, 1, 1], [], []>} : vector<8x128xbf16>, vector<128x512xbf16>, vector<8x512xf32> -> vector<8x512xf32>
    %165 = arith.addf %161, %164 : vector<8x512xf32>
    %166 = vector.extract_strided_slice %165 {offsets = [0, 0], sizes = [8, 128], strides = [1, 1]} : vector<8x512xf32> to vector<8x128xf32>
    %167 = arith.negf %166 : vector<8x128xf32>
    %168 = math.exp %167 : vector<8x128xf32>
    %cst_128 = arith.constant 1.000000e+00 : f32
    %169 = vector.broadcast %cst_128 : f32 to vector<8x128xf32>
    %170 = arith.addf %169, %168 : vector<8x128xf32>
    %171 = arith.divf %169, %170 : vector<8x128xf32>
    %172 = vector.extract_strided_slice %165 {offsets = [0, 128], sizes = [8, 128], strides = [1, 1]} : vector<8x512xf32> to vector<8x128xf32>
    %173 = arith.negf %172 : vector<8x128xf32>
    %174 = math.exp %173 : vector<8x128xf32>
    %cst_129 = arith.constant 1.000000e+00 : f32
    %175 = vector.broadcast %cst_129 : f32 to vector<8x128xf32>
    %176 = arith.addf %175, %174 : vector<8x128xf32>
    %177 = arith.divf %175, %176 : vector<8x128xf32>
    %178 = vector.extract_strided_slice %165 {offsets = [0, 256], sizes = [8, 128], strides = [1, 1]} : vector<8x512xf32> to vector<8x128xf32>
    %179 = math.tanh %178 : vector<8x128xf32>
    %180 = vector.extract_strided_slice %165 {offsets = [0, 384], sizes = [8, 128], strides = [1, 1]} : vector<8x512xf32> to vector<8x128xf32>
    %181 = arith.negf %180 : vector<8x128xf32>
    %182 = math.exp %181 : vector<8x128xf32>
    %cst_130 = arith.constant 1.000000e+00 : f32
    %183 = vector.broadcast %cst_130 : f32 to vector<8x128xf32>
    %184 = arith.addf %183, %182 : vector<8x128xf32>
    %185 = arith.divf %183, %184 : vector<8x128xf32>
    %c0_131 = arith.constant 0 : index
    %c0_132 = arith.constant 0 : index
    %186 = vector.load %arg13[%c0_131, %c0_132] : memref<8x128xf32, #tpu.memory_space<vmem>>, vector<8x128xf32>
    %187 = arith.mulf %177, %186 : vector<8x128xf32>
    %188 = arith.mulf %171, %179 : vector<8x128xf32>
    %189 = arith.addf %187, %188 : vector<8x128xf32>
    %190 = math.tanh %189 : vector<8x128xf32>
    %191 = arith.mulf %185, %190 : vector<8x128xf32>
    %c0_133 = arith.constant 0 : index
    %c0_134 = arith.constant 0 : index
    %192 = vector.load %arg13[%c0_133, %c0_134] : memref<8x128xf32, #tpu.memory_space<vmem>>, vector<8x128xf32>
    tpu.vector_store %arg13[%c0_133, %c0_134], %189 {strides = array<i32>} : memref<8x128xf32, #tpu.memory_space<vmem>>, vector<8x128xf32>,
    %c0_135 = arith.constant 0 : index
    %c0_136 = arith.constant 0 : index
    %193 = vector.load %arg12[%c0_135, %c0_136] : memref<8x128xf32, #tpu.memory_space<vmem>>, vector<8x128xf32>
    tpu.vector_store %arg12[%c0_135, %c0_136], %191 {strides = array<i32>} : memref<8x128xf32, #tpu.memory_space<vmem>>, vector<8x128xf32>,
    %c2_137 = arith.constant 2 : index
    %c0_138 = arith.constant 0 : index
    %c0_139 = arith.constant 0 : index
    %194 = vector.load %arg6[%c2_137, %c0_138, %c0_139] : memref<8x8x128xf32, #tpu.memory_space<vmem>>, vector<1x8x128xf32>
    %195 = vector.shape_cast %194 : vector<1x8x128xf32> to vector<8x128xf32>
    %196 = vector.shape_cast %191 : vector<8x128xf32> to vector<1x8x128xf32>
    tpu.vector_store %arg6[%c2_137, %c0_138, %c0_139], %196 {strides = array<i32>} : memref<8x8x128xf32, #tpu.memory_space<vmem>>, vector<1x8x128xf32>,
    %c0_140 = arith.constant 0 : index
    %c0_141 = arith.constant 0 : index
    %197 = vector.load %arg12[%c0_140, %c0_141] : memref<8x128xf32, #tpu.memory_space<vmem>>, vector<8x128xf32>
    %c3_142 = arith.constant 3 : index
    %c0_143 = arith.constant 0 : index
    %c0_144 = arith.constant 0 : index
    %198 = vector.load %arg11[%c3_142, %c0_143, %c0_144] : memref<8x8x512xf32, #tpu.memory_space<vmem>>, vector<1x8x512xf32>
    %199 = vector.shape_cast %198 : vector<1x8x512xf32> to vector<8x512xf32>
    %200 = arith.truncf %197 : vector<8x128xf32> to vector<8x128xbf16>
    %c0_145 = arith.constant 0 : index
    %c0_146 = arith.constant 0 : index
    %201 = vector.load %arg8[%c0_145, %c0_146] : memref<128x512xbf16, #tpu.memory_space<vmem>>, vector<128x512xbf16>
    %cst_147 = arith.constant dense<0.000000e+00> : vector<8x512xf32>
    %202 = tpu.matmul %200, %201, %cst_147 {dimension_numbers = #tpu.dot_dimension_numbers<[1], [0], [0], [1], [0, 0, 1, 1], [], []>} : vector<8x128xbf16>, vector<128x512xbf16>, vector<8x512xf32> -> vector<8x512xf32>
    %203 = arith.addf %199, %202 : vector<8x512xf32>
    %204 = vector.extract_strided_slice %203 {offsets = [0, 0], sizes = [8, 128], strides = [1, 1]} : vector<8x512xf32> to vector<8x128xf32>
    %205 = arith.negf %204 : vector<8x128xf32>
    %206 = math.exp %205 : vector<8x128xf32>
    %cst_148 = arith.constant 1.000000e+00 : f32
    %207 = vector.broadcast %cst_148 : f32 to vector<8x128xf32>
    %208 = arith.addf %207, %206 : vector<8x128xf32>
    %209 = arith.divf %207, %208 : vector<8x128xf32>
    %210 = vector.extract_strided_slice %203 {offsets = [0, 128], sizes = [8, 128], strides = [1, 1]} : vector<8x512xf32> to vector<8x128xf32>
    %211 = arith.negf %210 : vector<8x128xf32>
    %212 = math.exp %211 : vector<8x128xf32>
    %cst_149 = arith.constant 1.000000e+00 : f32
    %213 = vector.broadcast %cst_149 : f32 to vector<8x128xf32>
    %214 = arith.addf %213, %212 : vector<8x128xf32>
    %215 = arith.divf %213, %214 : vector<8x128xf32>
    %216 = vector.extract_strided_slice %203 {offsets = [0, 256], sizes = [8, 128], strides = [1, 1]} : vector<8x512xf32> to vector<8x128xf32>
    %217 = math.tanh %216 : vector<8x128xf32>
    %218 = vector.extract_strided_slice %203 {offsets = [0, 384], sizes = [8, 128], strides = [1, 1]} : vector<8x512xf32> to vector<8x128xf32>
    %219 = arith.negf %218 : vector<8x128xf32>
    %220 = math.exp %219 : vector<8x128xf32>
    %cst_150 = arith.constant 1.000000e+00 : f32
    %221 = vector.broadcast %cst_150 : f32 to vector<8x128xf32>
    %222 = arith.addf %221, %220 : vector<8x128xf32>
    %223 = arith.divf %221, %222 : vector<8x128xf32>
    %c0_151 = arith.constant 0 : index
    %c0_152 = arith.constant 0 : index
    %224 = vector.load %arg13[%c0_151, %c0_152] : memref<8x128xf32, #tpu.memory_space<vmem>>, vector<8x128xf32>
    %225 = arith.mulf %215, %224 : vector<8x128xf32>
    %226 = arith.mulf %209, %217 : vector<8x128xf32>
    %227 = arith.addf %225, %226 : vector<8x128xf32>
    %228 = math.tanh %227 : vector<8x128xf32>
    %229 = arith.mulf %223, %228 : vector<8x128xf32>
    %c0_153 = arith.constant 0 : index
    %c0_154 = arith.constant 0 : index
    %230 = vector.load %arg13[%c0_153, %c0_154] : memref<8x128xf32, #tpu.memory_space<vmem>>, vector<8x128xf32>
    tpu.vector_store %arg13[%c0_153, %c0_154], %227 {strides = array<i32>} : memref<8x128xf32, #tpu.memory_space<vmem>>, vector<8x128xf32>,
    %c0_155 = arith.constant 0 : index
    %c0_156 = arith.constant 0 : index
    %231 = vector.load %arg12[%c0_155, %c0_156] : memref<8x128xf32, #tpu.memory_space<vmem>>, vector<8x128xf32>
    tpu.vector_store %arg12[%c0_155, %c0_156], %229 {strides = array<i32>} : memref<8x128xf32, #tpu.memory_space<vmem>>, vector<8x128xf32>,
    %c3_157 = arith.constant 3 : index
    %c0_158 = arith.constant 0 : index
    %c0_159 = arith.constant 0 : index
    %232 = vector.load %arg6[%c3_157, %c0_158, %c0_159] : memref<8x8x128xf32, #tpu.memory_space<vmem>>, vector<1x8x128xf32>
    %233 = vector.shape_cast %232 : vector<1x8x128xf32> to vector<8x128xf32>
    %234 = vector.shape_cast %229 : vector<8x128xf32> to vector<1x8x128xf32>
    tpu.vector_store %arg6[%c3_157, %c0_158, %c0_159], %234 {strides = array<i32>} : memref<8x8x128xf32, #tpu.memory_space<vmem>>, vector<1x8x128xf32>,
    %c0_160 = arith.constant 0 : index
    %c0_161 = arith.constant 0 : index
    %235 = vector.load %arg12[%c0_160, %c0_161] : memref<8x128xf32, #tpu.memory_space<vmem>>, vector<8x128xf32>
    %c4_162 = arith.constant 4 : index
    %c0_163 = arith.constant 0 : index
    %c0_164 = arith.constant 0 : index
    %236 = vector.load %arg11[%c4_162, %c0_163, %c0_164] : memref<8x8x512xf32, #tpu.memory_space<vmem>>, vector<1x8x512xf32>
    %237 = vector.shape_cast %236 : vector<1x8x512xf32> to vector<8x512xf32>
    %238 = arith.truncf %235 : vector<8x128xf32> to vector<8x128xbf16>
    %c0_165 = arith.constant 0 : index
    %c0_166 = arith.constant 0 : index
    %239 = vector.load %arg8[%c0_165, %c0_166] : memref<128x512xbf16, #tpu.memory_space<vmem>>, vector<128x512xbf16>
    %cst_167 = arith.constant dense<0.000000e+00> : vector<8x512xf32>
    %240 = tpu.matmul %238, %239, %cst_167 {dimension_numbers = #tpu.dot_dimension_numbers<[1], [0], [0], [1], [0, 0, 1, 1], [], []>} : vector<8x128xbf16>, vector<128x512xbf16>, vector<8x512xf32> -> vector<8x512xf32>
    %241 = arith.addf %237, %240 : vector<8x512xf32>
    %242 = vector.extract_strided_slice %241 {offsets = [0, 0], sizes = [8, 128], strides = [1, 1]} : vector<8x512xf32> to vector<8x128xf32>
    %243 = arith.negf %242 : vector<8x128xf32>
    %244 = math.exp %243 : vector<8x128xf32>
    %cst_168 = arith.constant 1.000000e+00 : f32
    %245 = vector.broadcast %cst_168 : f32 to vector<8x128xf32>
    %246 = arith.addf %245, %244 : vector<8x128xf32>
    %247 = arith.divf %245, %246 : vector<8x128xf32>
    %248 = vector.extract_strided_slice %241 {offsets = [0, 128], sizes = [8, 128], strides = [1, 1]} : vector<8x512xf32> to vector<8x128xf32>
    %249 = arith.negf %248 : vector<8x128xf32>
    %250 = math.exp %249 : vector<8x128xf32>
    %cst_169 = arith.constant 1.000000e+00 : f32
    %251 = vector.broadcast %cst_169 : f32 to vector<8x128xf32>
    %252 = arith.addf %251, %250 : vector<8x128xf32>
    %253 = arith.divf %251, %252 : vector<8x128xf32>
    %254 = vector.extract_strided_slice %241 {offsets = [0, 256], sizes = [8, 128], strides = [1, 1]} : vector<8x512xf32> to vector<8x128xf32>
    %255 = math.tanh %254 : vector<8x128xf32>
    %256 = vector.extract_strided_slice %241 {offsets = [0, 384], sizes = [8, 128], strides = [1, 1]} : vector<8x512xf32> to vector<8x128xf32>
    %257 = arith.negf %256 : vector<8x128xf32>
    %258 = math.exp %257 : vector<8x128xf32>
    %cst_170 = arith.constant 1.000000e+00 : f32
    %259 = vector.broadcast %cst_170 : f32 to vector<8x128xf32>
    %260 = arith.addf %259, %258 : vector<8x128xf32>
    %261 = arith.divf %259, %260 : vector<8x128xf32>
    %c0_171 = arith.constant 0 : index
    %c0_172 = arith.constant 0 : index
    %262 = vector.load %arg13[%c0_171, %c0_172] : memref<8x128xf32, #tpu.memory_space<vmem>>, vector<8x128xf32>
    %263 = arith.mulf %253, %262 : vector<8x128xf32>
    %264 = arith.mulf %247, %255 : vector<8x128xf32>
    %265 = arith.addf %263, %264 : vector<8x128xf32>
    %266 = math.tanh %265 : vector<8x128xf32>
    %267 = arith.mulf %261, %266 : vector<8x128xf32>
    %c0_173 = arith.constant 0 : index
    %c0_174 = arith.constant 0 : index
    %268 = vector.load %arg13[%c0_173, %c0_174] : memref<8x128xf32, #tpu.memory_space<vmem>>, vector<8x128xf32>
    tpu.vector_store %arg13[%c0_173, %c0_174], %265 {strides = array<i32>} : memref<8x128xf32, #tpu.memory_space<vmem>>, vector<8x128xf32>,
    %c0_175 = arith.constant 0 : index
    %c0_176 = arith.constant 0 : index
    %269 = vector.load %arg12[%c0_175, %c0_176] : memref<8x128xf32, #tpu.memory_space<vmem>>, vector<8x128xf32>
    tpu.vector_store %arg12[%c0_175, %c0_176], %267 {strides = array<i32>} : memref<8x128xf32, #tpu.memory_space<vmem>>, vector<8x128xf32>,
    %c4_177 = arith.constant 4 : index
    %c0_178 = arith.constant 0 : index
    %c0_179 = arith.constant 0 : index
    %270 = vector.load %arg6[%c4_177, %c0_178, %c0_179] : memref<8x8x128xf32, #tpu.memory_space<vmem>>, vector<1x8x128xf32>
    %271 = vector.shape_cast %270 : vector<1x8x128xf32> to vector<8x128xf32>
    %272 = vector.shape_cast %267 : vector<8x128xf32> to vector<1x8x128xf32>
    tpu.vector_store %arg6[%c4_177, %c0_178, %c0_179], %272 {strides = array<i32>} : memref<8x8x128xf32, #tpu.memory_space<vmem>>, vector<1x8x128xf32>,
    %c0_180 = arith.constant 0 : index
    %c0_181 = arith.constant 0 : index
    %273 = vector.load %arg12[%c0_180, %c0_181] : memref<8x128xf32, #tpu.memory_space<vmem>>, vector<8x128xf32>
    %c5_182 = arith.constant 5 : index
    %c0_183 = arith.constant 0 : index
    %c0_184 = arith.constant 0 : index
    %274 = vector.load %arg11[%c5_182, %c0_183, %c0_184] : memref<8x8x512xf32, #tpu.memory_space<vmem>>, vector<1x8x512xf32>
    %275 = vector.shape_cast %274 : vector<1x8x512xf32> to vector<8x512xf32>
    %276 = arith.truncf %273 : vector<8x128xf32> to vector<8x128xbf16>
    %c0_185 = arith.constant 0 : index
    %c0_186 = arith.constant 0 : index
    %277 = vector.load %arg8[%c0_185, %c0_186] : memref<128x512xbf16, #tpu.memory_space<vmem>>, vector<128x512xbf16>
    %cst_187 = arith.constant dense<0.000000e+00> : vector<8x512xf32>
    %278 = tpu.matmul %276, %277, %cst_187 {dimension_numbers = #tpu.dot_dimension_numbers<[1], [0], [0], [1], [0, 0, 1, 1], [], []>} : vector<8x128xbf16>, vector<128x512xbf16>, vector<8x512xf32> -> vector<8x512xf32>
    %279 = arith.addf %275, %278 : vector<8x512xf32>
    %280 = vector.extract_strided_slice %279 {offsets = [0, 0], sizes = [8, 128], strides = [1, 1]} : vector<8x512xf32> to vector<8x128xf32>
    %281 = arith.negf %280 : vector<8x128xf32>
    %282 = math.exp %281 : vector<8x128xf32>
    %cst_188 = arith.constant 1.000000e+00 : f32
    %283 = vector.broadcast %cst_188 : f32 to vector<8x128xf32>
    %284 = arith.addf %283, %282 : vector<8x128xf32>
    %285 = arith.divf %283, %284 : vector<8x128xf32>
    %286 = vector.extract_strided_slice %279 {offsets = [0, 128], sizes = [8, 128], strides = [1, 1]} : vector<8x512xf32> to vector<8x128xf32>
    %287 = arith.negf %286 : vector<8x128xf32>
    %288 = math.exp %287 : vector<8x128xf32>
    %cst_189 = arith.constant 1.000000e+00 : f32
    %289 = vector.broadcast %cst_189 : f32 to vector<8x128xf32>
    %290 = arith.addf %289, %288 : vector<8x128xf32>
    %291 = arith.divf %289, %290 : vector<8x128xf32>
    %292 = vector.extract_strided_slice %279 {offsets = [0, 256], sizes = [8, 128], strides = [1, 1]} : vector<8x512xf32> to vector<8x128xf32>
    %293 = math.tanh %292 : vector<8x128xf32>
    %294 = vector.extract_strided_slice %279 {offsets = [0, 384], sizes = [8, 128], strides = [1, 1]} : vector<8x512xf32> to vector<8x128xf32>
    %295 = arith.negf %294 : vector<8x128xf32>
    %296 = math.exp %295 : vector<8x128xf32>
    %cst_190 = arith.constant 1.000000e+00 : f32
    %297 = vector.broadcast %cst_190 : f32 to vector<8x128xf32>
    %298 = arith.addf %297, %296 : vector<8x128xf32>
    %299 = arith.divf %297, %298 : vector<8x128xf32>
    %c0_191 = arith.constant 0 : index
    %c0_192 = arith.constant 0 : index
    %300 = vector.load %arg13[%c0_191, %c0_192] : memref<8x128xf32, #tpu.memory_space<vmem>>, vector<8x128xf32>
    %301 = arith.mulf %291, %300 : vector<8x128xf32>
    %302 = arith.mulf %285, %293 : vector<8x128xf32>
    %303 = arith.addf %301, %302 : vector<8x128xf32>
    %304 = math.tanh %303 : vector<8x128xf32>
    %305 = arith.mulf %299, %304 : vector<8x128xf32>
    %c0_193 = arith.constant 0 : index
    %c0_194 = arith.constant 0 : index
    %306 = vector.load %arg13[%c0_193, %c0_194] : memref<8x128xf32, #tpu.memory_space<vmem>>, vector<8x128xf32>
    tpu.vector_store %arg13[%c0_193, %c0_194], %303 {strides = array<i32>} : memref<8x128xf32, #tpu.memory_space<vmem>>, vector<8x128xf32>,
    %c0_195 = arith.constant 0 : index
    %c0_196 = arith.constant 0 : index
    %307 = vector.load %arg12[%c0_195, %c0_196] : memref<8x128xf32, #tpu.memory_space<vmem>>, vector<8x128xf32>
    tpu.vector_store %arg12[%c0_195, %c0_196], %305 {strides = array<i32>} : memref<8x128xf32, #tpu.memory_space<vmem>>, vector<8x128xf32>,
    %c5_197 = arith.constant 5 : index
    %c0_198 = arith.constant 0 : index
    %c0_199 = arith.constant 0 : index
    %308 = vector.load %arg6[%c5_197, %c0_198, %c0_199] : memref<8x8x128xf32, #tpu.memory_space<vmem>>, vector<1x8x128xf32>
    %309 = vector.shape_cast %308 : vector<1x8x128xf32> to vector<8x128xf32>
    %310 = vector.shape_cast %305 : vector<8x128xf32> to vector<1x8x128xf32>
    tpu.vector_store %arg6[%c5_197, %c0_198, %c0_199], %310 {strides = array<i32>} : memref<8x8x128xf32, #tpu.memory_space<vmem>>, vector<1x8x128xf32>,
    %c0_200 = arith.constant 0 : index
    %c0_201 = arith.constant 0 : index
    %311 = vector.load %arg12[%c0_200, %c0_201] : memref<8x128xf32, #tpu.memory_space<vmem>>, vector<8x128xf32>
    %c6_202 = arith.constant 6 : index
    %c0_203 = arith.constant 0 : index
    %c0_204 = arith.constant 0 : index
    %312 = vector.load %arg11[%c6_202, %c0_203, %c0_204] : memref<8x8x512xf32, #tpu.memory_space<vmem>>, vector<1x8x512xf32>
    %313 = vector.shape_cast %312 : vector<1x8x512xf32> to vector<8x512xf32>
    %314 = arith.truncf %311 : vector<8x128xf32> to vector<8x128xbf16>
    %c0_205 = arith.constant 0 : index
    %c0_206 = arith.constant 0 : index
    %315 = vector.load %arg8[%c0_205, %c0_206] : memref<128x512xbf16, #tpu.memory_space<vmem>>, vector<128x512xbf16>
    %cst_207 = arith.constant dense<0.000000e+00> : vector<8x512xf32>
    %316 = tpu.matmul %314, %315, %cst_207 {dimension_numbers = #tpu.dot_dimension_numbers<[1], [0], [0], [1], [0, 0, 1, 1], [], []>} : vector<8x128xbf16>, vector<128x512xbf16>, vector<8x512xf32> -> vector<8x512xf32>
    %317 = arith.addf %313, %316 : vector<8x512xf32>
    %318 = vector.extract_strided_slice %317 {offsets = [0, 0], sizes = [8, 128], strides = [1, 1]} : vector<8x512xf32> to vector<8x128xf32>
    %319 = arith.negf %318 : vector<8x128xf32>
    %320 = math.exp %319 : vector<8x128xf32>
    %cst_208 = arith.constant 1.000000e+00 : f32
    %321 = vector.broadcast %cst_208 : f32 to vector<8x128xf32>
    %322 = arith.addf %321, %320 : vector<8x128xf32>
    %323 = arith.divf %321, %322 : vector<8x128xf32>
    %324 = vector.extract_strided_slice %317 {offsets = [0, 128], sizes = [8, 128], strides = [1, 1]} : vector<8x512xf32> to vector<8x128xf32>
    %325 = arith.negf %324 : vector<8x128xf32>
    %326 = math.exp %325 : vector<8x128xf32>
    %cst_209 = arith.constant 1.000000e+00 : f32
    %327 = vector.broadcast %cst_209 : f32 to vector<8x128xf32>
    %328 = arith.addf %327, %326 : vector<8x128xf32>
    %329 = arith.divf %327, %328 : vector<8x128xf32>
    %330 = vector.extract_strided_slice %317 {offsets = [0, 256], sizes = [8, 128], strides = [1, 1]} : vector<8x512xf32> to vector<8x128xf32>
    %331 = math.tanh %330 : vector<8x128xf32>
    %332 = vector.extract_strided_slice %317 {offsets = [0, 384], sizes = [8, 128], strides = [1, 1]} : vector<8x512xf32> to vector<8x128xf32>
    %333 = arith.negf %332 : vector<8x128xf32>
    %334 = math.exp %333 : vector<8x128xf32>
    %cst_210 = arith.constant 1.000000e+00 : f32
    %335 = vector.broadcast %cst_210 : f32 to vector<8x128xf32>
    %336 = arith.addf %335, %334 : vector<8x128xf32>
    %337 = arith.divf %335, %336 : vector<8x128xf32>
    %c0_211 = arith.constant 0 : index
    %c0_212 = arith.constant 0 : index
    %338 = vector.load %arg13[%c0_211, %c0_212] : memref<8x128xf32, #tpu.memory_space<vmem>>, vector<8x128xf32>
    %339 = arith.mulf %329, %338 : vector<8x128xf32>
    %340 = arith.mulf %323, %331 : vector<8x128xf32>
    %341 = arith.addf %339, %340 : vector<8x128xf32>
    %342 = math.tanh %341 : vector<8x128xf32>
    %343 = arith.mulf %337, %342 : vector<8x128xf32>
    %c0_213 = arith.constant 0 : index
    %c0_214 = arith.constant 0 : index
    %344 = vector.load %arg13[%c0_213, %c0_214] : memref<8x128xf32, #tpu.memory_space<vmem>>, vector<8x128xf32>
    tpu.vector_store %arg13[%c0_213, %c0_214], %341 {strides = array<i32>} : memref<8x128xf32, #tpu.memory_space<vmem>>, vector<8x128xf32>,
    %c0_215 = arith.constant 0 : index
    %c0_216 = arith.constant 0 : index
    %345 = vector.load %arg12[%c0_215, %c0_216] : memref<8x128xf32, #tpu.memory_space<vmem>>, vector<8x128xf32>
    tpu.vector_store %arg12[%c0_215, %c0_216], %343 {strides = array<i32>} : memref<8x128xf32, #tpu.memory_space<vmem>>, vector<8x128xf32>,
    %c6_217 = arith.constant 6 : index
    %c0_218 = arith.constant 0 : index
    %c0_219 = arith.constant 0 : index
    %346 = vector.load %arg6[%c6_217, %c0_218, %c0_219] : memref<8x8x128xf32, #tpu.memory_space<vmem>>, vector<1x8x128xf32>
    %347 = vector.shape_cast %346 : vector<1x8x128xf32> to vector<8x128xf32>
    %348 = vector.shape_cast %343 : vector<8x128xf32> to vector<1x8x128xf32>
    tpu.vector_store %arg6[%c6_217, %c0_218, %c0_219], %348 {strides = array<i32>} : memref<8x8x128xf32, #tpu.memory_space<vmem>>, vector<1x8x128xf32>,
    %c0_220 = arith.constant 0 : index
    %c0_221 = arith.constant 0 : index
    %349 = vector.load %arg12[%c0_220, %c0_221] : memref<8x128xf32, #tpu.memory_space<vmem>>, vector<8x128xf32>
    %c7_222 = arith.constant 7 : index
    %c0_223 = arith.constant 0 : index
    %c0_224 = arith.constant 0 : index
    %350 = vector.load %arg11[%c7_222, %c0_223, %c0_224] : memref<8x8x512xf32, #tpu.memory_space<vmem>>, vector<1x8x512xf32>
    %351 = vector.shape_cast %350 : vector<1x8x512xf32> to vector<8x512xf32>
    %352 = arith.truncf %349 : vector<8x128xf32> to vector<8x128xbf16>
    %c0_225 = arith.constant 0 : index
    %c0_226 = arith.constant 0 : index
    %353 = vector.load %arg8[%c0_225, %c0_226] : memref<128x512xbf16, #tpu.memory_space<vmem>>, vector<128x512xbf16>
    %cst_227 = arith.constant dense<0.000000e+00> : vector<8x512xf32>
    %354 = tpu.matmul %352, %353, %cst_227 {dimension_numbers = #tpu.dot_dimension_numbers<[1], [0], [0], [1], [0, 0, 1, 1], [], []>} : vector<8x128xbf16>, vector<128x512xbf16>, vector<8x512xf32> -> vector<8x512xf32>
    %355 = arith.addf %351, %354 : vector<8x512xf32>
    %356 = vector.extract_strided_slice %355 {offsets = [0, 0], sizes = [8, 128], strides = [1, 1]} : vector<8x512xf32> to vector<8x128xf32>
    %357 = arith.negf %356 : vector<8x128xf32>
    %358 = math.exp %357 : vector<8x128xf32>
    %cst_228 = arith.constant 1.000000e+00 : f32
    %359 = vector.broadcast %cst_228 : f32 to vector<8x128xf32>
    %360 = arith.addf %359, %358 : vector<8x128xf32>
    %361 = arith.divf %359, %360 : vector<8x128xf32>
    %362 = vector.extract_strided_slice %355 {offsets = [0, 128], sizes = [8, 128], strides = [1, 1]} : vector<8x512xf32> to vector<8x128xf32>
    %363 = arith.negf %362 : vector<8x128xf32>
    %364 = math.exp %363 : vector<8x128xf32>
    %cst_229 = arith.constant 1.000000e+00 : f32
    %365 = vector.broadcast %cst_229 : f32 to vector<8x128xf32>
    %366 = arith.addf %365, %364 : vector<8x128xf32>
    %367 = arith.divf %365, %366 : vector<8x128xf32>
    %368 = vector.extract_strided_slice %355 {offsets = [0, 256], sizes = [8, 128], strides = [1, 1]} : vector<8x512xf32> to vector<8x128xf32>
    %369 = math.tanh %368 : vector<8x128xf32>
    %370 = vector.extract_strided_slice %355 {offsets = [0, 384], sizes = [8, 128], strides = [1, 1]} : vector<8x512xf32> to vector<8x128xf32>
    %371 = arith.negf %370 : vector<8x128xf32>
    %372 = math.exp %371 : vector<8x128xf32>
    %cst_230 = arith.constant 1.000000e+00 : f32
    %373 = vector.broadcast %cst_230 : f32 to vector<8x128xf32>
    %374 = arith.addf %373, %372 : vector<8x128xf32>
    %375 = arith.divf %373, %374 : vector<8x128xf32>
    %c0_231 = arith.constant 0 : index
    %c0_232 = arith.constant 0 : index
    %376 = vector.load %arg13[%c0_231, %c0_232] : memref<8x128xf32, #tpu.memory_space<vmem>>, vector<8x128xf32>
    %377 = arith.mulf %367, %376 : vector<8x128xf32>
    %378 = arith.mulf %361, %369 : vector<8x128xf32>
    %379 = arith.addf %377, %378 : vector<8x128xf32>
    %380 = math.tanh %379 : vector<8x128xf32>
    %381 = arith.mulf %375, %380 : vector<8x128xf32>
    %c0_233 = arith.constant 0 : index
    %c0_234 = arith.constant 0 : index
    %382 = vector.load %arg13[%c0_233, %c0_234] : memref<8x128xf32, #tpu.memory_space<vmem>>, vector<8x128xf32>
    tpu.vector_store %arg13[%c0_233, %c0_234], %379 {strides = array<i32>} : memref<8x128xf32, #tpu.memory_space<vmem>>, vector<8x128xf32>,
    %c0_235 = arith.constant 0 : index
    %c0_236 = arith.constant 0 : index
    %383 = vector.load %arg12[%c0_235, %c0_236] : memref<8x128xf32, #tpu.memory_space<vmem>>, vector<8x128xf32>
    tpu.vector_store %arg12[%c0_235, %c0_236], %381 {strides = array<i32>} : memref<8x128xf32, #tpu.memory_space<vmem>>, vector<8x128xf32>,
    %c7_237 = arith.constant 7 : index
    %c0_238 = arith.constant 0 : index
    %c0_239 = arith.constant 0 : index
    %384 = vector.load %arg6[%c7_237, %c0_238, %c0_239] : memref<8x8x128xf32, #tpu.memory_space<vmem>>, vector<1x8x128xf32>
    %385 = vector.shape_cast %384 : vector<1x8x128xf32> to vector<8x128xf32>
    %386 = vector.shape_cast %381 : vector<8x128xf32> to vector<1x8x128xf32>
    tpu.vector_store %arg6[%c7_237, %c0_238, %c0_239], %386 {strides = array<i32>} : memref<8x8x128xf32, #tpu.memory_space<vmem>>, vector<1x8x128xf32>,
    return
  }
  func.func @transform_0(%arg0: i32, %arg1: i32) -> (i32, i32, i32) {
    %c0_i32 = arith.constant 0 : i32
    %c0_i32_0 = arith.constant 0 : i32
    return %arg1, %arg0, %c0_i32 : i32, i32, i32
  }
  func.func @transform_4(%arg0: i32, %arg1: i32) -> (i32, i32, i32) {
    %c0_i32 = arith.constant 0 : i32
    %c0_i32_0 = arith.constant 0 : i32
    return %arg1, %arg0, %c0_i32 : i32, i32, i32
  }
}

</mosaic_0001>

<bundles_post_ra>
// kernel: lstm_feature_extractor.2
= control target key start
LH: loop header
LB: loop body
LE: loop exit
PB: predicated region body
PF: predicated region fallthrough
CT: control target
= control target key end

     0   :  { %s3288_s15 = smov 0   ;;  %s3290_s16 = smov 0   ;;  %s4075_s0 = inlined_call_operand.vmem [shape: bf16[16,8,16], index: 0, kind: input, shape index: {}]   ;;  %s4076_s1 = inlined_call_operand.vmem [shape: bf16[16,512], index: 1, kind: input, shape index: {}]   ;;  %s4077_s2 = inlined_call_operand.vmem [shape: bf16[128,512], index: 2, kind: input, shape index: {}]   ;;  %s4078_s3 = inlined_call_operand.vmem [shape: f32[1,512], index: 3, kind: input, shape index: {}]   ;;  %s4079_s4 = inlined_call_operand.vmem [shape: bf16[16,8,128], index: 4, kind: output, shape index: {}]  }
   0x1   :  { %s3292_s17 = smov 0  }
   0x2 LB: > { %s23_s18 = sadd.s32 1, %s3255_s16  ;;  %p2916_p0 = scmp.ge.s32.totalorder %s3259_s17, 1  ;;  %s3259_s17 = sphi %s3292_s17, %s14_s17   ;;  %s3255_s16 = sphi %s3290_s16, %s4081_s16   ;;  %s3251_s15 = sphi %s3288_s15, %s4080_s15  }
   0x3   : > { %p24_p1 = scmp.ge.s32.totalorder %s23_s18, 2  ;;  %p110_p2 = scmp.lt.s32.totalorder %s3259_s17, 3 }
   0x5   : > { %s4083_s18 = smov (%p24_p1, %s23_s18), 0  ;;  %p111_p3 = pnand %p2916_p0, %p110_p2 }
   0x6   : > { %s2917_s19 = sshll.u32 (!%p111_p3), %s3251_s15, 3  ;;  %p2921_p5 = scmp.ne.s32.totalorder (!%p111_p3), %s3251_s15, 0 }
   0x7   : > { %114 = sbr.rel (%p111_p3) target bundleno = 2246 (0x8c6), region = 24  ;;  %p137_p4 = scmp.lt.s32.totalorder (!%p111_p3), %s2917_s19, 15 }
   0xe   : > { %s4085_s19 = smov (!%p137_p4, %s2917_s19), 15  ;;  %158 = sbr.rel (%p2921_p5) target bundleno = 68 (0x44), region = 28 }
   0xf   : > { %s2918_s20 = sshll.u32 %s4085_s19, 2  ;;  %v176_v0 = vld [vmem:[%s4076_s1] sm:$0xf] (!%p2921_p5)  ;;  %v178_v1 = vld [vmem:[%s4076_s1 + $0x10] sm:$0xf] (!%p2921_p5) }
  0x10   : > { %s3309_s23 = scalar_lea.vmem %s4075_s0, %s2918_s20  ;;  %s3314_s26 = scalar_lea.vmem %s4079_s4, %s2918_s20  ;;  %v180_v2 = vld [vmem:[%s4076_s1 + $0x4] sm:$0xf] (!%p2921_p5)  ;;  %177 = vst [vmem:[#allocation2] sm:$0xf] (!%p2921_p5), %v176_v0  ;;  %179 = vst [vmem:[#allocation2 + $0x4] sm:$0xf] (!%p2921_p5), %v178_v1 }
  0x11   : > { %181 = vst [vmem:[#allocation2 + $0x8] sm:$0xf] (!%p2921_p5), %v180_v2  ;;  %v182_v3 = vld [vmem:[%s4076_s1 + $0x14] sm:$0xf] (!%p2921_p5)  ;;  %v184_v4 = vld [vmem:[%s4076_s1 + $0x8] sm:$0xf] (!%p2921_p5) }
  0x12   : > { %v186_v5 = vld [vmem:[%s4076_s1 + $0x18] sm:$0xf] (!%p2921_p5)  ;;  %183 = vst [vmem:[#allocation2 + $0xc] sm:$0xf] (!%p2921_p5), %v182_v3  ;;  %185 = vst [vmem:[#allocation2 + $0x10] sm:$0xf] (!%p2921_p5), %v184_v4 }
  0x13   : > { %187 = vst [vmem:[#allocation2 + $0x14] sm:$0xf] (!%p2921_p5), %v186_v5  ;;  %v188_v6 = vld [vmem:[%s4076_s1 + $0xc] sm:$0xf] (!%p2921_p5)  ;;  %v190_v7 = vld [vmem:[%s4076_s1 + $0x1c] sm:$0xf] (!%p2921_p5) }
  0x14   : > { %189 = vst [vmem:[#allocation2 + $0x18] sm:$0xf] (!%p2921_p5), %v188_v6  ;;  %191 = vst [vmem:[#allocation2 + $0x1c] sm:$0xf] (!%p2921_p5), %v190_v7 }
  0x15   : > { %238 = vsyncadd [#allocation5], 512  ;;  %v257_v8 = vld [vmem:[%s4077_s2] sm:$0xf]  ;;  %v259_v9 = vld [vmem:[%s4077_s2 + $0x10] sm:$0xf] }
  0x16   : > { %258 = vst [vmem:[#allocation3] sm:$0xf] %v257_v8  ;;  %260 = vst [vmem:[#allocation3 + $0x4] sm:$0xf] %v259_v9  ;;  %v261_v10 = vld [vmem:[%s4077_s2 + $0x4] sm:$0xf] }
  0x17   : > { %v263_v11 = vld [vmem:[%s4077_s2 + $0x14] sm:$0xf]  ;;  %v265_v12 = vld [vmem:[%s4077_s2 + $0x8] sm:$0xf]  ;;  %262 = vst [vmem:[#allocation3 + $0x8] sm:$0xf] %v261_v10 }
  0x18   : > { %264 = vst [vmem:[#allocation3 + $0xc] sm:$0xf] %v263_v11  ;;  %266 = vst [vmem:[#allocation3 + $0x10] sm:$0xf] %v265_v12  ;;  %v267_v13 = vld [vmem:[%s4077_s2 + $0x18] sm:$0xf] }
  0x19   : > { %v269_v14 = vld [vmem:[%s4077_s2 + $0xc] sm:$0xf]  ;;  %v271_v15 = vld [vmem:[%s4077_s2 + $0x1c] sm:$0xff]   ;;  %268 = vst [vmem:[#allocation3 + $0x14] sm:$0xf] %v267_v13 }
  0x1a   : > { %270 = vst [vmem:[#allocation3 + $0x18] sm:$0xf] %v269_v14  ;;  %272 = vst [vmem:[#allocation3 + $0x1c] sm:$0xff] %v271_v15   ;;  %v275_v16 = vld [vmem:[%s4077_s2 + $0x30] sm:$0xf]  ;;  %v287_v22 = vld [vmem:[%s4077_s2 + $0x3c] sm:$0xff]  }
  0x1b   : > { %v277_v17 = vld [vmem:[%s4077_s2 + $0x24] sm:$0xf]  ;;  %v279_v18 = vld [vmem:[%s4077_s2 + $0x34] sm:$0xf]  ;;  %276 = vst [vmem:[#allocation3 + $0x24] sm:$0xf] %v275_v16 }
  0x1c   : > { %278 = vst [vmem:[#allocation3 + $0x28] sm:$0xf] %v277_v17  ;;  %280 = vst [vmem:[#allocation3 + $0x2c] sm:$0xf] %v279_v18  ;;  %v281_v19 = vld [vmem:[%s4077_s2 + $0x28] sm:$0xf] }
  0x1d   : > { %v283_v20 = vld [vmem:[%s4077_s2 + $0x38] sm:$0xf]  ;;  %v285_v21 = vld [vmem:[%s4077_s2 + $0x2c] sm:$0xf]  ;;  %282 = vst [vmem:[#allocation3 + $0x30] sm:$0xf] %v281_v19 }
  0x1e   : > { %284 = vst [vmem:[#allocation3 + $0x34] sm:$0xf] %v283_v20  ;;  %286 = vst [vmem:[#allocation3 + $0x38] sm:$0xf] %v285_v21  ;;  %v291_v23 = vld [vmem:[%s4077_s2 + $0x50] sm:$0xf] }
  0x1f   : > { %v293_v24 = vld [vmem:[%s4077_s2 + $0x44] sm:$0xf]  ;;  %288 = vst [vmem:[#allocation3 + $0x3c] sm:$0xff] %v287_v22   ;;  %292 = vst [vmem:[#allocation3 + $0x44] sm:$0xf] %v291_v23  ;;  %v303_v29 = vld [vmem:[%s4077_s2 + $0x5c] sm:$0xff]  }
  0x20   : > { %294 = vst [vmem:[#allocation3 + $0x48] sm:$0xf] %v293_v24  ;;  %v295_v25 = vld [vmem:[%s4077_s2 + $0x54] sm:$0xf]  ;;  %v297_v26 = vld [vmem:[%s4077_s2 + $0x48] sm:$0xf] }
  0x21   : > { %v299_v27 = vld [vmem:[%s4077_s2 + $0x58] sm:$0xf]  ;;  %296 = vst [vmem:[#allocation3 + $0x4c] sm:$0xf] %v295_v25  ;;  %298 = vst [vmem:[#allocation3 + $0x50] sm:$0xf] %v297_v26 }
  0x22   : > { %300 = vst [vmem:[#allocation3 + $0x54] sm:$0xf] %v299_v27  ;;  %v301_v28 = vld [vmem:[%s4077_s2 + $0x4c] sm:$0xf]  ;;  %v307_v30 = vld [vmem:[%s4077_s2 + $0x70] sm:$0xf] }
  0x23   : > { %302 = vst [vmem:[#allocation3 + $0x58] sm:$0xf] %v301_v28  ;;  %304 = vst [vmem:[#allocation3 + $0x5c] sm:$0xff] %v303_v29   ;;  %v309_v31 = vld [vmem:[%s4077_s2 + $0x64] sm:$0xf]  ;;  %v319_v36 = vld [vmem:[%s4077_s2 + $0x7c] sm:$0xff]  }
  0x24   : > { %308 = vst [vmem:[#allocation3 + $0x64] sm:$0xf] %v307_v30  ;;  %v311_v32 = vld [vmem:[%s4077_s2 + $0x74] sm:$0xf]  ;;  %v313_v33 = vld [vmem:[%s4077_s2 + $0x68] sm:$0xf] }
  0x25   : > { %310 = vst [vmem:[#allocation3 + $0x68] sm:$0xf] %v309_v31  ;;  %312 = vst [vmem:[#allocation3 + $0x6c] sm:$0xf] %v311_v32  ;;  %v315_v34 = vld [vmem:[%s4077_s2 + $0x78] sm:$0xf] }
  0x26   : > { %314 = vst [vmem:[#allocation3 + $0x70] sm:$0xf] %v313_v33  ;;  %v317_v35 = vld [vmem:[%s4077_s2 + $0x6c] sm:$0xf]  ;;  %316 = vst [vmem:[#allocation3 + $0x74] sm:$0xf] %v315_v34 }
  0x27   : > { %318 = vst [vmem:[#allocation3 + $0x78] sm:$0xf] %v317_v35  ;;  %320 = vst [vmem:[#allocation3 + $0x7c] sm:$0xff] %v319_v36   ;;  %v323_v37 = vld [vmem:[%s4077_s2 + $0x90] sm:$0xf]  ;;  %v335_v43 = vld [vmem:[%s4077_s2 + $0x9c] sm:$0xff]  }
  0x28   : > { %v325_v38 = vld [vmem:[%s4077_s2 + $0x84] sm:$0xf]  ;;  %v327_v39 = vld [vmem:[%s4077_s2 + $0x94] sm:$0xf]  ;;  %324 = vst [vmem:[#allocation3 + $0x84] sm:$0xf] %v323_v37 }
  0x29   : > { %326 = vst [vmem:[#allocation3 + $0x88] sm:$0xf] %v325_v38  ;;  %328 = vst [vmem:[#allocation3 + $0x8c] sm:$0xf] %v327_v39  ;;  %v329_v40 = vld [vmem:[%s4077_s2 + $0x88] sm:$0xf] }
  0x2a   : > { %v331_v41 = vld [vmem:[%s4077_s2 + $0x98] sm:$0xf]  ;;  %v333_v42 = vld [vmem:[%s4077_s2 + $0x8c] sm:$0xf]  ;;  %330 = vst [vmem:[#allocation3 + $0x90] sm:$0xf] %v329_v40 }
  0x2b   : > { %332 = vst [vmem:[#allocation3 + $0x94] sm:$0xf] %v331_v41  ;;  %334 = vst [vmem:[#allocation3 + $0x98] sm:$0xf] %v333_v42  ;;  %v339_v44 = vld [vmem:[%s4077_s2 + $0xb0] sm:$0xf] }
  0x2c   : > { %v341_v45 = vld [vmem:[%s4077_s2 + $0xa4] sm:$0xf]  ;;  %336 = vst [vmem:[#allocation3 + $0x9c] sm:$0xff] %v335_v43   ;;  %340 = vst [vmem:[#allocation3 + $0xa4] sm:$0xf] %v339_v44  ;;  %v351_v50 = vld [vmem:[%s4077_s2 + $0xbc] sm:$0xff]  }
  0x2d   : > { %342 = vst [vmem:[#allocation3 + $0xa8] sm:$0xf] %v341_v45  ;;  %v343_v46 = vld [vmem:[%s4077_s2 + $0xb4] sm:$0xf]  ;;  %v345_v47 = vld [vmem:[%s4077_s2 + $0xa8] sm:$0xf] }
  0x2e   : > { %v347_v48 = vld [vmem:[%s4077_s2 + $0xb8] sm:$0xf]  ;;  %344 = vst [vmem:[#allocation3 + $0xac] sm:$0xf] %v343_v46  ;;  %346 = vst [vmem:[#allocation3 + $0xb0] sm:$0xf] %v345_v47 }
  0x2f   : > { %348 = vst [vmem:[#allocation3 + $0xb4] sm:$0xf] %v347_v48  ;;  %v349_v49 = vld [vmem:[%s4077_s2 + $0xac] sm:$0xf]  ;;  %v355_v51 = vld [vmem:[%s4077_s2 + $0xd0] sm:$0xf] }
  0x30   : > { %350 = vst [vmem:[#allocation3 + $0xb8] sm:$0xf] %v349_v49  ;;  %352 = vst [vmem:[#allocation3 + $0xbc] sm:$0xff] %v351_v50   ;;  %v357_v52 = vld [vmem:[%s4077_s2 + $0xc4] sm:$0xf]  ;;  %v367_v57 = vld [vmem:[%s4077_s2 + $0xdc] sm:$0xff]  }
  0x31   : > { %356 = vst [vmem:[#allocation3 + $0xc4] sm:$0xf] %v355_v51  ;;  %v359_v53 = vld [vmem:[%s4077_s2 + $0xd4] sm:$0xf]  ;;  %v361_v54 = vld [vmem:[%s4077_s2 + $0xc8] sm:$0xf] }
  0x32   : > { %358 = vst [vmem:[#allocation3 + $0xc8] sm:$0xf] %v357_v52  ;;  %360 = vst [vmem:[#allocation3 + $0xcc] sm:$0xf] %v359_v53  ;;  %v363_v55 = vld [vmem:[%s4077_s2 + $0xd8] sm:$0xf] }
  0x33   : > { %362 = vst [vmem:[#allocation3 + $0xd0] sm:$0xf] %v361_v54  ;;  %v365_v56 = vld [vmem:[%s4077_s2 + $0xcc] sm:$0xf]  ;;  %364 = vst [vmem:[#allocation3 + $0xd4] sm:$0xf] %v363_v55 }
  0x34   : > { %366 = vst [vmem:[#allocation3 + $0xd8] sm:$0xf] %v365_v56  ;;  %368 = vst [vmem:[#allocation3 + $0xdc] sm:$0xff] %v367_v57   ;;  %v371_v58 = vld [vmem:[%s4077_s2 + $0xf0] sm:$0xf] }
  0x35   : > { %v373_v59 = vld [vmem:[%s4077_s2 + $0xe4] sm:$0xf]  ;;  %v375_v60 = vld [vmem:[%s4077_s2 + $0xf4] sm:$0xf]  ;;  %372 = vst [vmem:[#allocation3 + $0xe4] sm:$0xf] %v371_v58 }
  0x36   : > { %374 = vst [vmem:[#allocation3 + $0xe8] sm:$0xf] %v373_v59  ;;  %376 = vst [vmem:[#allocation3 + $0xec] sm:$0xf] %v375_v60  ;;  %v377_v61 = vld [vmem:[%s4077_s2 + $0xe8] sm:$0xf] }
  0x37   : > { %v379_v62 = vld [vmem:[%s4077_s2 + $0xf8] sm:$0xf]  ;;  %v381_v63 = vld [vmem:[%s4077_s2 + $0xec] sm:$0xf]  ;;  %378 = vst [vmem:[#allocation3 + $0xf0] sm:$0xf] %v377_v61 }
  0x38   : > { %380 = vst [vmem:[#allocation3 + $0xf4] sm:$0xf] %v379_v62  ;;  %382 = vst [vmem:[#allocation3 + $0xf8] sm:$0xf] %v381_v63  ;;  %v383_v0 = vld [vmem:[%s4077_s2 + $0xfc] sm:$0xf] }
  0x39   : > { %384 = vst [vmem:[#allocation3 + $0xfc] sm:$0xf] %v383_v0 }
  0x3a   : > { %543 = vsyncadd [#allocation5 + $0x1], 4096  ;;  %v562_v1 = vld [vmem:[%s4078_s3] sm:$0xf] }
  0x3b   : > { %563 = vst [vmem:[#allocation4] sm:$0xf] %v562_v1 }
  0x3c   : > { %588 = vsyncadd [#allocation5 + $0x2], 64  ;;  %v3261_v2 = vmov 0.0  }
  0x3d   : > { %589 = vst [vmem:[#allocation7] sm:$0xff] %v3261_v2  ;;  %590 = vst [vmem:[#allocation8] sm:$0xff] %v3261_v2 }
  0x3e   : > { %3243 = dma.done.wait [#allocation5], 512 }
  0x3f   : > { %3244 = vsyncadd [#allocation5], 4294966784 }
  0x40   : > { %3245 = dma.done.wait [#allocation5 + $0x1], 4096 }
  0x41   : > { %3246 = vsyncadd [#allocation5 + $0x1], 4294963200 }
  0x42   : > { %3247 = dma.done.wait [#allocation5 + $0x2], 64 }
  0x43   : > { %3248 = vsyncadd [#allocation5 + $0x2], 4294967232 }
  0x44 PF: > { %v602_v7 = vld [vmem:[%s3309_s23] sm:$0xf]  ;;  %vm629_vm0 = vcmask 130048   ;;  %v3262_v8 = vmov 0   ;;  %v2924_v9 = vld [vmem:[%s3309_s23 + $0x4] sm:$0xf]  ;;  %v609_v50 = vlaneseq }
  0x45   : > { %665 = vmatprep.mubr.bf16.mxu0 %v3262_v8  ;;  %706 = vmatprep.mubr.bf16.mxu1 %v3262_v8  ;;  %v2927_v10 = vld [vmem:[%s3309_s23 + $0x8] sm:$0xf]  ;;  %v2930_v11 = vld [vmem:[%s3309_s23 + $0xc] sm:$0xf]  ;;  %v2933_v12 = vld [vmem:[%s3309_s23 + $0x10] sm:$0xf] }
  0x46   : > { %v3518_v5 = vld [vmem:[#allocation2] sm:$0xff]  ;;  %v2936_v13 = vld [vmem:[%s3309_s23 + $0x14] sm:$0xf]  ;;  %v2939_v14 = vld [vmem:[%s3309_s23 + $0x18] sm:$0xf]  ;;  %v610_v51 = vshrl.u32 %v609_v50, 7 }
  0x47   : > { %v3587_v15 = vld [vmem:[#allocation3 + $0x8] sm:$0xff]  ;;  %v3589_v16 = vld [vmem:[#allocation3 + $0x18] sm:$0xff]  ;;  %v3598_v18 = vld [vmem:[#allocation3] sm:$0xff] }
  0x48   : > { %v3514_v3 = vld [vmem:[#allocation2 + $0x8] sm:$0xff]  ;;  %v2942_v17 = vld [vmem:[%s3309_s23 + $0x1c] sm:$0xf]  ;;  %v3600_v19 = vld [vmem:[#allocation3 + $0x10] sm:$0xff]  ;;  %v3728_v52 = vsub.s32 0, %v610_v51  ;;  %v3730_v54 = vsub.s32 1, %v610_v51 }
  0x49   : > { %633 = vmatprep.subr.bf16.mxu0 %v3514_v3  ;;  %v3522_v6 = vld [vmem:[#allocation2 + $0x10] sm:$0xff]  ;;  %v3602_v20 = vld [vmem:[#allocation3 + $0x28] sm:$0xff]  ;;  %v3604_v21 = vld [vmem:[#allocation3 + $0x38] sm:$0xff]  ;;  %v3734_v59 = vsub.s32 3, %v610_v51 }
  0x4a   : > { %v3516_v4 = vld [vmem:[#allocation2 + $0x18] sm:$0xff]  ;;  %634 = vmatpush1.bf16.msra.mxu0 %v3518_v5  ;;  %v3612_v22 = vld [vmem:[#allocation3 + $0x20] sm:$0xff]  ;;  %v3614_v23 = vld [vmem:[#allocation3 + $0x30] sm:$0xff] }
  0x4b   : > { %674 = vmatprep.subr.bf16.mxu1 %v3516_v4  ;;  %750 = vmatprep.subr.bf16.mxu0 %v3514_v3  ;;  %v3616_v24 = vld [vmem:[#allocation3 + $0x48] sm:$0xff]  ;;  %v3618_v25 = vld [vmem:[#allocation3 + $0x58] sm:$0xff]  ;;  %v3626_v26 = vld [vmem:[#allocation3 + $0x40] sm:$0xff] }
  0x4c   : > { %675 = vmatpush1.bf16.msra.mxu1 %v3522_v6  ;;  %v3628_v27 = vld [vmem:[#allocation3 + $0x50] sm:$0xff]  ;;  %v3630_v28 = vld [vmem:[#allocation3 + $0x68] sm:$0xff]  ;;  %v3632_v29 = vld [vmem:[#allocation3 + $0x78] sm:$0xff] }
  0x4d   : > { %791 = vmatprep.subr.bf16.mxu1 %v3516_v4  ;;  %2922 = vmatmul.mubr.msk.bf16.vlgmr.msra.gmra.mrb[0].mxu0 %vm629_vm0, %v602_v7  ;;  %v3638_v30 = vld [vmem:[#allocation3 + $0x60] sm:$0xff]  ;;  %v3640_v31 = vld [vmem:[#allocation3 + $0x70] sm:$0xff]  ;;  %v3642_v32 = vld [vmem:[#allocation3 + $0x88] sm:$0xff] }
  0x4e   : > { %751 = vmatpush1.bf16.msra.mxu0 %v3518_v5  ;;  %782 = vmatprep.mubr.bf16.mxu0 %v3262_v8  ;;  %v3644_v33 = vld [vmem:[#allocation3 + $0x98] sm:$0xff]  ;;  %v3650_v34 = vld [vmem:[#allocation3 + $0x80] sm:$0xff]  ;;  %v3652_v35 = vld [vmem:[#allocation3 + $0x90] sm:$0xff] }
  0x4f   : > { %2923 = vmatmul.mubr.msk.bf16.vlgmr.msra.gmra.mrb[0].mxu1 %vm629_vm0, %v602_v7  ;;  %868 = vmatprep.subr.bf16.mxu0 %v3514_v3  ;;  %v3654_v36 = vld [vmem:[#allocation3 + $0xa8] sm:$0xff]  ;;  %v3656_v37 = vld [vmem:[#allocation3 + $0xb8] sm:$0xff]  ;;  %v3662_v38 = vld [vmem:[#allocation3 + $0xa0] sm:$0xff]  ;;  %v3737_v7 = vsub.s32 2, %v610_v51 }
  0x50   : > { %792 = vmatpush1.bf16.msra.mxu1 %v3522_v6  ;;  %823 = vmatprep.mubr.bf16.mxu1 %v3262_v8  ;;  %v3664_v39 = vld [vmem:[#allocation3 + $0xb0] sm:$0xff]  ;;  %v3666_v40 = vld [vmem:[#allocation3 + $0xc8] sm:$0xff]  ;;  %v3668_v41 = vld [vmem:[#allocation3 + $0xd8] sm:$0xff] }
  0x51   : > { %909 = vmatprep.subr.bf16.mxu1 %v3516_v4  ;;  %v3674_v42 = vld [vmem:[#allocation3 + $0xc0] sm:$0xff]  ;;  %v3676_v43 = vld [vmem:[#allocation3 + $0xd0] sm:$0xff]  ;;  %v3678_v44 = vld [vmem:[#allocation3 + $0xe8] sm:$0xff] }
  0x52   : > { %v3680_v45 = vld [vmem:[#allocation3 + $0xf8] sm:$0xff]  ;;  %v1545_v46 = vld [vmem:[#allocation7] sm:$0xff]  ;;  %v3688_v48 = vld [vmem:[#allocation3 + $0xf0] sm:$0xff] }
  0x53   : > { %v3686_v47 = vld [vmem:[#allocation3 + $0xe0] sm:$0xff]  ;;  %v1550_v49 = vpack.c.bf16 %v1545_v46, %v1545_v46 }
  0x54   : > { %v607_v53 = vld [vmem:[#allocation4] sm:$0xf] }
  0x55   : > { %2925 = vmatmul.mubr.msk.bf16.vlgmr.msra.gmra.mrb[4].mxu0 %vm629_vm0, %v2924_v9  ;;  %v612_v55 = vrot.slane %v607_v53, %v3728_v52  ;;  %v616_v56 = vrot.slane %v607_v53, %v3730_v54 }
  0x56   : > { %869 = vmatpush1.bf16.msra.mxu0 %v3518_v5  ;;  %900 = vmatprep.mubr.bf16.mxu0 %v3262_v8 }
  0x57   : > { %2926 = vmatmul.mubr.msk.bf16.vlgmr.msra.gmra.mrb[4].mxu1 %vm629_vm0, %v2924_v9  ;;  %986 = vmatprep.subr.bf16.mxu0 %v3514_v3 }
  0x58   : > { %910 = vmatpush1.bf16.msra.mxu1 %v3522_v6  ;;  %941 = vmatprep.mubr.bf16.mxu1 %v3262_v8 }
  0x59   : > { %1027 = vmatprep.subr.bf16.mxu1 %v3516_v4 }
  0x5d   : > { %2928 = vmatmul.mubr.msk.bf16.vlgmr.msra.gmra.mrb[8].mxu0 %vm629_vm0, %v2927_v10 }
  0x5e   : > { %987 = vmatpush1.bf16.msra.mxu0 %v3518_v5  ;;  %1018 = vmatprep.mubr.bf16.mxu0 %v3262_v8 }
  0x5f   : > { %2929 = vmatmul.mubr.msk.bf16.vlgmr.msra.gmra.mrb[8].mxu1 %vm629_vm0, %v2927_v10  ;;  %1104 = vmatprep.subr.bf16.mxu0 %v3514_v3  ;;  %v620_v10 = vrot.slane %v607_v53, %v3737_v7 }
  0x60   : > { %1028 = vmatpush1.bf16.msra.mxu1 %v3522_v6  ;;  %1059 = vmatprep.mubr.bf16.mxu1 %v3262_v8 }
  0x61   : > { %1145 = vmatprep.subr.bf16.mxu1 %v3516_v4 }
  0x65   : > { %2931 = vmatmul.mubr.msk.bf16.vlgmr.msra.gmra.mrb[12].mxu0 %vm629_vm0, %v2930_v11 }
  0x66   : > { %1105 = vmatpush1.bf16.msra.mxu0 %v3518_v5  ;;  %1136 = vmatprep.mubr.bf16.mxu0 %v3262_v8 }
  0x67   : > { %2932 = vmatmul.mubr.msk.bf16.vlgmr.msra.gmra.mrb[12].mxu1 %vm629_vm0, %v2930_v11  ;;  %1222 = vmatprep.subr.bf16.mxu0 %v3514_v3 }
  0x68   : > { %1146 = vmatpush1.bf16.msra.mxu1 %v3522_v6  ;;  %1177 = vmatprep.mubr.bf16.mxu1 %v3262_v8 }
  0x69   : > { %1263 = vmatprep.subr.bf16.mxu1 %v3516_v4 }
  0x6d   : > { %2934 = vmatmul.mubr.msk.bf16.vlgmr.msra.gmra.mrb[16].mxu0 %vm629_vm0, %v2933_v12 }
  0x6e   : > { %1223 = vmatpush1.bf16.msra.mxu0 %v3518_v5  ;;  %1254 = vmatprep.mubr.bf16.mxu0 %v3262_v8 }
  0x6f   : > { %2935 = vmatmul.mubr.msk.bf16.vlgmr.msra.gmra.mrb[16].mxu1 %vm629_vm0, %v2933_v12  ;;  %1340 = vmatprep.subr.bf16.mxu0 %v3514_v3 }
  0x70   : > { %1264 = vmatpush1.bf16.msra.mxu1 %v3522_v6  ;;  %1295 = vmatprep.mubr.bf16.mxu1 %v3262_v8 }
  0x71   : > { %1381 = vmatprep.subr.bf16.mxu1 %v3516_v4 }
  0x75   : > { %2937 = vmatmul.mubr.msk.bf16.vlgmr.msra.gmra.mrb[20].mxu0 %vm629_vm0, %v2936_v13 }
  0x76   : > { %1341 = vmatpush1.bf16.msra.mxu0 %v3518_v5  ;;  %1372 = vmatprep.mubr.bf16.mxu0 %v3262_v8 }
  0x77   : > { %2938 = vmatmul.mubr.msk.bf16.vlgmr.msra.gmra.mrb[20].mxu1 %vm629_vm0, %v2936_v13  ;;  %1458 = vmatprep.subr.bf16.mxu0 %v3514_v3 }
  0x78   : > { %1382 = vmatpush1.bf16.msra.mxu1 %v3522_v6  ;;  %1413 = vmatprep.mubr.bf16.mxu1 %v3262_v8 }
  0x79   : > { %1499 = vmatprep.subr.bf16.mxu1 %v3516_v4 }
  0x7d   : > { %2940 = vmatmul.mubr.msk.bf16.vlgmr.msra.gmra.mrb[24].mxu0 %vm629_vm0, %v2939_v14 }
  0x7e   : > { %1459 = vmatpush1.bf16.msra.mxu0 %v3518_v5  ;;  %1490 = vmatprep.mubr.bf16.mxu0 %v3262_v8 }
  0x7f   : > { %2941 = vmatmul.mubr.msk.bf16.vlgmr.msra.gmra.mrb[24].mxu1 %vm629_vm0, %v2939_v14  ;;  %1583 = vmatprep.subr.bf16.mxu0 %v3587_v15 }
  0x80   : > { %1500 = vmatpush1.bf16.msra.mxu1 %v3522_v6  ;;  %1531 = vmatprep.mubr.bf16.mxu1 %v3262_v8  ;;  %v624_v6 = vrot.slane %v607_v53, %v3734_v59 }
  0x81   : > { %1624 = vmatprep.subr.bf16.mxu1 %v3589_v16 }
  0x85   : > { %2943 = vmatmul.mubr.msk.bf16.vlgmr.msra.gmra.mrb[28].mxu0 %vm629_vm0, %v2942_v17 }
  0x86   : > { %1584 = vmatpush1.bf16.msra.mxu0 %v3598_v18  ;;  %1615 = vmatprep.mubr.bf16.mxu0 %v3262_v8 }
  0x87   : > { %2944 = vmatmul.mubr.msk.bf16.vlgmr.msra.gmra.mrb[28].mxu1 %vm629_vm0, %v2942_v17  ;;  %1585 = vmatprep.subr.bf16.mxu0 %v3602_v20 }
  0x88   : > { %1625 = vmatpush1.bf16.msra.mxu1 %v3600_v19  ;;  %1656 = vmatprep.mubr.bf16.mxu1 %v3262_v8 }
  0x89   : > { %1626 = vmatprep.subr.bf16.mxu1 %v3604_v21 }
  0x8a   : > { %1586 = vmatpush1.bf16.msra.mxu0 %v3612_v22 }
  0x8b   : > { %1587 = vmatprep.subr.bf16.mxu0 %v3616_v24 }
  0x8c   : > { %1627 = vmatpush1.bf16.msra.mxu1 %v3614_v23 }
  0x8d   : > { %1628 = vmatprep.subr.bf16.mxu1 %v3618_v25 }
  0x8e   : > { %1588 = vmatpush1.bf16.msra.mxu0 %v3626_v26 }
  0x8f   : > { %1589 = vmatprep.subr.bf16.mxu0 %v3630_v28 }
  0x90   : > { %1629 = vmatpush1.bf16.msra.mxu1 %v3628_v27 }
  0x91   : > { %1630 = vmatprep.subr.bf16.mxu1 %v3632_v29 }
  0x92   : > { %1590 = vmatpush1.bf16.msra.mxu0 %v3638_v30 }
  0x93   : > { %1591 = vmatprep.subr.bf16.mxu0 %v3642_v32 }
  0x94   : > { %1631 = vmatpush1.bf16.msra.mxu1 %v3640_v31 }
  0x95   : > { %1632 = vmatprep.subr.bf16.mxu1 %v3644_v33 }
  0x96   : > { %1592 = vmatpush1.bf16.msra.mxu0 %v3650_v34 }
  0x97   : > { %1593 = vmatprep.subr.bf16.mxu0 %v3654_v36 }
  0x98   : > { %1633 = vmatpush1.bf16.msra.mxu1 %v3652_v35 }
  0x99   : > { %1634 = vmatprep.subr.bf16.mxu1 %v3656_v37 }
  0x9a   : > { %1594 = vmatpush1.bf16.msra.mxu0 %v3662_v38 }
  0x9b   : > { %1595 = vmatprep.subr.bf16.mxu0 %v3666_v40 }
  0x9c   : > { %1635 = vmatpush1.bf16.msra.mxu1 %v3664_v39 }
  0x9d   : > { %1636 = vmatprep.subr.bf16.mxu1 %v3668_v41 }
  0x9e   : > { %1596 = vmatpush1.bf16.msra.mxu0 %v3674_v42 }
  0x9f   : > { %1597 = vmatprep.subr.bf16.mxu0 %v3678_v44 }
  0xa0   : > { %1637 = vmatpush1.bf16.msra.mxu1 %v3676_v43 }
  0xa1   : > { %1638 = vmatprep.subr.bf16.mxu1 %v3680_v45 }
  0xa2   : > { %1598 = vmatpush1.bf16.msra.mxu0 %v3686_v47 }
  0xa3   : > { %1736 = vmatprep.subr.bf16.mxu0 %v3587_v15 }
  0xa4   : > { %1639 = vmatpush1.bf16.msra.mxu1 %v3688_v48 }
  0xa5   : > { %1777 = vmatprep.subr.bf16.mxu1 %v3589_v16  ;;  %1616 = vmatmul.mubr.bf16.vlgmr.msra.gmra.mrb[0].mxu0 %v1550_v49 }
  0xa6   : > { %1737 = vmatpush1.bf16.msra.mxu0 %v3598_v18  ;;  %1768 = vmatprep.mubr.bf16.mxu0 %v3262_v8 }
  0xa7   : > { %1657 = vmatmul.mubr.bf16.vlgmr.msra.gmra.mrb[0].mxu1 %v1550_v49  ;;  %1738 = vmatprep.subr.bf16.mxu0 %v3602_v20 }
  0xa8   : > { %1778 = vmatpush1.bf16.msra.mxu1 %v3600_v19  ;;  %1809 = vmatprep.mubr.bf16.mxu1 %v3262_v8 }
  0xa9   : > { %1779 = vmatprep.subr.bf16.mxu1 %v3604_v21 }
  0xaa   : > { %1739 = vmatpush1.bf16.msra.mxu0 %v3612_v22 }
  0xab   : > { %1740 = vmatprep.subr.bf16.mxu0 %v3616_v24 }
  0xac   : > { %1780 = vmatpush1.bf16.msra.mxu1 %v3614_v23 }
  0xad   : > { %1781 = vmatprep.subr.bf16.mxu1 %v3618_v25 }
  0xae   : > { %1741 = vmatpush1.bf16.msra.mxu0 %v3626_v26 }
  0xaf   : > { %1742 = vmatprep.subr.bf16.mxu0 %v3630_v28 }
  0xb0   : > { %1782 = vmatpush1.bf16.msra.mxu1 %v3628_v27 }
  0xb1   : > { %1783 = vmatprep.subr.bf16.mxu1 %v3632_v29 }
  0xb2   : > { %1743 = vmatpush1.bf16.msra.mxu0 %v3638_v30 }
  0xb3   : > { %1744 = vmatprep.subr.bf16.mxu0 %v3642_v32 }
  0xb4   : > { %1784 = vmatpush1.bf16.msra.mxu1 %v3640_v31 }
  0xb5   : > { %1785 = vmatprep.subr.bf16.mxu1 %v3644_v33 }
  0xb6   : > { %1745 = vmatpush1.bf16.msra.mxu0 %v3650_v34 }
  0xb7   : > { %1746 = vmatprep.subr.bf16.mxu0 %v3654_v36 }
  0xb8   : > { %1786 = vmatpush1.bf16.msra.mxu1 %v3652_v35 }
  0xb9   : > { %1787 = vmatprep.subr.bf16.mxu1 %v3656_v37 }
  0xba   : > { %1747 = vmatpush1.bf16.msra.mxu0 %v3662_v38 }
  0xbb   : > { %1748 = vmatprep.subr.bf16.mxu0 %v3666_v40 }
  0xbc   : > { %1788 = vmatpush1.bf16.msra.mxu1 %v3664_v39 }
  0xbd   : > { %1789 = vmatprep.subr.bf16.mxu1 %v3668_v41 }
  0xbe   : > { %1749 = vmatpush1.bf16.msra.mxu0 %v3674_v42 }
  0xbf   : > { %1750 = vmatprep.subr.bf16.mxu0 %v3678_v44 }
  0xc0   : > { %1790 = vmatpush1.bf16.msra.mxu1 %v3676_v43 }
  0xc1   : > { %1791 = vmatprep.subr.bf16.mxu1 %v3680_v45 }
  0xc2   : > { %1751 = vmatpush1.bf16.msra.mxu0 %v3686_v47 }
  0xc3   : > { %1890 = vmatprep.subr.bf16.mxu0 %v3587_v15 }
  0xc4   : > { %1792 = vmatpush1.bf16.msra.mxu1 %v3688_v48 }
  0xc5   : > { %1931 = vmatprep.subr.bf16.mxu1 %v3589_v16 }
 0x178   : > { %v1617_v57 = vpop.f32.mrb[0].mxu0 }
 0x179   : > { %v2981_v60 = vadd.f32 %v1617_v57, %v612_v55  ;;  %v1619_v61 = vpop.f32.mrb[1].mxu0  ;;  %v1688_v55 = vld [vmem:[#allocation8] sm:$0xff] }
 0x17a   : > { %v1658_v58 = vpop.f32.mrb[0].mxu1  ;;  %v2982_v63 = vadd.f32 %v1619_v61, %v616_v56  ;;  %v1621_v0 = vpop.f32.mrb[2].mxu0 }
 0x17b   : > { %v1660_v62 = vpop.f32.mrb[1].mxu1  ;;  %v2945_v2 = vmul.f32 -1.442695, %v2981_v60  ;;  %v1622_v3 = vpop.f32.mrb[3].mxu0  ;;  %v2983_v12 = vadd.f32 %v1658_v58, %v620_v10 }
 0x17c   : > { %v1662_v1 = vpop.f32.mrb[2].mxu1  ;;  %v2946_v5 = vmul.f32 -1.442695, %v2982_v63  ;;  %v2984_v9 = vadd.f32 %v1660_v62, %v624_v6 }
 0x17d   : > { %v1663_v4 = vpop.f32.mrb[3].mxu1  ;;  %3103 = vpow2.f32 %v2945_v2  ;;  %v725_v1 = vld [vmem:[#allocation4] sm:$0xf] }
 0x17e   : > { %3105 = vpow2.f32 %v2946_v5  ;;  %v2947_v11 = vmul.f32 -1.442695, %v2984_v9  ;;  %v730_v2 = vrot.slane %v725_v1, %v3728_v52  ;;  %v734_v3 = vrot.slane %v725_v1, %v3730_v54 }
 0x180   : > { %3107 = vpow2.f32 %v2947_v11 }
 0x181   : > { %3109 = vtanh.f32 %v2983_v12 }
 0x187   : > { %v3104_v13 = vpop.eup %3103 }
 0x188   : > { %v3106_v14 = vpop.eup %3105  ;;  %v1672_v17 = vadd.f32 1.0, %v3104_v13 }
 0x189   : > { %v1678_v46 = vadd.f32 1.0, %v3106_v14 }
 0x18a   : > { %3111 = vrcp.f32 %v1672_v17  ;;  %v3108_v49 = vpop.eup %3107 }
 0x18b   : > { %3113 = vrcp.f32 %v1678_v46  ;;  %v3110_v50 = vpop.eup %3109  ;;  %v1685_v60 = vadd.f32 1.0, %v3108_v49 }
 0x18d   : > { %3115 = vrcp.f32 %v1685_v60 }
 0x194   : > { %v3112_v51 = vpop.eup %3111 }
 0x195   : > { %v3114_v56 = vpop.eup %3113  ;;  %v1690_v57 = vmul.f32 %v3112_v51, %v3110_v50  ;;  %v742_v50 = vrot.slane %v725_v1, %v3734_v59  ;;  %v738_v51 = vrot.slane %v725_v1, %v3737_v7 }
 0x196   : > { %v1689_v61 = vmul.f32 %v3114_v56, %v1688_v55 }
 0x197   : > { %v3116_v58 = vpop.eup %3115 }
 0x198   : > { %v3740_v53 = vadd.f32 %v1690_v57, %v1689_v61 }
 0x19a   : > { %3117 = vtanh.f32 %v3740_v53 }
 0x1a4   : > { %v3118_v62 = vpop.eup %3117 }
 0x1a5   : > { %v1693_v63 = vmul.f32 %v3118_v62, %v3116_v58 }
 0x1a7   : > { %v1696_v0 = vpack.c.bf16 %v1693_v63, %v1693_v63 }
 0x1a9   : > { %1697 = vst [vmem:[%s3314_s26] sm:$0xf] %v1696_v0  ;;  %1769 = vmatmul.mubr.bf16.vlgmr.msra.gmra.mrb[4].mxu0 %v1696_v0  ;;  %1810 = vmatmul.mubr.bf16.vlgmr.msra.gmra.mrb[4].mxu1 %v1696_v0 }
 0x1aa   : > { %1891 = vmatpush1.bf16.msra.mxu0 %v3598_v18  ;;  %1932 = vmatpush1.bf16.msra.mxu1 %v3600_v19 }
 0x1ab   : > { %1892 = vmatprep.subr.bf16.mxu0 %v3602_v20  ;;  %1933 = vmatprep.subr.bf16.mxu1 %v3604_v21 }
 0x1ac   : > { %1922 = vmatprep.mubr.bf16.mxu0 %v3262_v8  ;;  %1963 = vmatprep.mubr.bf16.mxu1 %v3262_v8 }
 0x1ae   : > { %1893 = vmatpush1.bf16.msra.mxu0 %v3612_v22  ;;  %1934 = vmatpush1.bf16.msra.mxu1 %v3614_v23 }
 0x1af   : > { %1894 = vmatprep.subr.bf16.mxu0 %v3616_v24  ;;  %1935 = vmatprep.subr.bf16.mxu1 %v3618_v25 }
 0x1b2   : > { %1895 = vmatpush1.bf16.msra.mxu0 %v3626_v26  ;;  %1936 = vmatpush1.bf16.msra.mxu1 %v3628_v27 }
 0x1b3   : > { %1896 = vmatprep.subr.bf16.mxu0 %v3630_v28  ;;  %1937 = vmatprep.subr.bf16.mxu1 %v3632_v29 }
 0x1b6   : > { %1897 = vmatpush1.bf16.msra.mxu0 %v3638_v30  ;;  %1938 = vmatpush1.bf16.msra.mxu1 %v3640_v31 }
 0x1b7   : > { %1898 = vmatprep.subr.bf16.mxu0 %v3642_v32  ;;  %1939 = vmatprep.subr.bf16.mxu1 %v3644_v33 }
 0x1ba   : > { %1899 = vmatpush1.bf16.msra.mxu0 %v3650_v34  ;;  %1940 = vmatpush1.bf16.msra.mxu1 %v3652_v35 }
 0x1bb   : > { %1900 = vmatprep.subr.bf16.mxu0 %v3654_v36  ;;  %1941 = vmatprep.subr.bf16.mxu1 %v3656_v37 }
 0x1be   : > { %1901 = vmatpush1.bf16.msra.mxu0 %v3662_v38  ;;  %1942 = vmatpush1.bf16.msra.mxu1 %v3664_v39 }
 0x1bf   : > { %1902 = vmatprep.subr.bf16.mxu0 %v3666_v40  ;;  %1943 = vmatprep.subr.bf16.mxu1 %v3668_v41 }
 0x1c2   : > { %1903 = vmatpush1.bf16.msra.mxu0 %v3674_v42  ;;  %1944 = vmatpush1.bf16.msra.mxu1 %v3676_v43 }
 0x1c3   : > { %1904 = vmatprep.subr.bf16.mxu0 %v3678_v44  ;;  %1945 = vmatprep.subr.bf16.mxu1 %v3680_v45 }
 0x1c6   : > { %1905 = vmatpush1.bf16.msra.mxu0 %v3686_v47  ;;  %1946 = vmatpush1.bf16.msra.mxu1 %v3688_v48 }
 0x1c7   : > { %2044 = vmatprep.subr.bf16.mxu0 %v3587_v15  ;;  %2085 = vmatprep.subr.bf16.mxu1 %v3589_v16 }
 0x27c   : > { %v1770_v4 = vpop.f32.mrb[4].mxu0  ;;  %v1811_v5 = vpop.f32.mrb[4].mxu1 }
 0x27d   : > { %v2985_v6 = vadd.f32 %v1770_v4, %v730_v2  ;;  %v1772_v9 = vpop.f32.mrb[5].mxu0  ;;  %v1813_v10 = vpop.f32.mrb[5].mxu1  ;;  %v2987_v57 = vadd.f32 %v1811_v5, %v738_v51 }
 0x27e   : > { %v2986_v11 = vadd.f32 %v1772_v9, %v734_v3  ;;  %v1774_v12 = vpop.f32.mrb[6].mxu0  ;;  %v1815_v13 = vpop.f32.mrb[6].mxu1  ;;  %v2988_v55 = vadd.f32 %v1813_v10, %v742_v50 }
 0x27f   : > { %v2948_v14 = vmul.f32 -1.442695, %v2985_v6  ;;  %v1775_v17 = vpop.f32.mrb[7].mxu0  ;;  %v1816_v46 = vpop.f32.mrb[7].mxu1 }
 0x280   : > { %v2949_v49 = vmul.f32 -1.442695, %v2986_v11  ;;  %v2950_v56 = vmul.f32 -1.442695, %v2988_v55 }
 0x281   : > { %3119 = vpow2.f32 %v2948_v14 }
 0x282   : > { %3121 = vpow2.f32 %v2949_v49 }
 0x283   : > { %3123 = vpow2.f32 %v2950_v56 }
 0x284   : > { %3125 = vtanh.f32 %v2987_v57 }
 0x28b   : > { %v3120_v60 = vpop.eup %3119 }
 0x28c   : > { %v3122_v61 = vpop.eup %3121  ;;  %v1825_v58 = vadd.f32 1.0, %v3120_v60 }
 0x28d   : > { %v1831_v62 = vadd.f32 1.0, %v3122_v61  ;;  %v3124_v63 = vpop.eup %3123 }
 0x28e   : > { %3127 = vrcp.f32 %v1825_v58  ;;  %v3126_v0 = vpop.eup %3125  ;;  %v1838_v6 = vadd.f32 1.0, %v3124_v63 }
 0x28f   : > { %3129 = vrcp.f32 %v1831_v62 }
 0x290   : > { %3131 = vrcp.f32 %v1838_v6 }
 0x298   : > { %v3128_v2 = vpop.eup %3127 }
 0x299   : > { %v3130_v3 = vpop.eup %3129  ;;  %v1843_v4 = vmul.f32 %v3128_v2, %v3126_v0 }
 0x29a   : > { %v1842_v9 = vmul.f32 %v3130_v3, %v3740_v53  ;;  %v3132_v5 = vpop.eup %3131  ;;  %v843_v53 = vld [vmem:[#allocation4] sm:$0xf] }
 0x29b   : > { %v848_v13 = vrot.slane %v843_v53, %v3728_v52  ;;  %v852_v14 = vrot.slane %v843_v53, %v3730_v54  ;;  %v856_v63 = vrot.slane %v843_v53, %v3737_v7 }
 0x29c   : > { %v3783_v1 = vadd.f32 %v1843_v4, %v1842_v9 }
 0x29e   : > { %3133 = vtanh.f32 %v3783_v1 }
 0x2a8   : > { %v3134_v10 = vpop.eup %3133 }
 0x2a9   : > { %v1846_v11 = vmul.f32 %v3134_v10, %v3132_v5 }
 0x2ab   : > { %v1849_v12 = vpack.c.bf16 %v1846_v11, %v1846_v11 }
 0x2ad   : > { %2951 = vst [vmem:[%s3314_s26 + $0x4] sm:$0xf] %v1849_v12  ;;  %1923 = vmatmul.mubr.bf16.vlgmr.msra.gmra.mrb[8].mxu0 %v1849_v12  ;;  %1964 = vmatmul.mubr.bf16.vlgmr.msra.gmra.mrb[8].mxu1 %v1849_v12 }
 0x2ae   : > { %2045 = vmatpush1.bf16.msra.mxu0 %v3598_v18  ;;  %2086 = vmatpush1.bf16.msra.mxu1 %v3600_v19 }
 0x2af   : > { %2046 = vmatprep.subr.bf16.mxu0 %v3602_v20  ;;  %2087 = vmatprep.subr.bf16.mxu1 %v3604_v21 }
 0x2b0   : > { %2076 = vmatprep.mubr.bf16.mxu0 %v3262_v8  ;;  %2117 = vmatprep.mubr.bf16.mxu1 %v3262_v8 }
 0x2b2   : > { %2047 = vmatpush1.bf16.msra.mxu0 %v3612_v22  ;;  %2088 = vmatpush1.bf16.msra.mxu1 %v3614_v23 }
 0x2b3   : > { %2048 = vmatprep.subr.bf16.mxu0 %v3616_v24  ;;  %2089 = vmatprep.subr.bf16.mxu1 %v3618_v25 }
 0x2b6   : > { %2049 = vmatpush1.bf16.msra.mxu0 %v3626_v26  ;;  %2090 = vmatpush1.bf16.msra.mxu1 %v3628_v27 }
 0x2b7   : > { %2050 = vmatprep.subr.bf16.mxu0 %v3630_v28  ;;  %2091 = vmatprep.subr.bf16.mxu1 %v3632_v29 }
 0x2ba   : > { %2051 = vmatpush1.bf16.msra.mxu0 %v3638_v30  ;;  %2092 = vmatpush1.bf16.msra.mxu1 %v3640_v31 }
 0x2bb   : > { %2052 = vmatprep.subr.bf16.mxu0 %v3642_v32  ;;  %2093 = vmatprep.subr.bf16.mxu1 %v3644_v33 }
 0x2be   : > { %2053 = vmatpush1.bf16.msra.mxu0 %v3650_v34  ;;  %2094 = vmatpush1.bf16.msra.mxu1 %v3652_v35 }
 0x2bf   : > { %2054 = vmatprep.subr.bf16.mxu0 %v3654_v36  ;;  %2095 = vmatprep.subr.bf16.mxu1 %v3656_v37 }
 0x2c2   : > { %2055 = vmatpush1.bf16.msra.mxu0 %v3662_v38  ;;  %2096 = vmatpush1.bf16.msra.mxu1 %v3664_v39 }
 0x2c3   : > { %2056 = vmatprep.subr.bf16.mxu0 %v3666_v40  ;;  %2097 = vmatprep.subr.bf16.mxu1 %v3668_v41 }
 0x2c6   : > { %2057 = vmatpush1.bf16.msra.mxu0 %v3674_v42  ;;  %2098 = vmatpush1.bf16.msra.mxu1 %v3676_v43 }
 0x2c7   : > { %2058 = vmatprep.subr.bf16.mxu0 %v3678_v44  ;;  %2099 = vmatprep.subr.bf16.mxu1 %v3680_v45 }
 0x2ca   : > { %2059 = vmatpush1.bf16.msra.mxu0 %v3686_v47  ;;  %2100 = vmatpush1.bf16.msra.mxu1 %v3688_v48 }
 0x2cb   : > { %2198 = vmatprep.subr.bf16.mxu0 %v3587_v15  ;;  %2239 = vmatprep.subr.bf16.mxu1 %v3589_v16  ;;  %v860_v15 = vrot.slane %v843_v53, %v3734_v59 }
 0x380   : > { %v1924_v17 = vpop.f32.mrb[8].mxu0  ;;  %v1965_v46 = vpop.f32.mrb[8].mxu1 }
 0x381   : > { %v2989_v49 = vadd.f32 %v1924_v17, %v848_v13  ;;  %v1926_v50 = vpop.f32.mrb[9].mxu0  ;;  %v1967_v55 = vpop.f32.mrb[9].mxu1  ;;  %v2991_v2 = vadd.f32 %v1965_v46, %v856_v63  ;;  %v3885_v63 = vld [vmem:[#allocation3 + $0x28] sm:$0xff] }
 0x382   : > { %v2990_v51 = vadd.f32 %v1926_v50, %v852_v14  ;;  %v1928_v56 = vpop.f32.mrb[10].mxu0  ;;  %v1969_v57 = vpop.f32.mrb[10].mxu1  ;;  %v2992_v16 = vadd.f32 %v1967_v55, %v860_v15  ;;  %v3879_v15 = vld [vmem:[#allocation3] sm:$0xff] }
 0x383   : > { %v2952_v60 = vmul.f32 -1.442695, %v2989_v49  ;;  %v1929_v61 = vpop.f32.mrb[11].mxu0  ;;  %v1970_v58 = vpop.f32.mrb[11].mxu1 }
 0x384   : > { %v2953_v62 = vmul.f32 -1.442695, %v2990_v51  ;;  %v2954_v0 = vmul.f32 -1.442695, %v2992_v16  ;;  %v3873_v58 = vld [vmem:[#allocation3 + $0x8] sm:$0xff]  ;;  %v3881_v16 = vld [vmem:[#allocation3 + $0x10] sm:$0xff] }
 0x385   : > { %3135 = vpow2.f32 %v2952_v60 }
 0x386   : > { %3137 = vpow2.f32 %v2953_v62  ;;  %v3875_v62 = vld [vmem:[#allocation3 + $0x18] sm:$0xff] }
 0x387   : > { %3139 = vpow2.f32 %v2954_v0  ;;  %v3887_v0 = vld [vmem:[#allocation3 + $0x38] sm:$0xff] }
 0x388   : > { %3141 = vtanh.f32 %v2991_v2  ;;  %v3891_v2 = vld [vmem:[#allocation3 + $0x20] sm:$0xff] }
 0x38f   : > { %v3136_v3 = vpop.eup %3135 }
 0x390   : > { %v3138_v4 = vpop.eup %3137  ;;  %v1979_v6 = vadd.f32 1.0, %v3136_v3  ;;  %v3893_v3 = vld [vmem:[#allocation3 + $0x30] sm:$0xff] }
 0x391   : > { %v1985_v9 = vadd.f32 1.0, %v3138_v4  ;;  %v3140_v5 = vpop.eup %3139  ;;  %v3897_v4 = vld [vmem:[#allocation3 + $0x48] sm:$0xff] }
 0x392   : > { %3143 = vrcp.f32 %v1979_v6  ;;  %v3142_v10 = vpop.eup %3141  ;;  %v1992_v14 = vadd.f32 1.0, %v3140_v5  ;;  %v3899_v6 = vld [vmem:[#allocation3 + $0x58] sm:$0xff]  ;;  %v3905_v5 = vld [vmem:[#allocation3 + $0x50] sm:$0xff] }
 0x393   : > { %3145 = vrcp.f32 %v1985_v9  ;;  %v3903_v9 = vld [vmem:[#allocation3 + $0x40] sm:$0xff] }
 0x394   : > { %3147 = vrcp.f32 %v1992_v14  ;;  %v3921_v14 = vld [vmem:[#allocation3 + $0x88] sm:$0xff] }
 0x39c   : > { %v3144_v11 = vpop.eup %3143 }
 0x39d   : > { %v3146_v12 = vpop.eup %3145  ;;  %v1997_v13 = vmul.f32 %v3144_v11, %v3142_v10  ;;  %v3909_v10 = vld [vmem:[#allocation3 + $0x68] sm:$0xff]  ;;  %v3911_v11 = vld [vmem:[#allocation3 + $0x78] sm:$0xff] }
 0x39e   : > { %v1996_v17 = vmul.f32 %v3146_v12, %v3783_v1  ;;  %v3148_v46 = vpop.eup %3147  ;;  %v3915_v12 = vld [vmem:[#allocation3 + $0x60] sm:$0xff] }
 0x3a0   : > { %v3826_v53 = vadd.f32 %v1997_v13, %v1996_v17  ;;  %v3917_v13 = vld [vmem:[#allocation3 + $0x70] sm:$0xff]  ;;  %v3923_v17 = vld [vmem:[#allocation3 + $0x98] sm:$0xff] }
 0x3a2   : > { %3149 = vtanh.f32 %v3826_v53 }
 0x3ac   : > { %v3150_v49 = vpop.eup %3149 }
 0x3ad   : > { %v2000_v50 = vmul.f32 %v3150_v49, %v3148_v46  ;;  %v3929_v46 = vld [vmem:[#allocation3 + $0x90] sm:$0xff]  ;;  %v3933_v49 = vld [vmem:[#allocation3 + $0xa8] sm:$0xff] }
 0x3af   : > { %v2003_v55 = vpack.c.bf16 %v2000_v50, %v2000_v50  ;;  %v3935_v50 = vld [vmem:[#allocation3 + $0xb8] sm:$0xff] }
 0x3b1   : > { %2955 = vst [vmem:[%s3314_s26 + $0x8] sm:$0xf] %v2003_v55  ;;  %2077 = vmatmul.mubr.bf16.vlgmr.msra.gmra.mrb[12].mxu0 %v2003_v55  ;;  %2118 = vmatmul.mubr.bf16.vlgmr.msra.gmra.mrb[12].mxu1 %v2003_v55  ;;  %v3939_v55 = vld [vmem:[#allocation3 + $0xa0] sm:$0xff] }
 0x3b2   : > { %2199 = vmatpush1.bf16.msra.mxu0 %v3598_v18  ;;  %2240 = vmatpush1.bf16.msra.mxu1 %v3600_v19  ;;  %v961_v18 = vld [vmem:[#allocation4] sm:$0xf] }
 0x3b3   : > { %2200 = vmatprep.subr.bf16.mxu0 %v3602_v20  ;;  %2241 = vmatprep.subr.bf16.mxu1 %v3604_v21  ;;  %v966_v19 = vrot.slane %v961_v18, %v3728_v52  ;;  %v970_v20 = vrot.slane %v961_v18, %v3730_v54 }
 0x3b4   : > { %2230 = vmatprep.mubr.bf16.mxu0 %v3262_v8  ;;  %2271 = vmatprep.mubr.bf16.mxu1 %v3262_v8 }
 0x3b6   : > { %2201 = vmatpush1.bf16.msra.mxu0 %v3612_v22  ;;  %2242 = vmatpush1.bf16.msra.mxu1 %v3614_v23 }
 0x3b7   : > { %2202 = vmatprep.subr.bf16.mxu0 %v3616_v24  ;;  %2243 = vmatprep.subr.bf16.mxu1 %v3618_v25 }
 0x3ba   : > { %2203 = vmatpush1.bf16.msra.mxu0 %v3626_v26  ;;  %2244 = vmatpush1.bf16.msra.mxu1 %v3628_v27 }
 0x3bb   : > { %2204 = vmatprep.subr.bf16.mxu0 %v3630_v28  ;;  %2245 = vmatprep.subr.bf16.mxu1 %v3632_v29 }
 0x3be   : > { %2205 = vmatpush1.bf16.msra.mxu0 %v3638_v30  ;;  %2246 = vmatpush1.bf16.msra.mxu1 %v3640_v31 }
 0x3bf   : > { %2206 = vmatprep.subr.bf16.mxu0 %v3642_v32  ;;  %2247 = vmatprep.subr.bf16.mxu1 %v3644_v33  ;;  %v978_v33 = vrot.slane %v961_v18, %v3734_v59 }
 0x3c2   : > { %2207 = vmatpush1.bf16.msra.mxu0 %v3650_v34  ;;  %2248 = vmatpush1.bf16.msra.mxu1 %v3652_v35  ;;  %v974_v35 = vrot.slane %v961_v18, %v3737_v7  ;;  %v3941_v18 = vld [vmem:[#allocation3 + $0xb0] sm:$0xff] }
 0x3c3   : > { %2208 = vmatprep.subr.bf16.mxu0 %v3654_v36  ;;  %2249 = vmatprep.subr.bf16.mxu1 %v3656_v37 }
 0x3c6   : > { %2209 = vmatpush1.bf16.msra.mxu0 %v3662_v38  ;;  %2250 = vmatpush1.bf16.msra.mxu1 %v3664_v39 }
 0x3c7   : > { %2210 = vmatprep.subr.bf16.mxu0 %v3666_v40  ;;  %2251 = vmatprep.subr.bf16.mxu1 %v3668_v41 }
 0x3ca   : > { %2211 = vmatpush1.bf16.msra.mxu0 %v3674_v42  ;;  %2252 = vmatpush1.bf16.msra.mxu1 %v3676_v43 }
 0x3cb   : > { %2212 = vmatprep.subr.bf16.mxu0 %v3678_v44  ;;  %2253 = vmatprep.subr.bf16.mxu1 %v3680_v45 }
 0x3ce   : > { %2213 = vmatpush1.bf16.msra.mxu0 %v3686_v47  ;;  %2254 = vmatpush1.bf16.msra.mxu1 %v3688_v48 }
 0x3cf   : > { %2352 = vmatprep.subr.bf16.mxu0 %v3873_v58  ;;  %2393 = vmatprep.subr.bf16.mxu1 %v3875_v62 }
 0x484   : > { %v2078_v21 = vpop.f32.mrb[12].mxu0  ;;  %v2119_v22 = vpop.f32.mrb[12].mxu1 }
 0x485   : > { %v2993_v23 = vadd.f32 %v2078_v21, %v966_v19  ;;  %v2080_v24 = vpop.f32.mrb[13].mxu0  ;;  %v2121_v25 = vpop.f32.mrb[13].mxu1  ;;  %v2995_v37 = vadd.f32 %v2119_v22, %v974_v35  ;;  %v3945_v19 = vld [vmem:[#allocation3 + $0xc8] sm:$0xff]  ;;  %v3951_v21 = vld [vmem:[#allocation3 + $0xc0] sm:$0xff]  ;;  %v3953_v22 = vld [vmem:[#allocation3 + $0xd0] sm:$0xff] }
 0x486   : > { %v2994_v26 = vadd.f32 %v2080_v24, %v970_v20  ;;  %v2082_v27 = vpop.f32.mrb[14].mxu0  ;;  %v2123_v28 = vpop.f32.mrb[14].mxu1  ;;  %v2996_v34 = vadd.f32 %v2121_v25, %v978_v33  ;;  %v3947_v20 = vld [vmem:[#allocation3 + $0xd8] sm:$0xff]  ;;  %v3963_v25 = vld [vmem:[#allocation3 + $0xe0] sm:$0xff] }
 0x487   : > { %v2956_v29 = vmul.f32 -1.442695, %v2993_v23  ;;  %v2083_v30 = vpop.f32.mrb[15].mxu0  ;;  %v2124_v31 = vpop.f32.mrb[15].mxu1  ;;  %v3957_v23 = vld [vmem:[#allocation3 + $0xe8] sm:$0xff]  ;;  %v3959_v24 = vld [vmem:[#allocation3 + $0xf8] sm:$0xff] }
 0x488   : > { %v2957_v32 = vmul.f32 -1.442695, %v2994_v26  ;;  %v2958_v36 = vmul.f32 -1.442695, %v2996_v34  ;;  %v3965_v26 = vld [vmem:[#allocation3 + $0xf0] sm:$0xff] }
 0x489   : > { %3151 = vpow2.f32 %v2956_v29  ;;  %v1079_v27 = vld [vmem:[#allocation4] sm:$0xf] }
 0x48a   : > { %3153 = vpow2.f32 %v2957_v32  ;;  %v1084_v28 = vrot.slane %v1079_v27, %v3728_v52  ;;  %v1088_v29 = vrot.slane %v1079_v27, %v3730_v54 }
 0x48b   : > { %3155 = vpow2.f32 %v2958_v36 }
 0x48c   : > { %3157 = vtanh.f32 %v2995_v37 }
 0x493   : > { %v3152_v38 = vpop.eup %3151 }
 0x494   : > { %v3154_v39 = vpop.eup %3153  ;;  %v2133_v40 = vadd.f32 1.0, %v3152_v38 }
 0x495   : > { %v2139_v41 = vadd.f32 1.0, %v3154_v39  ;;  %v3156_v42 = vpop.eup %3155 }
 0x496   : > { %3159 = vrcp.f32 %v2133_v40  ;;  %v3158_v43 = vpop.eup %3157  ;;  %v2146_v48 = vadd.f32 1.0, %v3156_v42  ;;  %v1096_v42 = vrot.slane %v1079_v27, %v3734_v59 }
 0x497   : > { %3161 = vrcp.f32 %v2139_v41 }
 0x498   : > { %3163 = vrcp.f32 %v2146_v48 }
 0x4a0   : > { %v3160_v44 = vpop.eup %3159 }
 0x4a1   : > { %v3162_v45 = vpop.eup %3161  ;;  %v2151_v47 = vmul.f32 %v3160_v44, %v3158_v43  ;;  %v1092_v44 = vrot.slane %v1079_v27, %v3737_v7 }
 0x4a2   : > { %v2150_v1 = vmul.f32 %v3162_v45, %v3826_v53  ;;  %v3164_v56 = vpop.eup %3163  ;;  %v3927_v53 = vld [vmem:[#allocation3 + $0x80] sm:$0xff] }
 0x4a4   : > { %v3867_v51 = vadd.f32 %v2151_v47, %v2150_v1 }
 0x4a6   : > { %3165 = vtanh.f32 %v3867_v51 }
 0x4b0   : > { %v3166_v57 = vpop.eup %3165 }
 0x4b1   : > { %v2154_v60 = vmul.f32 %v3166_v57, %v3164_v56 }
 0x4b3   : > { %v2157_v61 = vpack.c.bf16 %v2154_v60, %v2154_v60 }
 0x4b5   : > { %2959 = vst [vmem:[%s3314_s26 + $0xc] sm:$0xf] %v2157_v61  ;;  %2231 = vmatmul.mubr.bf16.vlgmr.msra.gmra.mrb[16].mxu0 %v2157_v61  ;;  %2272 = vmatmul.mubr.bf16.vlgmr.msra.gmra.mrb[16].mxu1 %v2157_v61 }
 0x4b6   : > { %2384 = vmatprep.mubr.bf16.mxu0 %v3262_v8  ;;  %2425 = vmatprep.mubr.bf16.mxu1 %v3262_v8 }
 0x4b7   : > { %2353 = vmatpush1.bf16.msra.mxu0 %v3879_v15  ;;  %2394 = vmatpush1.bf16.msra.mxu1 %v3881_v16 }
 0x4b8   : > { %2354 = vmatprep.subr.bf16.mxu0 %v3885_v63  ;;  %2395 = vmatprep.subr.bf16.mxu1 %v3887_v0 }
 0x4bb   : > { %2355 = vmatpush1.bf16.msra.mxu0 %v3891_v2  ;;  %2396 = vmatpush1.bf16.msra.mxu1 %v3893_v3 }
 0x4bc   : > { %2356 = vmatprep.subr.bf16.mxu0 %v3897_v4  ;;  %2397 = vmatprep.subr.bf16.mxu1 %v3899_v6 }
 0x4bf   : > { %2357 = vmatpush1.bf16.msra.mxu0 %v3903_v9  ;;  %2398 = vmatpush1.bf16.msra.mxu1 %v3905_v5 }
 0x4c0   : > { %2358 = vmatprep.subr.bf16.mxu0 %v3909_v10  ;;  %2399 = vmatprep.subr.bf16.mxu1 %v3911_v11 }
 0x4c3   : > { %2359 = vmatpush1.bf16.msra.mxu0 %v3915_v12  ;;  %2400 = vmatpush1.bf16.msra.mxu1 %v3917_v13 }
 0x4c4   : > { %2360 = vmatprep.subr.bf16.mxu0 %v3921_v14  ;;  %2401 = vmatprep.subr.bf16.mxu1 %v3923_v17 }
 0x4c7   : > { %2361 = vmatpush1.bf16.msra.mxu0 %v3927_v53  ;;  %2402 = vmatpush1.bf16.msra.mxu1 %v3929_v46 }
 0x4c8   : > { %2362 = vmatprep.subr.bf16.mxu0 %v3933_v49  ;;  %2403 = vmatprep.subr.bf16.mxu1 %v3935_v50 }
 0x4cb   : > { %2363 = vmatpush1.bf16.msra.mxu0 %v3939_v55  ;;  %2404 = vmatpush1.bf16.msra.mxu1 %v3941_v18 }
 0x4cc   : > { %2364 = vmatprep.subr.bf16.mxu0 %v3945_v19  ;;  %2405 = vmatprep.subr.bf16.mxu1 %v3947_v20 }
 0x4cf   : > { %2365 = vmatpush1.bf16.msra.mxu0 %v3951_v21  ;;  %2406 = vmatpush1.bf16.msra.mxu1 %v3953_v22 }
 0x4d0   : > { %2366 = vmatprep.subr.bf16.mxu0 %v3957_v23  ;;  %2407 = vmatprep.subr.bf16.mxu1 %v3959_v24 }
 0x4d3   : > { %2367 = vmatpush1.bf16.msra.mxu0 %v3963_v25  ;;  %2408 = vmatpush1.bf16.msra.mxu1 %v3965_v26 }
 0x4d4   : > { %2506 = vmatprep.subr.bf16.mxu0 %v3873_v58  ;;  %2547 = vmatprep.subr.bf16.mxu1 %v3875_v62 }
 0x588   : > { %v2232_v30 = vpop.f32.mrb[16].mxu0  ;;  %v2273_v31 = vpop.f32.mrb[16].mxu1 }
 0x589   : > { %v2997_v32 = vadd.f32 %v2232_v30, %v1084_v28  ;;  %v2234_v33 = vpop.f32.mrb[17].mxu0  ;;  %v2275_v34 = vpop.f32.mrb[17].mxu1  ;;  %v2999_v47 = vadd.f32 %v2273_v31, %v1092_v44 }
 0x58a   : > { %v2998_v35 = vadd.f32 %v2234_v33, %v1088_v29  ;;  %v2236_v36 = vpop.f32.mrb[18].mxu0  ;;  %v2277_v37 = vpop.f32.mrb[18].mxu1  ;;  %v3000_v43 = vadd.f32 %v2275_v34, %v1096_v42 }
 0x58b   : > { %v2960_v38 = vmul.f32 -1.442695, %v2997_v32  ;;  %v2237_v39 = vpop.f32.mrb[19].mxu0  ;;  %v2278_v40 = vpop.f32.mrb[19].mxu1 }
 0x58c   : > { %v2961_v41 = vmul.f32 -1.442695, %v2998_v35  ;;  %v2962_v45 = vmul.f32 -1.442695, %v3000_v43 }
 0x58d   : > { %3167 = vpow2.f32 %v2960_v38 }
 0x58e   : > { %3169 = vpow2.f32 %v2961_v41 }
 0x58f   : > { %3171 = vpow2.f32 %v2962_v45 }
 0x590   : > { %3173 = vtanh.f32 %v2999_v47 }
 0x597   : > { %v3168_v48 = vpop.eup %3167 }
 0x598   : > { %v3170_v1 = vpop.eup %3169  ;;  %v2287_v56 = vadd.f32 1.0, %v3168_v48 }
 0x599   : > { %v2293_v57 = vadd.f32 1.0, %v3170_v1  ;;  %v3172_v60 = vpop.eup %3171 }
 0x59a   : > { %3175 = vrcp.f32 %v2287_v56  ;;  %v3174_v61 = vpop.eup %3173  ;;  %v2300_v32 = vadd.f32 1.0, %v3172_v60 }
 0x59b   : > { %3177 = vrcp.f32 %v2293_v57 }
 0x59c   : > { %3179 = vrcp.f32 %v2300_v32 }
 0x5a4   : > { %v3176_v28 = vpop.eup %3175 }
 0x5a5   : > { %v3178_v29 = vpop.eup %3177  ;;  %v2305_v30 = vmul.f32 %v3176_v28, %v3174_v61 }
 0x5a6   : > { %v2304_v33 = vmul.f32 %v3178_v29, %v3867_v51  ;;  %v3180_v31 = vpop.eup %3179  ;;  %v1197_v51 = vld [vmem:[#allocation4] sm:$0xf] }
 0x5a7   : > { %v1202_v37 = vrot.slane %v1197_v51, %v3728_v52  ;;  %v1206_v38 = vrot.slane %v1197_v51, %v3730_v54  ;;  %v1210_v60 = vrot.slane %v1197_v51, %v3737_v7 }
 0x5a8   : > { %v3976_v27 = vadd.f32 %v2305_v30, %v2304_v33 }
 0x5aa   : > { %3181 = vtanh.f32 %v3976_v27 }
 0x5b4   : > { %v3182_v34 = vpop.eup %3181 }
 0x5b5   : > { %v2308_v35 = vmul.f32 %v3182_v34, %v3180_v31 }
 0x5b7   : > { %v2311_v36 = vpack.c.bf16 %v2308_v35, %v2308_v35 }
 0x5b9   : > { %2963 = vst [vmem:[%s3314_s26 + $0x10] sm:$0xf] %v2311_v36  ;;  %2385 = vmatmul.mubr.bf16.vlgmr.msra.gmra.mrb[20].mxu0 %v2311_v36  ;;  %2426 = vmatmul.mubr.bf16.vlgmr.msra.gmra.mrb[20].mxu1 %v2311_v36 }
 0x5ba   : > { %2507 = vmatpush1.bf16.msra.mxu0 %v3879_v15  ;;  %2548 = vmatpush1.bf16.msra.mxu1 %v3881_v16 }
 0x5bb   : > { %2508 = vmatprep.subr.bf16.mxu0 %v3885_v63  ;;  %2549 = vmatprep.subr.bf16.mxu1 %v3887_v0 }
 0x5bc   : > { %2538 = vmatprep.mubr.bf16.mxu0 %v3262_v8  ;;  %2579 = vmatprep.mubr.bf16.mxu1 %v3262_v8 }
 0x5be   : > { %2509 = vmatpush1.bf16.msra.mxu0 %v3891_v2  ;;  %2550 = vmatpush1.bf16.msra.mxu1 %v3893_v3 }
 0x5bf   : > { %2510 = vmatprep.subr.bf16.mxu0 %v3897_v4  ;;  %2551 = vmatprep.subr.bf16.mxu1 %v3899_v6 }
 0x5c2   : > { %2511 = vmatpush1.bf16.msra.mxu0 %v3903_v9  ;;  %2552 = vmatpush1.bf16.msra.mxu1 %v3905_v5 }
 0x5c3   : > { %2512 = vmatprep.subr.bf16.mxu0 %v3909_v10  ;;  %2553 = vmatprep.subr.bf16.mxu1 %v3911_v11 }
 0x5c6   : > { %2513 = vmatpush1.bf16.msra.mxu0 %v3915_v12  ;;  %2554 = vmatpush1.bf16.msra.mxu1 %v3917_v13 }
 0x5c7   : > { %2514 = vmatprep.subr.bf16.mxu0 %v3921_v14  ;;  %2555 = vmatprep.subr.bf16.mxu1 %v3923_v17 }
 0x5ca   : > { %2515 = vmatpush1.bf16.msra.mxu0 %v3927_v53  ;;  %2556 = vmatpush1.bf16.msra.mxu1 %v3929_v46 }
 0x5cb   : > { %2516 = vmatprep.subr.bf16.mxu0 %v3933_v49  ;;  %2557 = vmatprep.subr.bf16.mxu1 %v3935_v50 }
 0x5ce   : > { %2517 = vmatpush1.bf16.msra.mxu0 %v3939_v55  ;;  %2558 = vmatpush1.bf16.msra.mxu1 %v3941_v18 }
 0x5cf   : > { %2518 = vmatprep.subr.bf16.mxu0 %v3945_v19  ;;  %2559 = vmatprep.subr.bf16.mxu1 %v3947_v20 }
 0x5d2   : > { %2519 = vmatpush1.bf16.msra.mxu0 %v3951_v21  ;;  %2560 = vmatpush1.bf16.msra.mxu1 %v3953_v22 }
 0x5d3   : > { %2520 = vmatprep.subr.bf16.mxu0 %v3957_v23  ;;  %2561 = vmatprep.subr.bf16.mxu1 %v3959_v24 }
 0x5d6   : > { %2521 = vmatpush1.bf16.msra.mxu0 %v3963_v25  ;;  %2562 = vmatpush1.bf16.msra.mxu1 %v3965_v26 }
 0x5d7   : > { %2660 = vmatprep.subr.bf16.mxu0 %v3873_v58  ;;  %2701 = vmatprep.subr.bf16.mxu1 %v3875_v62  ;;  %v1214_v58 = vrot.slane %v1197_v51, %v3734_v59 }
 0x68c   : > { %v2386_v39 = vpop.f32.mrb[20].mxu0  ;;  %v2427_v40 = vpop.f32.mrb[20].mxu1 }
 0x68d   : > { %v3001_v41 = vadd.f32 %v2386_v39, %v1202_v37  ;;  %v2388_v42 = vpop.f32.mrb[21].mxu0  ;;  %v2429_v43 = vpop.f32.mrb[21].mxu1  ;;  %v3003_v28 = vadd.f32 %v2427_v40, %v1210_v60 }
 0x68e   : > { %v3002_v44 = vadd.f32 %v2388_v42, %v1206_v38  ;;  %v2390_v45 = vpop.f32.mrb[22].mxu0  ;;  %v2431_v47 = vpop.f32.mrb[22].mxu1  ;;  %v3004_v62 = vadd.f32 %v2429_v43, %v1214_v58 }
 0x68f   : > { %v2964_v48 = vmul.f32 -1.442695, %v3001_v41  ;;  %v2391_v1 = vpop.f32.mrb[23].mxu0  ;;  %v2432_v56 = vpop.f32.mrb[23].mxu1 }
 0x690   : > { %v2965_v57 = vmul.f32 -1.442695, %v3002_v44  ;;  %v2966_v61 = vmul.f32 -1.442695, %v3004_v62  ;;  %v1433_v1 = vld [vmem:[#allocation4] sm:$0xf] }
 0x691   : > { %3183 = vpow2.f32 %v2964_v48  ;;  %v1438_v56 = vrot.slane %v1433_v1, %v3728_v52 }
 0x692   : > { %3185 = vpow2.f32 %v2965_v57  ;;  %v1442_v57 = vrot.slane %v1433_v1, %v3730_v54 }
 0x693   : > { %3187 = vpow2.f32 %v2966_v61 }
 0x694   : > { %3189 = vtanh.f32 %v3003_v28 }
 0x69b   : > { %v3184_v29 = vpop.eup %3183 }
 0x69c   : > { %v3186_v30 = vpop.eup %3185  ;;  %v2441_v32 = vadd.f32 1.0, %v3184_v29 }
 0x69d   : > { %v2447_v33 = vadd.f32 1.0, %v3186_v30  ;;  %v3188_v31 = vpop.eup %3187 }
 0x69e   : > { %3191 = vrcp.f32 %v2441_v32  ;;  %v3190_v34 = vpop.eup %3189  ;;  %v2454_v38 = vadd.f32 1.0, %v3188_v31 }
 0x69f   : > { %3193 = vrcp.f32 %v2447_v33 }
 0x6a0   : > { %3195 = vrcp.f32 %v2454_v38 }
 0x6a8   : > { %v3192_v35 = vpop.eup %3191 }
 0x6a9   : > { %v3194_v36 = vpop.eup %3193  ;;  %v2459_v37 = vmul.f32 %v3192_v35, %v3190_v34 }
 0x6aa   : > { %v2458_v39 = vmul.f32 %v3194_v36, %v3976_v27  ;;  %v3196_v40 = vpop.eup %3195  ;;  %v1450_v36 = vrot.slane %v1433_v1, %v3734_v59 }
 0x6ac   : > { %v4019_v51 = vadd.f32 %v2459_v37, %v2458_v39 }
 0x6ae   : > { %3197 = vtanh.f32 %v4019_v51 }
 0x6b8   : > { %v3198_v41 = vpop.eup %3197 }
 0x6b9   : > { %v2462_v42 = vmul.f32 %v3198_v41, %v3196_v40 }
 0x6bb   : > { %v2465_v43 = vpack.c.bf16 %v2462_v42, %v2462_v42 }
 0x6bd   : > { %2967 = vst [vmem:[%s3314_s26 + $0x14] sm:$0xf] %v2465_v43  ;;  %2539 = vmatmul.mubr.bf16.vlgmr.msra.gmra.mrb[24].mxu0 %v2465_v43  ;;  %2580 = vmatmul.mubr.bf16.vlgmr.msra.gmra.mrb[24].mxu1 %v2465_v43 }
 0x6be   : > { %2661 = vmatpush1.bf16.msra.mxu0 %v3879_v15  ;;  %2702 = vmatpush1.bf16.msra.mxu1 %v3881_v16 }
 0x6bf   : > { %2662 = vmatprep.subr.bf16.mxu0 %v3885_v63  ;;  %2703 = vmatprep.subr.bf16.mxu1 %v3887_v0 }
 0x6c0   : > { %2692 = vmatprep.mubr.bf16.mxu0 %v3262_v8  ;;  %2733 = vmatprep.mubr.bf16.mxu1 %v3262_v8  ;;  %v1315_v8 = vld [vmem:[#allocation4] sm:$0xf] }
 0x6c1   : > { %v1320_v15 = vrot.slane %v1315_v8, %v3728_v52  ;;  %v1324_v16 = vrot.slane %v1315_v8, %v3730_v54  ;;  %v1446_v52 = vrot.slane %v1433_v1, %v3737_v7 }
 0x6c2   : > { %2663 = vmatpush1.bf16.msra.mxu0 %v3891_v2  ;;  %2704 = vmatpush1.bf16.msra.mxu1 %v3893_v3 }
 0x6c3   : > { %2664 = vmatprep.subr.bf16.mxu0 %v3897_v4  ;;  %2705 = vmatprep.subr.bf16.mxu1 %v3899_v6 }
 0x6c6   : > { %2665 = vmatpush1.bf16.msra.mxu0 %v3903_v9  ;;  %2706 = vmatpush1.bf16.msra.mxu1 %v3905_v5 }
 0x6c7   : > { %2666 = vmatprep.subr.bf16.mxu0 %v3909_v10  ;;  %2707 = vmatprep.subr.bf16.mxu1 %v3911_v11 }
 0x6ca   : > { %2667 = vmatpush1.bf16.msra.mxu0 %v3915_v12  ;;  %2708 = vmatpush1.bf16.msra.mxu1 %v3917_v13 }
 0x6cb   : > { %2668 = vmatprep.subr.bf16.mxu0 %v3921_v14  ;;  %2709 = vmatprep.subr.bf16.mxu1 %v3923_v17  ;;  %v1332_v14 = vrot.slane %v1315_v8, %v3734_v59 }
 0x6ce   : > { %2669 = vmatpush1.bf16.msra.mxu0 %v3927_v53  ;;  %2710 = vmatpush1.bf16.msra.mxu1 %v3929_v46  ;;  %v1328_v53 = vrot.slane %v1315_v8, %v3737_v7 }
 0x6cf   : > { %2670 = vmatprep.subr.bf16.mxu0 %v3933_v49  ;;  %2711 = vmatprep.subr.bf16.mxu1 %v3935_v50 }
 0x6d2   : > { %2671 = vmatpush1.bf16.msra.mxu0 %v3939_v55  ;;  %2712 = vmatpush1.bf16.msra.mxu1 %v3941_v18 }
 0x6d3   : > { %2672 = vmatprep.subr.bf16.mxu0 %v3945_v19  ;;  %2713 = vmatprep.subr.bf16.mxu1 %v3947_v20 }
 0x6d6   : > { %2673 = vmatpush1.bf16.msra.mxu0 %v3951_v21  ;;  %2714 = vmatpush1.bf16.msra.mxu1 %v3953_v22 }
 0x6d7   : > { %2674 = vmatprep.subr.bf16.mxu0 %v3957_v23  ;;  %2715 = vmatprep.subr.bf16.mxu1 %v3959_v24 }
 0x6da   : > { %2675 = vmatpush1.bf16.msra.mxu0 %v3963_v25  ;;  %2716 = vmatpush1.bf16.msra.mxu1 %v3965_v26 }
 0x790   : > { %v2540_v63 = vpop.f32.mrb[24].mxu0  ;;  %v2581_v0 = vpop.f32.mrb[24].mxu1 }
 0x791   : > { %v3005_v2 = vadd.f32 %v2540_v63, %v1320_v15  ;;  %v2542_v3 = vpop.f32.mrb[25].mxu0  ;;  %v2583_v4 = vpop.f32.mrb[25].mxu1  ;;  %v3007_v49 = vadd.f32 %v2581_v0, %v1328_v53 }
 0x792   : > { %v3006_v6 = vadd.f32 %v2542_v3, %v1324_v16  ;;  %v2544_v9 = vpop.f32.mrb[26].mxu0  ;;  %v2585_v5 = vpop.f32.mrb[26].mxu1  ;;  %v3008_v17 = vadd.f32 %v2583_v4, %v1332_v14 }
 0x793   : > { %v2968_v10 = vmul.f32 -1.442695, %v3005_v2  ;;  %v2545_v11 = vpop.f32.mrb[27].mxu0  ;;  %v2586_v12 = vpop.f32.mrb[27].mxu1 }
 0x794   : > { %v2969_v13 = vmul.f32 -1.442695, %v3006_v6  ;;  %v2970_v46 = vmul.f32 -1.442695, %v3008_v17 }
 0x795   : > { %3199 = vpow2.f32 %v2968_v10 }
 0x796   : > { %3201 = vpow2.f32 %v2969_v13 }
 0x797   : > { %3203 = vpow2.f32 %v2970_v46 }
 0x798   : > { %3205 = vtanh.f32 %v3007_v49 }
 0x79f   : > { %v3200_v50 = vpop.eup %3199 }
 0x7a0   : > { %v3202_v55 = vpop.eup %3201  ;;  %v2595_v18 = vadd.f32 1.0, %v3200_v50 }
 0x7a1   : > { %v2601_v19 = vadd.f32 1.0, %v3202_v55  ;;  %v3204_v20 = vpop.eup %3203 }
 0x7a2   : > { %3207 = vrcp.f32 %v2595_v18  ;;  %v3206_v21 = vpop.eup %3205  ;;  %v2608_v25 = vadd.f32 1.0, %v3204_v20 }
 0x7a3   : > { %3209 = vrcp.f32 %v2601_v19 }
 0x7a4   : > { %3211 = vrcp.f32 %v2608_v25 }
 0x7ac   : > { %v3208_v22 = vpop.eup %3207 }
 0x7ad   : > { %v3210_v23 = vpop.eup %3209  ;;  %v2613_v24 = vmul.f32 %v3208_v22, %v3206_v21 }
 0x7ae   : > { %v2612_v26 = vmul.f32 %v3210_v23, %v4019_v51  ;;  %v3212_v44 = vpop.eup %3211 }
 0x7b0   : > { %v2614_v27 = vadd.f32 %v2613_v24, %v2612_v26 }
 0x7b2   : > { %3213 = vtanh.f32 %v2614_v27 }
 0x7bc   : > { %v3214_v45 = vpop.eup %3213 }
 0x7bd   : > { %v2616_v47 = vmul.f32 %v3214_v45, %v3212_v44 }
 0x7bf   : > { %v2619_v48 = vpack.c.bf16 %v2616_v47, %v2616_v47 }
 0x7c1   : > { %2971 = vst [vmem:[%s3314_s26 + $0x18] sm:$0xf] %v2619_v48  ;;  %2693 = vmatmul.mubr.bf16.vlgmr.msra.gmra.mrb[28].mxu0 %v2619_v48  ;;  %2734 = vmatmul.mubr.bf16.vlgmr.msra.gmra.mrb[28].mxu1 %v2619_v48 }
 0x894   : > { %v2694_v58 = vpop.f32.mrb[28].mxu0  ;;  %v2735_v62 = vpop.f32.mrb[28].mxu1 }
 0x895   : > { %v3009_v60 = vadd.f32 %v2694_v58, %v1438_v56  ;;  %v2696_v61 = vpop.f32.mrb[29].mxu0  ;;  %v2737_v28 = vpop.f32.mrb[29].mxu1  ;;  %v3011_v38 = vadd.f32 %v2735_v62, %v1446_v52 }
 0x896   : > { %v3010_v29 = vadd.f32 %v2696_v61, %v1442_v57  ;;  %v2698_v30 = vpop.f32.mrb[30].mxu0  ;;  %v2739_v32 = vpop.f32.mrb[30].mxu1  ;;  %v3012_v37 = vadd.f32 %v2737_v28, %v1450_v36 }
 0x897   : > { %v2972_v33 = vmul.f32 -1.442695, %v3009_v60  ;;  %v2699_v31 = vpop.f32.mrb[31].mxu0  ;;  %v2740_v34 = vpop.f32.mrb[31].mxu1 }
 0x898   : > { %v2973_v35 = vmul.f32 -1.442695, %v3010_v29  ;;  %v2974_v54 = vmul.f32 -1.442695, %v3012_v37 }
 0x899   : > { %3215 = vpow2.f32 %v2972_v33 }
 0x89a   : > { %3217 = vpow2.f32 %v2973_v35 }
 0x89b   : > { %3219 = vpow2.f32 %v2974_v54 }
 0x89c   : > { %3221 = vtanh.f32 %v3011_v38 }
 0x8a3   : > { %v3216_v39 = vpop.eup %3215 }
 0x8a4   : > { %v3218_v51 = vpop.eup %3217  ;;  %v2749_v40 = vadd.f32 1.0, %v3216_v39 }
 0x8a5   : > { %v2755_v41 = vadd.f32 1.0, %v3218_v51  ;;  %v3220_v42 = vpop.eup %3219 }
 0x8a6   : > { %3223 = vrcp.f32 %v2749_v40  ;;  %v3222_v43 = vpop.eup %3221  ;;  %v2762_v16 = vadd.f32 1.0, %v3220_v42 }
 0x8a7   : > { %3225 = vrcp.f32 %v2755_v41 }
 0x8a8   : > { %3227 = vrcp.f32 %v2762_v16 }
 0x8b0   : > { %v3224_v8 = vpop.eup %3223 }
 0x8b1   : > { %v3226_v59 = vpop.eup %3225  ;;  %v2767_v15 = vmul.f32 %v3224_v8, %v3222_v43 }
 0x8b2   : > { %v2766_v63 = vmul.f32 %v3226_v59, %v2614_v27  ;;  %v3228_v7 = vpop.eup %3227 }
 0x8b4   : > { %v2768_v0 = vadd.f32 %v2767_v15, %v2766_v63 }
 0x8b6   : > { %3229 = vtanh.f32 %v2768_v0  ;;  %2771 = vst [vmem:[#allocation8] sm:$0xff] %v2768_v0 }
 0x8c0   : > { %v3230_v2 = vpop.eup %3229 }
 0x8c1   : > { %v2770_v3 = vmul.f32 %v3230_v2, %v3228_v7 }
 0x8c3   : > { %2772 = vst [vmem:[#allocation7] sm:$0xff] %v2770_v3  ;;  %v2773_v4 = vpack.c.bf16 %v2770_v3, %v2770_v3 }
 0x8c5   : > { %2975 = vst [vmem:[%s3314_s26 + $0x1c] sm:$0xf] %v2773_v4 }
 0x8c6 PF: > { %s14_s17 = sadd.s32 1, %s3259_s17   ;;  %s4080_s15 = smov %s3255_s16 }
 0x8c7   : > { %p11_p6 = scmp.ge.s32.totalorder %s14_s17, 4   ;;  %s4081_s16 = smov %s4083_s18 }
 0x8c9   :  { %13 = sbr.rel (!%p11_p6) target bundleno = 2 (0x2), region = 225 }
 0x8d0   :  { %2804 = vsyncmov [#allocation5] }
 0x8d3   :  { %s2805_s23 = vpop.sfrf %2804 }
 0x8d4   :  { %p2978_p7 = scmp.ne.s32.totalorder %s2805_s23, 0 }
 0x8d6   :  { %2809 = shalt.err (%p2978_p7)  }
 0x8d7   :  { %2811 = vsyncmov [#allocation5 + $0x1] }
 0x8da   :  { %s2812_s7 = vpop.sfrf %2811 }
 0x8db   :  { %p2979_p8 = scmp.ne.s32.totalorder %s2812_s7, 0 }
 0x8dd   :  { %2816 = shalt.err (%p2979_p8)  }
 0x8de   :  { %2818 = vsyncmov [#allocation5 + $0x2] }
 0x8e1   :  { %s2819_s26 = vpop.sfrf %2818 }
 0x8e2   :  { %p2980_p9 = scmp.ne.s32.totalorder %s2819_s26, 0 }
 0x8e4   :  { %2823 = shalt.err (%p2980_p9)  }

// kernel: lstm_feature_extractor.3
= control target key start
LH: loop header
LB: loop body
LE: loop exit
PB: predicated region body
PF: predicated region fallthrough
CT: control target
= control target key end

     0   :  { %s3685_s15 = smov 0   ;;  %s3687_s16 = smov 0   ;;  %s4883_s0 = inlined_call_operand.vmem [shape: bf16[16,8,128], index: 0, kind: input, shape index: {}]   ;;  %s4884_s1 = inlined_call_operand.vmem [shape: bf16[128,512], index: 1, kind: input, shape index: {}]   ;;  %s4885_s2 = inlined_call_operand.vmem [shape: bf16[128,512], index: 2, kind: input, shape index: {}]   ;;  %s4886_s3 = inlined_call_operand.vmem [shape: f32[1,512], index: 3, kind: input, shape index: {}]   ;;  %s4887_s4 = inlined_call_operand.vmem [shape: f32[16,8,128], index: 4, kind: output, shape index: {}]  }
   0x1   :  { %s3689_s17 = smov 0  }
   0x2 LB: > { %s23_s18 = sadd.s32 1, %s3652_s16  ;;  %p3329_p0 = scmp.ge.s32.totalorder %s3656_s17, 1  ;;  %s3656_s17 = sphi %s3689_s17, %s14_s17   ;;  %s3652_s16 = sphi %s3687_s16, %s4889_s16   ;;  %s3648_s15 = sphi %s3685_s15, %s4888_s15  }
   0x3   : > { %p24_p1 = scmp.ge.s32.totalorder %s23_s18, 2  ;;  %p110_p2 = scmp.lt.s32.totalorder %s3656_s17, 3 }
   0x5   : > { %s4891_s18 = smov (%p24_p1, %s23_s18), 0  ;;  %p111_p3 = pnand %p3329_p0, %p110_p2 }
   0x6   : > { %s3330_s19 = sshll.u32 (!%p111_p3), %s3648_s15, 3  ;;  %p3334_p5 = scmp.ne.s32.totalorder (!%p111_p3), %s3648_s15, 0 }
   0x7   : > { %114 = sbr.rel (%p111_p3) target bundleno = 2471 (0x9a7), region = 24  ;;  %p137_p4 = scmp.lt.s32.totalorder (!%p111_p3), %s3330_s19, 15 }
   0xe   : > { %s4893_s19 = smov (!%p137_p4, %s3330_s19), 15  ;;  %158 = sbr.rel (%p3334_p5) target bundleno = 99 (0x63), region = 28 }
   0xf   : > { %s3331_s20 = sshll.u32 %s4893_s19, 2  ;;  %s3333_s21 = sshll.u32 %s4893_s19, 3  ;;  %v176_v0 = vld [vmem:[%s4884_s1] sm:$0xf] (!%p3334_p5)  ;;  %v178_v1 = vld [vmem:[%s4884_s1 + $0x10] sm:$0xf] (!%p3334_p5) }
  0x10   : > { %s3706_s24 = scalar_lea.vmem %s4883_s0, %s3331_s20  ;;  %s3711_s27 = scalar_lea.vmem %s4887_s4, %s3333_s21  ;;  %v180_v2 = vld [vmem:[%s4884_s1 + $0x4] sm:$0xf] (!%p3334_p5)  ;;  %177 = vst [vmem:[#allocation2] sm:$0xf] (!%p3334_p5), %v176_v0  ;;  %179 = vst [vmem:[#allocation2 + $0x4] sm:$0xf] (!%p3334_p5), %v178_v1 }
  0x11   : > { %181 = vst [vmem:[#allocation2 + $0x8] sm:$0xf] (!%p3334_p5), %v180_v2  ;;  %v182_v3 = vld [vmem:[%s4884_s1 + $0x14] sm:$0xf] (!%p3334_p5)  ;;  %v184_v4 = vld [vmem:[%s4884_s1 + $0x8] sm:$0xf] (!%p3334_p5) }
  0x12   : > { %v186_v5 = vld [vmem:[%s4884_s1 + $0x18] sm:$0xf] (!%p3334_p5)  ;;  %183 = vst [vmem:[#allocation2 + $0xc] sm:$0xf] (!%p3334_p5), %v182_v3  ;;  %185 = vst [vmem:[#allocation2 + $0x10] sm:$0xf] (!%p3334_p5), %v184_v4 }
  0x13   : > { %187 = vst [vmem:[#allocation2 + $0x14] sm:$0xf] (!%p3334_p5), %v186_v5  ;;  %v188_v6 = vld [vmem:[%s4884_s1 + $0xc] sm:$0xf] (!%p3334_p5)  ;;  %v190_v7 = vld [vmem:[%s4884_s1 + $0x1c] sm:$0xff] (!%p3334_p5)  }
  0x14   : > { %v194_v8 = vld [vmem:[%s4884_s1 + $0x30] sm:$0xf] (!%p3334_p5)  ;;  %189 = vst [vmem:[#allocation2 + $0x18] sm:$0xf] (!%p3334_p5), %v188_v6  ;;  %191 = vst [vmem:[#allocation2 + $0x1c] sm:$0xff] (!%p3334_p5), %v190_v7   ;;  %v206_v14 = vld [vmem:[%s4884_s1 + $0x3c] sm:$0xff] (!%p3334_p5)  }
  0x15   : > { %195 = vst [vmem:[#allocation2 + $0x24] sm:$0xf] %v194_v8  ;;  %v196_v9 = vld [vmem:[%s4884_s1 + $0x24] sm:$0xf]  ;;  %v198_v10 = vld [vmem:[%s4884_s1 + $0x34] sm:$0xf] }
  0x16   : > { %v200_v11 = vld [vmem:[%s4884_s1 + $0x28] sm:$0xf]  ;;  %197 = vst [vmem:[#allocation2 + $0x28] sm:$0xf] %v196_v9  ;;  %199 = vst [vmem:[#allocation2 + $0x2c] sm:$0xf] %v198_v10 }
  0x17   : > { %201 = vst [vmem:[#allocation2 + $0x30] sm:$0xf] %v200_v11  ;;  %v202_v12 = vld [vmem:[%s4884_s1 + $0x38] sm:$0xf]  ;;  %v204_v13 = vld [vmem:[%s4884_s1 + $0x2c] sm:$0xf] }
  0x18   : > { %203 = vst [vmem:[#allocation2 + $0x34] sm:$0xf] %v202_v12  ;;  %205 = vst [vmem:[#allocation2 + $0x38] sm:$0xf] %v204_v13  ;;  %v210_v15 = vld [vmem:[%s4884_s1 + $0x50] sm:$0xf] }
  0x19   : > { %207 = vst [vmem:[#allocation2 + $0x3c] sm:$0xff] %v206_v14   ;;  %v212_v16 = vld [vmem:[%s4884_s1 + $0x44] sm:$0xf]  ;;  %v214_v17 = vld [vmem:[%s4884_s1 + $0x54] sm:$0xf]  ;;  %v222_v21 = vld [vmem:[%s4884_s1 + $0x5c] sm:$0xff]  }
  0x1a   : > { %211 = vst [vmem:[#allocation2 + $0x44] sm:$0xf] %v210_v15  ;;  %213 = vst [vmem:[#allocation2 + $0x48] sm:$0xf] %v212_v16  ;;  %v216_v18 = vld [vmem:[%s4884_s1 + $0x48] sm:$0xf] }
  0x1b   : > { %215 = vst [vmem:[#allocation2 + $0x4c] sm:$0xf] %v214_v17  ;;  %v218_v19 = vld [vmem:[%s4884_s1 + $0x58] sm:$0xf]  ;;  %v220_v20 = vld [vmem:[%s4884_s1 + $0x4c] sm:$0xf] }
  0x1c   : > { %217 = vst [vmem:[#allocation2 + $0x50] sm:$0xf] %v216_v18  ;;  %219 = vst [vmem:[#allocation2 + $0x54] sm:$0xf] %v218_v19  ;;  %v226_v22 = vld [vmem:[%s4884_s1 + $0x70] sm:$0xf] }
  0x1d   : > { %221 = vst [vmem:[#allocation2 + $0x58] sm:$0xf] %v220_v20  ;;  %v228_v23 = vld [vmem:[%s4884_s1 + $0x64] sm:$0xf]  ;;  %223 = vst [vmem:[#allocation2 + $0x5c] sm:$0xff] %v222_v21   ;;  %v238_v28 = vld [vmem:[%s4884_s1 + $0x7c] sm:$0xff]  }
  0x1e   : > { %227 = vst [vmem:[#allocation2 + $0x64] sm:$0xf] %v226_v22  ;;  %229 = vst [vmem:[#allocation2 + $0x68] sm:$0xf] %v228_v23  ;;  %v230_v24 = vld [vmem:[%s4884_s1 + $0x74] sm:$0xf] }
  0x1f   : > { %v232_v25 = vld [vmem:[%s4884_s1 + $0x68] sm:$0xf]  ;;  %v234_v26 = vld [vmem:[%s4884_s1 + $0x78] sm:$0xf]  ;;  %231 = vst [vmem:[#allocation2 + $0x6c] sm:$0xf] %v230_v24 }
  0x20   : > { %233 = vst [vmem:[#allocation2 + $0x70] sm:$0xf] %v232_v25  ;;  %235 = vst [vmem:[#allocation2 + $0x74] sm:$0xf] %v234_v26  ;;  %v236_v27 = vld [vmem:[%s4884_s1 + $0x6c] sm:$0xf] }
  0x21   : > { %v242_v29 = vld [vmem:[%s4884_s1 + $0x90] sm:$0xf]  ;;  %237 = vst [vmem:[#allocation2 + $0x78] sm:$0xf] %v236_v27  ;;  %239 = vst [vmem:[#allocation2 + $0x7c] sm:$0xff] %v238_v28   ;;  %v254_v35 = vld [vmem:[%s4884_s1 + $0x9c] sm:$0xff]  }
  0x22   : > { %243 = vst [vmem:[#allocation2 + $0x84] sm:$0xf] %v242_v29  ;;  %v244_v30 = vld [vmem:[%s4884_s1 + $0x84] sm:$0xf]  ;;  %v246_v31 = vld [vmem:[%s4884_s1 + $0x94] sm:$0xf] }
  0x23   : > { %v248_v32 = vld [vmem:[%s4884_s1 + $0x88] sm:$0xf]  ;;  %245 = vst [vmem:[#allocation2 + $0x88] sm:$0xf] %v244_v30  ;;  %247 = vst [vmem:[#allocation2 + $0x8c] sm:$0xf] %v246_v31 }
  0x24   : > { %249 = vst [vmem:[#allocation2 + $0x90] sm:$0xf] %v248_v32  ;;  %v250_v33 = vld [vmem:[%s4884_s1 + $0x98] sm:$0xf]  ;;  %v252_v34 = vld [vmem:[%s4884_s1 + $0x8c] sm:$0xf] }
  0x25   : > { %251 = vst [vmem:[#allocation2 + $0x94] sm:$0xf] %v250_v33  ;;  %253 = vst [vmem:[#allocation2 + $0x98] sm:$0xf] %v252_v34  ;;  %v258_v36 = vld [vmem:[%s4884_s1 + $0xb0] sm:$0xf] }
  0x26   : > { %255 = vst [vmem:[#allocation2 + $0x9c] sm:$0xff] %v254_v35   ;;  %v260_v37 = vld [vmem:[%s4884_s1 + $0xa4] sm:$0xf]  ;;  %v262_v38 = vld [vmem:[%s4884_s1 + $0xb4] sm:$0xf]  ;;  %v270_v42 = vld [vmem:[%s4884_s1 + $0xbc] sm:$0xff]  }
  0x27   : > { %259 = vst [vmem:[#allocation2 + $0xa4] sm:$0xf] %v258_v36  ;;  %261 = vst [vmem:[#allocation2 + $0xa8] sm:$0xf] %v260_v37  ;;  %v264_v39 = vld [vmem:[%s4884_s1 + $0xa8] sm:$0xf] }
  0x28   : > { %263 = vst [vmem:[#allocation2 + $0xac] sm:$0xf] %v262_v38  ;;  %v266_v40 = vld [vmem:[%s4884_s1 + $0xb8] sm:$0xf]  ;;  %v268_v41 = vld [vmem:[%s4884_s1 + $0xac] sm:$0xf] }
  0x29   : > { %265 = vst [vmem:[#allocation2 + $0xb0] sm:$0xf] %v264_v39  ;;  %267 = vst [vmem:[#allocation2 + $0xb4] sm:$0xf] %v266_v40  ;;  %v274_v43 = vld [vmem:[%s4884_s1 + $0xd0] sm:$0xf] }
  0x2a   : > { %269 = vst [vmem:[#allocation2 + $0xb8] sm:$0xf] %v268_v41  ;;  %v276_v44 = vld [vmem:[%s4884_s1 + $0xc4] sm:$0xf]  ;;  %271 = vst [vmem:[#allocation2 + $0xbc] sm:$0xff] %v270_v42   ;;  %v286_v49 = vld [vmem:[%s4884_s1 + $0xdc] sm:$0xff]  }
  0x2b   : > { %275 = vst [vmem:[#allocation2 + $0xc4] sm:$0xf] %v274_v43  ;;  %277 = vst [vmem:[#allocation2 + $0xc8] sm:$0xf] %v276_v44  ;;  %v278_v45 = vld [vmem:[%s4884_s1 + $0xd4] sm:$0xf] }
  0x2c   : > { %v280_v46 = vld [vmem:[%s4884_s1 + $0xc8] sm:$0xf]  ;;  %v282_v47 = vld [vmem:[%s4884_s1 + $0xd8] sm:$0xf]  ;;  %279 = vst [vmem:[#allocation2 + $0xcc] sm:$0xf] %v278_v45 }
  0x2d   : > { %281 = vst [vmem:[#allocation2 + $0xd0] sm:$0xf] %v280_v46  ;;  %283 = vst [vmem:[#allocation2 + $0xd4] sm:$0xf] %v282_v47  ;;  %v284_v48 = vld [vmem:[%s4884_s1 + $0xcc] sm:$0xf] }
  0x2e   : > { %v290_v50 = vld [vmem:[%s4884_s1 + $0xf0] sm:$0xf]  ;;  %285 = vst [vmem:[#allocation2 + $0xd8] sm:$0xf] %v284_v48  ;;  %287 = vst [vmem:[#allocation2 + $0xdc] sm:$0xff] %v286_v49  }
  0x2f   : > { %291 = vst [vmem:[#allocation2 + $0xe4] sm:$0xf] %v290_v50  ;;  %v292_v51 = vld [vmem:[%s4884_s1 + $0xe4] sm:$0xf]  ;;  %v294_v52 = vld [vmem:[%s4884_s1 + $0xf4] sm:$0xf] }
  0x30   : > { %v296_v53 = vld [vmem:[%s4884_s1 + $0xe8] sm:$0xf]  ;;  %293 = vst [vmem:[#allocation2 + $0xe8] sm:$0xf] %v292_v51  ;;  %295 = vst [vmem:[#allocation2 + $0xec] sm:$0xf] %v294_v52 }
  0x31   : > { %297 = vst [vmem:[#allocation2 + $0xf0] sm:$0xf] %v296_v53  ;;  %v298_v54 = vld [vmem:[%s4884_s1 + $0xf8] sm:$0xf]  ;;  %v300_v55 = vld [vmem:[%s4884_s1 + $0xec] sm:$0xf] }
  0x32   : > { %v302_v56 = vld [vmem:[%s4884_s1 + $0xfc] sm:$0xf]  ;;  %299 = vst [vmem:[#allocation2 + $0xf4] sm:$0xf] %v298_v54  ;;  %301 = vst [vmem:[#allocation2 + $0xf8] sm:$0xf] %v300_v55 }
  0x33   : > { %303 = vst [vmem:[#allocation2 + $0xfc] sm:$0xf] %v302_v56 }
  0x34   : > { %462 = vsyncadd [#allocation5], 4096  ;;  %v481_v57 = vld [vmem:[%s4885_s2] sm:$0xf]  ;;  %v483_v58 = vld [vmem:[%s4885_s2 + $0x10] sm:$0xf] }
  0x35   : > { %482 = vst [vmem:[#allocation3] sm:$0xf] %v481_v57  ;;  %484 = vst [vmem:[#allocation3 + $0x4] sm:$0xf] %v483_v58  ;;  %v485_v59 = vld [vmem:[%s4885_s2 + $0x4] sm:$0xf] }
  0x36   : > { %v487_v60 = vld [vmem:[%s4885_s2 + $0x14] sm:$0xf]  ;;  %v489_v61 = vld [vmem:[%s4885_s2 + $0x8] sm:$0xf]  ;;  %486 = vst [vmem:[#allocation3 + $0x8] sm:$0xf] %v485_v59 }
  0x37   : > { %488 = vst [vmem:[#allocation3 + $0xc] sm:$0xf] %v487_v60  ;;  %490 = vst [vmem:[#allocation3 + $0x10] sm:$0xf] %v489_v61  ;;  %v491_v62 = vld [vmem:[%s4885_s2 + $0x18] sm:$0xf] }
  0x38   : > { %v493_v63 = vld [vmem:[%s4885_s2 + $0xc] sm:$0xf]  ;;  %v495_v0 = vld [vmem:[%s4885_s2 + $0x1c] sm:$0xff]   ;;  %492 = vst [vmem:[#allocation3 + $0x14] sm:$0xf] %v491_v62 }
  0x39   : > { %494 = vst [vmem:[#allocation3 + $0x18] sm:$0xf] %v493_v63  ;;  %496 = vst [vmem:[#allocation3 + $0x1c] sm:$0xff] %v495_v0   ;;  %v499_v1 = vld [vmem:[%s4885_s2 + $0x30] sm:$0xf]  ;;  %v511_v7 = vld [vmem:[%s4885_s2 + $0x3c] sm:$0xff]  }
  0x3a   : > { %v501_v2 = vld [vmem:[%s4885_s2 + $0x24] sm:$0xf]  ;;  %v503_v3 = vld [vmem:[%s4885_s2 + $0x34] sm:$0xf]  ;;  %500 = vst [vmem:[#allocation3 + $0x24] sm:$0xf] %v499_v1 }
  0x3b   : > { %502 = vst [vmem:[#allocation3 + $0x28] sm:$0xf] %v501_v2  ;;  %504 = vst [vmem:[#allocation3 + $0x2c] sm:$0xf] %v503_v3  ;;  %v505_v4 = vld [vmem:[%s4885_s2 + $0x28] sm:$0xf] }
  0x3c   : > { %v507_v5 = vld [vmem:[%s4885_s2 + $0x38] sm:$0xf]  ;;  %v509_v6 = vld [vmem:[%s4885_s2 + $0x2c] sm:$0xf]  ;;  %506 = vst [vmem:[#allocation3 + $0x30] sm:$0xf] %v505_v4 }
  0x3d   : > { %508 = vst [vmem:[#allocation3 + $0x34] sm:$0xf] %v507_v5  ;;  %510 = vst [vmem:[#allocation3 + $0x38] sm:$0xf] %v509_v6  ;;  %v515_v8 = vld [vmem:[%s4885_s2 + $0x50] sm:$0xf] }
  0x3e   : > { %v517_v9 = vld [vmem:[%s4885_s2 + $0x44] sm:$0xf]  ;;  %512 = vst [vmem:[#allocation3 + $0x3c] sm:$0xff] %v511_v7   ;;  %516 = vst [vmem:[#allocation3 + $0x44] sm:$0xf] %v515_v8  ;;  %v527_v14 = vld [vmem:[%s4885_s2 + $0x5c] sm:$0xff]  }
  0x3f   : > { %518 = vst [vmem:[#allocation3 + $0x48] sm:$0xf] %v517_v9  ;;  %v519_v10 = vld [vmem:[%s4885_s2 + $0x54] sm:$0xf]  ;;  %v521_v11 = vld [vmem:[%s4885_s2 + $0x48] sm:$0xf] }
  0x40   : > { %v523_v12 = vld [vmem:[%s4885_s2 + $0x58] sm:$0xf]  ;;  %520 = vst [vmem:[#allocation3 + $0x4c] sm:$0xf] %v519_v10  ;;  %522 = vst [vmem:[#allocation3 + $0x50] sm:$0xf] %v521_v11 }
  0x41   : > { %524 = vst [vmem:[#allocation3 + $0x54] sm:$0xf] %v523_v12  ;;  %v525_v13 = vld [vmem:[%s4885_s2 + $0x4c] sm:$0xf]  ;;  %v531_v15 = vld [vmem:[%s4885_s2 + $0x70] sm:$0xf] }
  0x42   : > { %526 = vst [vmem:[#allocation3 + $0x58] sm:$0xf] %v525_v13  ;;  %528 = vst [vmem:[#allocation3 + $0x5c] sm:$0xff] %v527_v14   ;;  %v533_v16 = vld [vmem:[%s4885_s2 + $0x64] sm:$0xf]  ;;  %v543_v21 = vld [vmem:[%s4885_s2 + $0x7c] sm:$0xff]  }
  0x43   : > { %532 = vst [vmem:[#allocation3 + $0x64] sm:$0xf] %v531_v15  ;;  %v535_v17 = vld [vmem:[%s4885_s2 + $0x74] sm:$0xf]  ;;  %v537_v18 = vld [vmem:[%s4885_s2 + $0x68] sm:$0xf] }
  0x44   : > { %534 = vst [vmem:[#allocation3 + $0x68] sm:$0xf] %v533_v16  ;;  %536 = vst [vmem:[#allocation3 + $0x6c] sm:$0xf] %v535_v17  ;;  %v539_v19 = vld [vmem:[%s4885_s2 + $0x78] sm:$0xf] }
  0x45   : > { %538 = vst [vmem:[#allocation3 + $0x70] sm:$0xf] %v537_v18  ;;  %v541_v20 = vld [vmem:[%s4885_s2 + $0x6c] sm:$0xf]  ;;  %540 = vst [vmem:[#allocation3 + $0x74] sm:$0xf] %v539_v19 }
  0x46   : > { %542 = vst [vmem:[#allocation3 + $0x78] sm:$0xf] %v541_v20  ;;  %544 = vst [vmem:[#allocation3 + $0x7c] sm:$0xff] %v543_v21   ;;  %v547_v22 = vld [vmem:[%s4885_s2 + $0x90] sm:$0xf]  ;;  %v559_v28 = vld [vmem:[%s4885_s2 + $0x9c] sm:$0xff]  }
  0x47   : > { %v549_v23 = vld [vmem:[%s4885_s2 + $0x84] sm:$0xf]  ;;  %v551_v24 = vld [vmem:[%s4885_s2 + $0x94] sm:$0xf]  ;;  %548 = vst [vmem:[#allocation3 + $0x84] sm:$0xf] %v547_v22 }
  0x48   : > { %550 = vst [vmem:[#allocation3 + $0x88] sm:$0xf] %v549_v23  ;;  %552 = vst [vmem:[#allocation3 + $0x8c] sm:$0xf] %v551_v24  ;;  %v553_v25 = vld [vmem:[%s4885_s2 + $0x88] sm:$0xf] }
  0x49   : > { %v555_v26 = vld [vmem:[%s4885_s2 + $0x98] sm:$0xf]  ;;  %v557_v27 = vld [vmem:[%s4885_s2 + $0x8c] sm:$0xf]  ;;  %554 = vst [vmem:[#allocation3 + $0x90] sm:$0xf] %v553_v25 }
  0x4a   : > { %556 = vst [vmem:[#allocation3 + $0x94] sm:$0xf] %v555_v26  ;;  %558 = vst [vmem:[#allocation3 + $0x98] sm:$0xf] %v557_v27  ;;  %v563_v29 = vld [vmem:[%s4885_s2 + $0xb0] sm:$0xf] }
  0x4b   : > { %v565_v30 = vld [vmem:[%s4885_s2 + $0xa4] sm:$0xf]  ;;  %560 = vst [vmem:[#allocation3 + $0x9c] sm:$0xff] %v559_v28   ;;  %564 = vst [vmem:[#allocation3 + $0xa4] sm:$0xf] %v563_v29  ;;  %v575_v35 = vld [vmem:[%s4885_s2 + $0xbc] sm:$0xff]  }
  0x4c   : > { %566 = vst [vmem:[#allocation3 + $0xa8] sm:$0xf] %v565_v30  ;;  %v567_v31 = vld [vmem:[%s4885_s2 + $0xb4] sm:$0xf]  ;;  %v569_v32 = vld [vmem:[%s4885_s2 + $0xa8] sm:$0xf] }
  0x4d   : > { %v571_v33 = vld [vmem:[%s4885_s2 + $0xb8] sm:$0xf]  ;;  %568 = vst [vmem:[#allocation3 + $0xac] sm:$0xf] %v567_v31  ;;  %570 = vst [vmem:[#allocation3 + $0xb0] sm:$0xf] %v569_v32 }
  0x4e   : > { %572 = vst [vmem:[#allocation3 + $0xb4] sm:$0xf] %v571_v33  ;;  %v573_v34 = vld [vmem:[%s4885_s2 + $0xac] sm:$0xf]  ;;  %v579_v36 = vld [vmem:[%s4885_s2 + $0xd0] sm:$0xf] }
  0x4f   : > { %574 = vst [vmem:[#allocation3 + $0xb8] sm:$0xf] %v573_v34  ;;  %576 = vst [vmem:[#allocation3 + $0xbc] sm:$0xff] %v575_v35   ;;  %v581_v37 = vld [vmem:[%s4885_s2 + $0xc4] sm:$0xf]  ;;  %v591_v42 = vld [vmem:[%s4885_s2 + $0xdc] sm:$0xff]  }
  0x50   : > { %580 = vst [vmem:[#allocation3 + $0xc4] sm:$0xf] %v579_v36  ;;  %v583_v38 = vld [vmem:[%s4885_s2 + $0xd4] sm:$0xf]  ;;  %v585_v39 = vld [vmem:[%s4885_s2 + $0xc8] sm:$0xf] }
  0x51   : > { %582 = vst [vmem:[#allocation3 + $0xc8] sm:$0xf] %v581_v37  ;;  %584 = vst [vmem:[#allocation3 + $0xcc] sm:$0xf] %v583_v38  ;;  %v587_v40 = vld [vmem:[%s4885_s2 + $0xd8] sm:$0xf] }
  0x52   : > { %586 = vst [vmem:[#allocation3 + $0xd0] sm:$0xf] %v585_v39  ;;  %v589_v41 = vld [vmem:[%s4885_s2 + $0xcc] sm:$0xf]  ;;  %588 = vst [vmem:[#allocation3 + $0xd4] sm:$0xf] %v587_v40 }
  0x53   : > { %590 = vst [vmem:[#allocation3 + $0xd8] sm:$0xf] %v589_v41  ;;  %592 = vst [vmem:[#allocation3 + $0xdc] sm:$0xff] %v591_v42   ;;  %v595_v43 = vld [vmem:[%s4885_s2 + $0xf0] sm:$0xf] }
  0x54   : > { %v597_v44 = vld [vmem:[%s4885_s2 + $0xe4] sm:$0xf]  ;;  %v599_v45 = vld [vmem:[%s4885_s2 + $0xf4] sm:$0xf]  ;;  %596 = vst [vmem:[#allocation3 + $0xe4] sm:$0xf] %v595_v43 }
  0x55   : > { %598 = vst [vmem:[#allocation3 + $0xe8] sm:$0xf] %v597_v44  ;;  %600 = vst [vmem:[#allocation3 + $0xec] sm:$0xf] %v599_v45  ;;  %v601_v46 = vld [vmem:[%s4885_s2 + $0xe8] sm:$0xf] }
  0x56   : > { %v603_v47 = vld [vmem:[%s4885_s2 + $0xf8] sm:$0xf]  ;;  %v605_v48 = vld [vmem:[%s4885_s2 + $0xec] sm:$0xf]  ;;  %602 = vst [vmem:[#allocation3 + $0xf0] sm:$0xf] %v601_v46 }
  0x57   : > { %604 = vst [vmem:[#allocation3 + $0xf4] sm:$0xf] %v603_v47  ;;  %606 = vst [vmem:[#allocation3 + $0xf8] sm:$0xf] %v605_v48  ;;  %v607_v49 = vld [vmem:[%s4885_s2 + $0xfc] sm:$0xf] }
  0x58   : > { %608 = vst [vmem:[#allocation3 + $0xfc] sm:$0xf] %v607_v49 }
  0x59   : > { %767 = vsyncadd [#allocation5 + $0x1], 4096  ;;  %v786_v50 = vld [vmem:[%s4886_s3] sm:$0xf] }
  0x5a   : > { %787 = vst [vmem:[#allocation4] sm:$0xf] %v786_v50 }
  0x5b   : > { %812 = vsyncadd [#allocation5 + $0x2], 64  ;;  %v3658_v51 = vmov 0.0  }
  0x5c   : > { %813 = vst [vmem:[#allocation7] sm:$0xff] %v3658_v51  ;;  %814 = vst [vmem:[#allocation8] sm:$0xff] %v3658_v51 }
  0x5d   : > { %3640 = dma.done.wait [#allocation5], 4096 }
  0x5e   : > { %3641 = vsyncadd [#allocation5], 4294963200 }
  0x5f   : > { %3642 = dma.done.wait [#allocation5 + $0x1], 4096 }
  0x60   : > { %3643 = vsyncadd [#allocation5 + $0x1], 4294963200 }
  0x61   : > { %3644 = dma.done.wait [#allocation5 + $0x2], 64 }
  0x62   : > { %3645 = vsyncadd [#allocation5 + $0x2], 4294967232 }
  0x63 PF: > { %v4068_v56 = vld [vmem:[#allocation2 + $0x28] sm:$0xff]  ;;  %v4070_v57 = vld [vmem:[#allocation2 + $0x38] sm:$0xff]  ;;  %v4078_v59 = vld [vmem:[#allocation2 + $0x30] sm:$0xff]  ;;  %v3659_v62 = vmov 0  }
  0x64   : > { %v4080_v60 = vld [vmem:[#allocation2 + $0x48] sm:$0xff]  ;;  %v4082_v61 = vld [vmem:[#allocation2 + $0x58] sm:$0xff]  ;;  %911 = vmatprep.mubr.bf16.mxu0 %v3659_v62  ;;  %952 = vmatprep.mubr.bf16.mxu1 %v3659_v62  ;;  %v4090_v63 = vld [vmem:[#allocation2 + $0x40] sm:$0xff] }
  0x65   : > { %v4062_v54 = vld [vmem:[#allocation2] sm:$0xff]  ;;  %v4092_v0 = vld [vmem:[#allocation2 + $0x50] sm:$0xff]  ;;  %v4094_v1 = vld [vmem:[#allocation2 + $0x68] sm:$0xff] }
  0x66   : > { %v4096_v2 = vld [vmem:[#allocation2 + $0x78] sm:$0xff]  ;;  %v4102_v3 = vld [vmem:[#allocation2 + $0x60] sm:$0xff]  ;;  %v4104_v4 = vld [vmem:[#allocation2 + $0x70] sm:$0xff] }
  0x67   : > { %v4058_v52 = vld [vmem:[#allocation2 + $0x8] sm:$0xff]  ;;  %v4108_v6 = vld [vmem:[#allocation2 + $0x98] sm:$0xff]  ;;  %v4114_v7 = vld [vmem:[#allocation2 + $0x80] sm:$0xff] }
  0x68   : > { %879 = vmatprep.subr.bf16.mxu0 %v4058_v52  ;;  %v4066_v55 = vld [vmem:[#allocation2 + $0x10] sm:$0xff]  ;;  %v4106_v5 = vld [vmem:[#allocation2 + $0x88] sm:$0xff]  ;;  %v4120_v10 = vld [vmem:[#allocation2 + $0xb8] sm:$0xff] }
  0x69   : > { %v4060_v53 = vld [vmem:[#allocation2 + $0x18] sm:$0xff]  ;;  %880 = vmatpush1.bf16.msra.mxu0 %v4062_v54  ;;  %v4116_v8 = vld [vmem:[#allocation2 + $0x90] sm:$0xff]  ;;  %v4118_v9 = vld [vmem:[#allocation2 + $0xa8] sm:$0xff] }
  0x6a   : > { %920 = vmatprep.subr.bf16.mxu1 %v4060_v53  ;;  %881 = vmatprep.subr.bf16.mxu0 %v4068_v56  ;;  %v4076_v58 = vld [vmem:[#allocation2 + $0x20] sm:$0xff]  ;;  %v4128_v12 = vld [vmem:[#allocation2 + $0xb0] sm:$0xff]  ;;  %v4130_v13 = vld [vmem:[#allocation2 + $0xc8] sm:$0xff] }
  0x6b   : > { %921 = vmatpush1.bf16.msra.mxu1 %v4066_v55  ;;  %v4126_v11 = vld [vmem:[#allocation2 + $0xa0] sm:$0xff]  ;;  %v4132_v14 = vld [vmem:[#allocation2 + $0xd8] sm:$0xff]  ;;  %v4140_v16 = vld [vmem:[#allocation2 + $0xd0] sm:$0xff] }
  0x6c   : > { %922 = vmatprep.subr.bf16.mxu1 %v4070_v57  ;;  %v4138_v15 = vld [vmem:[#allocation2 + $0xc0] sm:$0xff]  ;;  %v4142_v17 = vld [vmem:[#allocation2 + $0xe8] sm:$0xff]  ;;  %v4144_v18 = vld [vmem:[#allocation2 + $0xf8] sm:$0xff] }
  0x6d   : > { %882 = vmatpush1.bf16.msra.mxu0 %v4076_v58  ;;  %v4150_v19 = vld [vmem:[#allocation2 + $0xe0] sm:$0xff]  ;;  %v4152_v20 = vld [vmem:[#allocation2 + $0xf0] sm:$0xff]  ;;  %v3336_v23 = vld [vmem:[%s3706_s24 + $0x8] sm:$0xf] }
  0x6e   : > { %883 = vmatprep.subr.bf16.mxu0 %v4080_v60  ;;  %v824_v21 = vld [vmem:[%s3706_s24] sm:$0xf]  ;;  %v3335_v22 = vld [vmem:[%s3706_s24 + $0x4] sm:$0xf]  ;;  %v3337_v24 = vld [vmem:[%s3706_s24 + $0xc] sm:$0xf] }
  0x6f   : > { %923 = vmatpush1.bf16.msra.mxu1 %v4078_v59  ;;  %v3338_v25 = vld [vmem:[%s3706_s24 + $0x10] sm:$0xf]  ;;  %v3339_v26 = vld [vmem:[%s3706_s24 + $0x14] sm:$0xf]  ;;  %v3340_v27 = vld [vmem:[%s3706_s24 + $0x18] sm:$0xf] }
  0x70   : > { %924 = vmatprep.subr.bf16.mxu1 %v4082_v61  ;;  %v4399_v28 = vld [vmem:[#allocation3 + $0x8] sm:$0xff]  ;;  %v4401_v29 = vld [vmem:[#allocation3 + $0x18] sm:$0xff]  ;;  %v4408_v31 = vld [vmem:[#allocation3] sm:$0xff] }
  0x71   : > { %884 = vmatpush1.bf16.msra.mxu0 %v4090_v63  ;;  %v3341_v30 = vld [vmem:[%s3706_s24 + $0x1c] sm:$0xf]  ;;  %v4410_v32 = vld [vmem:[#allocation3 + $0x10] sm:$0xff]  ;;  %v4412_v33 = vld [vmem:[#allocation3 + $0x28] sm:$0xff] }
  0x72   : > { %885 = vmatprep.subr.bf16.mxu0 %v4094_v1  ;;  %v4414_v34 = vld [vmem:[#allocation3 + $0x38] sm:$0xff]  ;;  %v4420_v35 = vld [vmem:[#allocation3 + $0x20] sm:$0xff]  ;;  %v4422_v36 = vld [vmem:[#allocation3 + $0x30] sm:$0xff] }
  0x73   : > { %925 = vmatpush1.bf16.msra.mxu1 %v4092_v0  ;;  %v4424_v37 = vld [vmem:[#allocation3 + $0x48] sm:$0xff]  ;;  %v4426_v38 = vld [vmem:[#allocation3 + $0x58] sm:$0xff]  ;;  %v4434_v39 = vld [vmem:[#allocation3 + $0x40] sm:$0xff] }
  0x74   : > { %926 = vmatprep.subr.bf16.mxu1 %v4096_v2  ;;  %v4436_v40 = vld [vmem:[#allocation3 + $0x50] sm:$0xff]  ;;  %v4438_v41 = vld [vmem:[#allocation3 + $0x68] sm:$0xff]  ;;  %v4440_v42 = vld [vmem:[#allocation3 + $0x78] sm:$0xff] }
  0x75   : > { %886 = vmatpush1.bf16.msra.mxu0 %v4102_v3  ;;  %v4446_v43 = vld [vmem:[#allocation3 + $0x60] sm:$0xff]  ;;  %v4448_v44 = vld [vmem:[#allocation3 + $0x70] sm:$0xff]  ;;  %v4450_v45 = vld [vmem:[#allocation3 + $0x88] sm:$0xff] }
  0x76   : > { %887 = vmatprep.subr.bf16.mxu0 %v4106_v5  ;;  %v4452_v46 = vld [vmem:[#allocation3 + $0x98] sm:$0xff]  ;;  %v4458_v47 = vld [vmem:[#allocation3 + $0x80] sm:$0xff]  ;;  %v4460_v48 = vld [vmem:[#allocation3 + $0x90] sm:$0xff] }
  0x77   : > { %927 = vmatpush1.bf16.msra.mxu1 %v4104_v4  ;;  %v4462_v49 = vld [vmem:[#allocation3 + $0xa8] sm:$0xff]  ;;  %v4464_v50 = vld [vmem:[#allocation3 + $0xb8] sm:$0xff]  ;;  %v4470_v51 = vld [vmem:[#allocation3 + $0xa0] sm:$0xff] }
  0x78   : > { %928 = vmatprep.subr.bf16.mxu1 %v4108_v6 }
  0x79   : > { %888 = vmatpush1.bf16.msra.mxu0 %v4114_v7 }
  0x7a   : > { %889 = vmatprep.subr.bf16.mxu0 %v4118_v9 }
  0x7b   : > { %929 = vmatpush1.bf16.msra.mxu1 %v4116_v8 }
  0x7c   : > { %930 = vmatprep.subr.bf16.mxu1 %v4120_v10 }
  0x7d   : > { %890 = vmatpush1.bf16.msra.mxu0 %v4126_v11 }
  0x7e   : > { %891 = vmatprep.subr.bf16.mxu0 %v4130_v13 }
  0x7f   : > { %931 = vmatpush1.bf16.msra.mxu1 %v4128_v12 }
  0x80   : > { %932 = vmatprep.subr.bf16.mxu1 %v4132_v14 }
  0x81   : > { %892 = vmatpush1.bf16.msra.mxu0 %v4138_v15 }
  0x82   : > { %893 = vmatprep.subr.bf16.mxu0 %v4142_v17 }
  0x83   : > { %933 = vmatpush1.bf16.msra.mxu1 %v4140_v16 }
  0x84   : > { %934 = vmatprep.subr.bf16.mxu1 %v4144_v18 }
  0x85   : > { %894 = vmatpush1.bf16.msra.mxu0 %v4150_v19 }
  0x86   : > { %1021 = vmatprep.subr.bf16.mxu0 %v4058_v52 }
  0x87   : > { %935 = vmatpush1.bf16.msra.mxu1 %v4152_v20 }
  0x88   : > { %1062 = vmatprep.subr.bf16.mxu1 %v4060_v53  ;;  %912 = vmatmul.mubr.bf16.vlgmr.msra.gmra.mrb[0].mxu0 %v824_v21 }
  0x89   : > { %1022 = vmatpush1.bf16.msra.mxu0 %v4062_v54  ;;  %1053 = vmatprep.mubr.bf16.mxu0 %v3659_v62 }
  0x8a   : > { %953 = vmatmul.mubr.bf16.vlgmr.msra.gmra.mrb[0].mxu1 %v824_v21  ;;  %1023 = vmatprep.subr.bf16.mxu0 %v4068_v56 }
  0x8b   : > { %1063 = vmatpush1.bf16.msra.mxu1 %v4066_v55  ;;  %1094 = vmatprep.mubr.bf16.mxu1 %v3659_v62 }
  0x8c   : > { %1064 = vmatprep.subr.bf16.mxu1 %v4070_v57 }
  0x8d   : > { %1024 = vmatpush1.bf16.msra.mxu0 %v4076_v58 }
  0x8e   : > { %1025 = vmatprep.subr.bf16.mxu0 %v4080_v60 }
  0x8f   : > { %1065 = vmatpush1.bf16.msra.mxu1 %v4078_v59 }
  0x90   : > { %1066 = vmatprep.subr.bf16.mxu1 %v4082_v61 }
  0x91   : > { %1026 = vmatpush1.bf16.msra.mxu0 %v4090_v63 }
  0x92   : > { %1027 = vmatprep.subr.bf16.mxu0 %v4094_v1 }
  0x93   : > { %1067 = vmatpush1.bf16.msra.mxu1 %v4092_v0 }
  0x94   : > { %1068 = vmatprep.subr.bf16.mxu1 %v4096_v2 }
  0x95   : > { %1028 = vmatpush1.bf16.msra.mxu0 %v4102_v3 }
  0x96   : > { %1029 = vmatprep.subr.bf16.mxu0 %v4106_v5 }
  0x97   : > { %1069 = vmatpush1.bf16.msra.mxu1 %v4104_v4 }
  0x98   : > { %1070 = vmatprep.subr.bf16.mxu1 %v4108_v6 }
  0x99   : > { %1030 = vmatpush1.bf16.msra.mxu0 %v4114_v7 }
  0x9a   : > { %1031 = vmatprep.subr.bf16.mxu0 %v4118_v9 }
  0x9b   : > { %1071 = vmatpush1.bf16.msra.mxu1 %v4116_v8 }
  0x9c   : > { %1072 = vmatprep.subr.bf16.mxu1 %v4120_v10 }
  0x9d   : > { %1032 = vmatpush1.bf16.msra.mxu0 %v4126_v11 }
  0x9e   : > { %1033 = vmatprep.subr.bf16.mxu0 %v4130_v13 }
  0x9f   : > { %1073 = vmatpush1.bf16.msra.mxu1 %v4128_v12 }
  0xa0   : > { %1074 = vmatprep.subr.bf16.mxu1 %v4132_v14 }
  0xa1   : > { %1034 = vmatpush1.bf16.msra.mxu0 %v4138_v15 }
  0xa2   : > { %1035 = vmatprep.subr.bf16.mxu0 %v4142_v17 }
  0xa3   : > { %1075 = vmatpush1.bf16.msra.mxu1 %v4140_v16 }
  0xa4   : > { %1076 = vmatprep.subr.bf16.mxu1 %v4144_v18 }
  0xa5   : > { %1036 = vmatpush1.bf16.msra.mxu0 %v4150_v19 }
  0xa6   : > { %1164 = vmatprep.subr.bf16.mxu0 %v4058_v52 }
  0xa7   : > { %1077 = vmatpush1.bf16.msra.mxu1 %v4152_v20 }
  0xa8   : > { %1205 = vmatprep.subr.bf16.mxu1 %v4060_v53  ;;  %1054 = vmatmul.mubr.bf16.vlgmr.msra.gmra.mrb[4].mxu0 %v3335_v22 }
  0xa9   : > { %1165 = vmatpush1.bf16.msra.mxu0 %v4062_v54  ;;  %1196 = vmatprep.mubr.bf16.mxu0 %v3659_v62 }
  0xaa   : > { %1095 = vmatmul.mubr.bf16.vlgmr.msra.gmra.mrb[4].mxu1 %v3335_v22  ;;  %1166 = vmatprep.subr.bf16.mxu0 %v4068_v56 }
  0xab   : > { %1206 = vmatpush1.bf16.msra.mxu1 %v4066_v55  ;;  %1237 = vmatprep.mubr.bf16.mxu1 %v3659_v62 }
  0xac   : > { %1207 = vmatprep.subr.bf16.mxu1 %v4070_v57 }
  0xad   : > { %1167 = vmatpush1.bf16.msra.mxu0 %v4076_v58 }
  0xae   : > { %1168 = vmatprep.subr.bf16.mxu0 %v4080_v60 }
  0xaf   : > { %1208 = vmatpush1.bf16.msra.mxu1 %v4078_v59 }
  0xb0   : > { %1209 = vmatprep.subr.bf16.mxu1 %v4082_v61 }
  0xb1   : > { %1169 = vmatpush1.bf16.msra.mxu0 %v4090_v63 }
  0xb2   : > { %1170 = vmatprep.subr.bf16.mxu0 %v4094_v1 }
  0xb3   : > { %1210 = vmatpush1.bf16.msra.mxu1 %v4092_v0 }
  0xb4   : > { %1211 = vmatprep.subr.bf16.mxu1 %v4096_v2 }
  0xb5   : > { %1171 = vmatpush1.bf16.msra.mxu0 %v4102_v3 }
  0xb6   : > { %1172 = vmatprep.subr.bf16.mxu0 %v4106_v5 }
  0xb7   : > { %1212 = vmatpush1.bf16.msra.mxu1 %v4104_v4 }
  0xb8   : > { %1213 = vmatprep.subr.bf16.mxu1 %v4108_v6 }
  0xb9   : > { %1173 = vmatpush1.bf16.msra.mxu0 %v4114_v7 }
  0xba   : > { %1174 = vmatprep.subr.bf16.mxu0 %v4118_v9 }
  0xbb   : > { %1214 = vmatpush1.bf16.msra.mxu1 %v4116_v8 }
  0xbc   : > { %1215 = vmatprep.subr.bf16.mxu1 %v4120_v10 }
  0xbd   : > { %1175 = vmatpush1.bf16.msra.mxu0 %v4126_v11 }
  0xbe   : > { %1176 = vmatprep.subr.bf16.mxu0 %v4130_v13 }
  0xbf   : > { %1216 = vmatpush1.bf16.msra.mxu1 %v4128_v12 }
  0xc0   : > { %1217 = vmatprep.subr.bf16.mxu1 %v4132_v14 }
  0xc1   : > { %1177 = vmatpush1.bf16.msra.mxu0 %v4138_v15 }
  0xc2   : > { %1178 = vmatprep.subr.bf16.mxu0 %v4142_v17 }
  0xc3   : > { %1218 = vmatpush1.bf16.msra.mxu1 %v4140_v16 }
  0xc4   : > { %1219 = vmatprep.subr.bf16.mxu1 %v4144_v18 }
  0xc5   : > { %1179 = vmatpush1.bf16.msra.mxu0 %v4150_v19 }
  0xc6   : > { %1307 = vmatprep.subr.bf16.mxu0 %v4058_v52 }
  0xc7   : > { %1220 = vmatpush1.bf16.msra.mxu1 %v4152_v20 }
  0xc8   : > { %1348 = vmatprep.subr.bf16.mxu1 %v4060_v53  ;;  %1197 = vmatmul.mubr.bf16.vlgmr.msra.gmra.mrb[8].mxu0 %v3336_v23 }
  0xc9   : > { %1308 = vmatpush1.bf16.msra.mxu0 %v4062_v54  ;;  %1339 = vmatprep.mubr.bf16.mxu0 %v3659_v62 }
  0xca   : > { %1238 = vmatmul.mubr.bf16.vlgmr.msra.gmra.mrb[8].mxu1 %v3336_v23  ;;  %1309 = vmatprep.subr.bf16.mxu0 %v4068_v56 }
  0xcb   : > { %1349 = vmatpush1.bf16.msra.mxu1 %v4066_v55  ;;  %1380 = vmatprep.mubr.bf16.mxu1 %v3659_v62 }
  0xcc   : > { %1350 = vmatprep.subr.bf16.mxu1 %v4070_v57 }
  0xcd   : > { %1310 = vmatpush1.bf16.msra.mxu0 %v4076_v58 }
  0xce   : > { %1311 = vmatprep.subr.bf16.mxu0 %v4080_v60 }
  0xcf   : > { %1351 = vmatpush1.bf16.msra.mxu1 %v4078_v59 }
  0xd0   : > { %1352 = vmatprep.subr.bf16.mxu1 %v4082_v61 }
  0xd1   : > { %1312 = vmatpush1.bf16.msra.mxu0 %v4090_v63 }
  0xd2   : > { %1313 = vmatprep.subr.bf16.mxu0 %v4094_v1 }
  0xd3   : > { %1353 = vmatpush1.bf16.msra.mxu1 %v4092_v0 }
  0xd4   : > { %1354 = vmatprep.subr.bf16.mxu1 %v4096_v2 }
  0xd5   : > { %1314 = vmatpush1.bf16.msra.mxu0 %v4102_v3 }
  0xd6   : > { %1315 = vmatprep.subr.bf16.mxu0 %v4106_v5 }
  0xd7   : > { %1355 = vmatpush1.bf16.msra.mxu1 %v4104_v4 }
  0xd8   : > { %1356 = vmatprep.subr.bf16.mxu1 %v4108_v6 }
  0xd9   : > { %1316 = vmatpush1.bf16.msra.mxu0 %v4114_v7 }
  0xda   : > { %1317 = vmatprep.subr.bf16.mxu0 %v4118_v9 }
  0xdb   : > { %1357 = vmatpush1.bf16.msra.mxu1 %v4116_v8 }
  0xdc   : > { %1358 = vmatprep.subr.bf16.mxu1 %v4120_v10 }
  0xdd   : > { %1318 = vmatpush1.bf16.msra.mxu0 %v4126_v11 }
  0xde   : > { %1319 = vmatprep.subr.bf16.mxu0 %v4130_v13 }
  0xdf   : > { %1359 = vmatpush1.bf16.msra.mxu1 %v4128_v12 }
  0xe0   : > { %1360 = vmatprep.subr.bf16.mxu1 %v4132_v14 }
  0xe1   : > { %1320 = vmatpush1.bf16.msra.mxu0 %v4138_v15 }
  0xe2   : > { %1321 = vmatprep.subr.bf16.mxu0 %v4142_v17 }
  0xe3   : > { %1361 = vmatpush1.bf16.msra.mxu1 %v4140_v16 }
  0xe4   : > { %1362 = vmatprep.subr.bf16.mxu1 %v4144_v18 }
  0xe5   : > { %1322 = vmatpush1.bf16.msra.mxu0 %v4150_v19 }
  0xe6   : > { %1450 = vmatprep.subr.bf16.mxu0 %v4058_v52 }
  0xe7   : > { %1363 = vmatpush1.bf16.msra.mxu1 %v4152_v20 }
  0xe8   : > { %1491 = vmatprep.subr.bf16.mxu1 %v4060_v53  ;;  %1340 = vmatmul.mubr.bf16.vlgmr.msra.gmra.mrb[12].mxu0 %v3337_v24 }
  0xe9   : > { %1451 = vmatpush1.bf16.msra.mxu0 %v4062_v54  ;;  %1482 = vmatprep.mubr.bf16.mxu0 %v3659_v62 }
  0xea   : > { %1381 = vmatmul.mubr.bf16.vlgmr.msra.gmra.mrb[12].mxu1 %v3337_v24  ;;  %1452 = vmatprep.subr.bf16.mxu0 %v4068_v56 }
  0xeb   : > { %1492 = vmatpush1.bf16.msra.mxu1 %v4066_v55  ;;  %1523 = vmatprep.mubr.bf16.mxu1 %v3659_v62 }
  0xec   : > { %1493 = vmatprep.subr.bf16.mxu1 %v4070_v57 }
  0xed   : > { %1453 = vmatpush1.bf16.msra.mxu0 %v4076_v58 }
  0xee   : > { %1454 = vmatprep.subr.bf16.mxu0 %v4080_v60 }
  0xef   : > { %1494 = vmatpush1.bf16.msra.mxu1 %v4078_v59 }
  0xf0   : > { %1495 = vmatprep.subr.bf16.mxu1 %v4082_v61 }
  0xf1   : > { %1455 = vmatpush1.bf16.msra.mxu0 %v4090_v63 }
  0xf2   : > { %1456 = vmatprep.subr.bf16.mxu0 %v4094_v1 }
  0xf3   : > { %1496 = vmatpush1.bf16.msra.mxu1 %v4092_v0 }
  0xf4   : > { %1497 = vmatprep.subr.bf16.mxu1 %v4096_v2 }
  0xf5   : > { %1457 = vmatpush1.bf16.msra.mxu0 %v4102_v3 }
  0xf6   : > { %1458 = vmatprep.subr.bf16.mxu0 %v4106_v5 }
  0xf7   : > { %1498 = vmatpush1.bf16.msra.mxu1 %v4104_v4 }
  0xf8   : > { %1499 = vmatprep.subr.bf16.mxu1 %v4108_v6 }
  0xf9   : > { %1459 = vmatpush1.bf16.msra.mxu0 %v4114_v7 }
  0xfa   : > { %1460 = vmatprep.subr.bf16.mxu0 %v4118_v9 }
  0xfb   : > { %1500 = vmatpush1.bf16.msra.mxu1 %v4116_v8 }
  0xfc   : > { %1501 = vmatprep.subr.bf16.mxu1 %v4120_v10 }
  0xfd   : > { %1461 = vmatpush1.bf16.msra.mxu0 %v4126_v11 }
  0xfe   : > { %1462 = vmatprep.subr.bf16.mxu0 %v4130_v13 }
  0xff   : > { %1502 = vmatpush1.bf16.msra.mxu1 %v4128_v12 }
 0x100   : > { %1503 = vmatprep.subr.bf16.mxu1 %v4132_v14 }
 0x101   : > { %1463 = vmatpush1.bf16.msra.mxu0 %v4138_v15 }
 0x102   : > { %1464 = vmatprep.subr.bf16.mxu0 %v4142_v17 }
 0x103   : > { %1504 = vmatpush1.bf16.msra.mxu1 %v4140_v16 }
 0x104   : > { %1505 = vmatprep.subr.bf16.mxu1 %v4144_v18 }
 0x105   : > { %1465 = vmatpush1.bf16.msra.mxu0 %v4150_v19 }
 0x106   : > { %1593 = vmatprep.subr.bf16.mxu0 %v4058_v52 }
 0x107   : > { %1506 = vmatpush1.bf16.msra.mxu1 %v4152_v20 }
 0x108   : > { %1634 = vmatprep.subr.bf16.mxu1 %v4060_v53  ;;  %1483 = vmatmul.mubr.bf16.vlgmr.msra.gmra.mrb[16].mxu0 %v3338_v25 }
 0x109   : > { %1594 = vmatpush1.bf16.msra.mxu0 %v4062_v54  ;;  %1625 = vmatprep.mubr.bf16.mxu0 %v3659_v62 }
 0x10a   : > { %1524 = vmatmul.mubr.bf16.vlgmr.msra.gmra.mrb[16].mxu1 %v3338_v25  ;;  %1595 = vmatprep.subr.bf16.mxu0 %v4068_v56 }
 0x10b   : > { %1635 = vmatpush1.bf16.msra.mxu1 %v4066_v55  ;;  %1666 = vmatprep.mubr.bf16.mxu1 %v3659_v62 }
 0x10c   : > { %1636 = vmatprep.subr.bf16.mxu1 %v4070_v57 }
 0x10d   : > { %1596 = vmatpush1.bf16.msra.mxu0 %v4076_v58 }
 0x10e   : > { %1597 = vmatprep.subr.bf16.mxu0 %v4080_v60 }
 0x10f   : > { %1637 = vmatpush1.bf16.msra.mxu1 %v4078_v59 }
 0x110   : > { %1638 = vmatprep.subr.bf16.mxu1 %v4082_v61 }
 0x111   : > { %1598 = vmatpush1.bf16.msra.mxu0 %v4090_v63 }
 0x112   : > { %1599 = vmatprep.subr.bf16.mxu0 %v4094_v1 }
 0x113   : > { %1639 = vmatpush1.bf16.msra.mxu1 %v4092_v0 }
 0x114   : > { %1640 = vmatprep.subr.bf16.mxu1 %v4096_v2 }
 0x115   : > { %1600 = vmatpush1.bf16.msra.mxu0 %v4102_v3 }
 0x116   : > { %1601 = vmatprep.subr.bf16.mxu0 %v4106_v5 }
 0x117   : > { %1641 = vmatpush1.bf16.msra.mxu1 %v4104_v4 }
 0x118   : > { %1642 = vmatprep.subr.bf16.mxu1 %v4108_v6 }
 0x119   : > { %1602 = vmatpush1.bf16.msra.mxu0 %v4114_v7 }
 0x11a   : > { %1603 = vmatprep.subr.bf16.mxu0 %v4118_v9 }
 0x11b   : > { %1643 = vmatpush1.bf16.msra.mxu1 %v4116_v8 }
 0x11c   : > { %1644 = vmatprep.subr.bf16.mxu1 %v4120_v10 }
 0x11d   : > { %1604 = vmatpush1.bf16.msra.mxu0 %v4126_v11 }
 0x11e   : > { %1605 = vmatprep.subr.bf16.mxu0 %v4130_v13 }
 0x11f   : > { %1645 = vmatpush1.bf16.msra.mxu1 %v4128_v12 }
 0x120   : > { %1646 = vmatprep.subr.bf16.mxu1 %v4132_v14 }
 0x121   : > { %1606 = vmatpush1.bf16.msra.mxu0 %v4138_v15 }
 0x122   : > { %1607 = vmatprep.subr.bf16.mxu0 %v4142_v17 }
 0x123   : > { %1647 = vmatpush1.bf16.msra.mxu1 %v4140_v16 }
 0x124   : > { %1648 = vmatprep.subr.bf16.mxu1 %v4144_v18 }
 0x125   : > { %1608 = vmatpush1.bf16.msra.mxu0 %v4150_v19 }
 0x126   : > { %1736 = vmatprep.subr.bf16.mxu0 %v4058_v52 }
 0x127   : > { %1649 = vmatpush1.bf16.msra.mxu1 %v4152_v20 }
 0x128   : > { %1777 = vmatprep.subr.bf16.mxu1 %v4060_v53  ;;  %1626 = vmatmul.mubr.bf16.vlgmr.msra.gmra.mrb[20].mxu0 %v3339_v26 }
 0x129   : > { %1737 = vmatpush1.bf16.msra.mxu0 %v4062_v54  ;;  %1768 = vmatprep.mubr.bf16.mxu0 %v3659_v62 }
 0x12a   : > { %1667 = vmatmul.mubr.bf16.vlgmr.msra.gmra.mrb[20].mxu1 %v3339_v26  ;;  %1738 = vmatprep.subr.bf16.mxu0 %v4068_v56 }
 0x12b   : > { %1778 = vmatpush1.bf16.msra.mxu1 %v4066_v55  ;;  %1809 = vmatprep.mubr.bf16.mxu1 %v3659_v62 }
 0x12c   : > { %1779 = vmatprep.subr.bf16.mxu1 %v4070_v57 }
 0x12d   : > { %1739 = vmatpush1.bf16.msra.mxu0 %v4076_v58 }
 0x12e   : > { %1740 = vmatprep.subr.bf16.mxu0 %v4080_v60 }
 0x12f   : > { %1780 = vmatpush1.bf16.msra.mxu1 %v4078_v59 }
 0x130   : > { %1781 = vmatprep.subr.bf16.mxu1 %v4082_v61 }
 0x131   : > { %1741 = vmatpush1.bf16.msra.mxu0 %v4090_v63 }
 0x132   : > { %1742 = vmatprep.subr.bf16.mxu0 %v4094_v1 }
 0x133   : > { %1782 = vmatpush1.bf16.msra.mxu1 %v4092_v0 }
 0x134   : > { %1783 = vmatprep.subr.bf16.mxu1 %v4096_v2 }
 0x135   : > { %1743 = vmatpush1.bf16.msra.mxu0 %v4102_v3 }
 0x136   : > { %1744 = vmatprep.subr.bf16.mxu0 %v4106_v5 }
 0x137   : > { %1784 = vmatpush1.bf16.msra.mxu1 %v4104_v4 }
 0x138   : > { %1785 = vmatprep.subr.bf16.mxu1 %v4108_v6 }
 0x139   : > { %1745 = vmatpush1.bf16.msra.mxu0 %v4114_v7 }
 0x13a   : > { %1746 = vmatprep.subr.bf16.mxu0 %v4118_v9 }
 0x13b   : > { %1786 = vmatpush1.bf16.msra.mxu1 %v4116_v8 }
 0x13c   : > { %1787 = vmatprep.subr.bf16.mxu1 %v4120_v10 }
 0x13d   : > { %1747 = vmatpush1.bf16.msra.mxu0 %v4126_v11 }
 0x13e   : > { %1748 = vmatprep.subr.bf16.mxu0 %v4130_v13 }
 0x13f   : > { %1788 = vmatpush1.bf16.msra.mxu1 %v4128_v12 }
 0x140   : > { %1789 = vmatprep.subr.bf16.mxu1 %v4132_v14 }
 0x141   : > { %1749 = vmatpush1.bf16.msra.mxu0 %v4138_v15 }
 0x142   : > { %1750 = vmatprep.subr.bf16.mxu0 %v4142_v17 }
 0x143   : > { %1790 = vmatpush1.bf16.msra.mxu1 %v4140_v16 }
 0x144   : > { %1791 = vmatprep.subr.bf16.mxu1 %v4144_v18 }
 0x145   : > { %1751 = vmatpush1.bf16.msra.mxu0 %v4150_v19 }
 0x146   : > { %1879 = vmatprep.subr.bf16.mxu0 %v4058_v52  ;;  %v4472_v52 = vld [vmem:[#allocation3 + $0xb0] sm:$0xff] }
 0x147   : > { %1792 = vmatpush1.bf16.msra.mxu1 %v4152_v20 }
 0x148   : > { %1920 = vmatprep.subr.bf16.mxu1 %v4060_v53  ;;  %1769 = vmatmul.mubr.bf16.vlgmr.msra.gmra.mrb[24].mxu0 %v3340_v27  ;;  %v4474_v53 = vld [vmem:[#allocation3 + $0xc8] sm:$0xff] }
 0x149   : > { %1880 = vmatpush1.bf16.msra.mxu0 %v4062_v54  ;;  %1911 = vmatprep.mubr.bf16.mxu0 %v3659_v62  ;;  %v4476_v54 = vld [vmem:[#allocation3 + $0xd8] sm:$0xff] }
 0x14a   : > { %1810 = vmatmul.mubr.bf16.vlgmr.msra.gmra.mrb[24].mxu1 %v3340_v27  ;;  %1881 = vmatprep.subr.bf16.mxu0 %v4068_v56  ;;  %v4484_v56 = vld [vmem:[#allocation3 + $0xd0] sm:$0xff] }
 0x14b   : > { %1921 = vmatpush1.bf16.msra.mxu1 %v4066_v55  ;;  %1952 = vmatprep.mubr.bf16.mxu1 %v3659_v62  ;;  %v4482_v55 = vld [vmem:[#allocation3 + $0xc0] sm:$0xff] }
 0x14c   : > { %1922 = vmatprep.subr.bf16.mxu1 %v4070_v57  ;;  %v4486_v57 = vld [vmem:[#allocation3 + $0xe8] sm:$0xff] }
 0x14d   : > { %1882 = vmatpush1.bf16.msra.mxu0 %v4076_v58  ;;  %v4488_v58 = vld [vmem:[#allocation3 + $0xf8] sm:$0xff] }
 0x14e   : > { %1883 = vmatprep.subr.bf16.mxu0 %v4080_v60  ;;  %v4494_v60 = vld [vmem:[#allocation3 + $0xe0] sm:$0xff] }
 0x14f   : > { %1923 = vmatpush1.bf16.msra.mxu1 %v4078_v59  ;;  %v1966_v59 = vld [vmem:[#allocation7] sm:$0xff] }
 0x150   : > { %1924 = vmatprep.subr.bf16.mxu1 %v4082_v61  ;;  %v4496_v61 = vld [vmem:[#allocation3 + $0xf0] sm:$0xff] }
 0x151   : > { %1884 = vmatpush1.bf16.msra.mxu0 %v4090_v63  ;;  %v1971_v63 = vpack.c.bf16 %v1966_v59, %v1966_v59 }
 0x152   : > { %1885 = vmatprep.subr.bf16.mxu0 %v4094_v1 }
 0x153   : > { %1925 = vmatpush1.bf16.msra.mxu1 %v4092_v0  ;;  %v859_v0 = vlaneseq }
 0x154   : > { %1926 = vmatprep.subr.bf16.mxu1 %v4096_v2 }
 0x155   : > { %1886 = vmatpush1.bf16.msra.mxu0 %v4102_v3  ;;  %v860_v1 = vshrl.u32 %v859_v0, 7  ;;  %v857_v3 = vld [vmem:[#allocation4] sm:$0xf] }
 0x156   : > { %1887 = vmatprep.subr.bf16.mxu0 %v4106_v5 }
 0x157   : > { %1927 = vmatpush1.bf16.msra.mxu1 %v4104_v4  ;;  %v4536_v2 = vsub.s32 0, %v860_v1  ;;  %v4538_v4 = vsub.s32 1, %v860_v1  ;;  %v4545_v21 = vsub.s32 2, %v860_v1 }
 0x158   : > { %1928 = vmatprep.subr.bf16.mxu1 %v4108_v6 }
 0x159   : > { %1888 = vmatpush1.bf16.msra.mxu0 %v4114_v7  ;;  %v862_v5 = vrot.slane %v857_v3, %v4536_v2  ;;  %v866_v6 = vrot.slane %v857_v3, %v4538_v4  ;;  %v870_v23 = vrot.slane %v857_v3, %v4545_v21 }
 0x15a   : > { %1889 = vmatprep.subr.bf16.mxu0 %v4118_v9  ;;  %v4542_v9 = vsub.s32 3, %v860_v1 }
 0x15b   : > { %1929 = vmatpush1.bf16.msra.mxu1 %v4116_v8 }
 0x15c   : > { %1930 = vmatprep.subr.bf16.mxu1 %v4120_v10 }
 0x15d   : > { %1890 = vmatpush1.bf16.msra.mxu0 %v4126_v11 }
 0x15e   : > { %1891 = vmatprep.subr.bf16.mxu0 %v4130_v13 }
 0x15f   : > { %1931 = vmatpush1.bf16.msra.mxu1 %v4128_v12 }
 0x160   : > { %1932 = vmatprep.subr.bf16.mxu1 %v4132_v14 }
 0x161   : > { %1892 = vmatpush1.bf16.msra.mxu0 %v4138_v15 }
 0x162   : > { %1893 = vmatprep.subr.bf16.mxu0 %v4142_v17 }
 0x163   : > { %1933 = vmatpush1.bf16.msra.mxu1 %v4140_v16 }
 0x164   : > { %1934 = vmatprep.subr.bf16.mxu1 %v4144_v18 }
 0x165   : > { %1894 = vmatpush1.bf16.msra.mxu0 %v4150_v19 }
 0x166   : > { %2004 = vmatprep.subr.bf16.mxu0 %v4399_v28 }
 0x167   : > { %1935 = vmatpush1.bf16.msra.mxu1 %v4152_v20  ;;  %v874_v20 = vrot.slane %v857_v3, %v4542_v9 }
 0x168   : > { %2045 = vmatprep.subr.bf16.mxu1 %v4401_v29  ;;  %1912 = vmatmul.mubr.bf16.vlgmr.msra.gmra.mrb[28].mxu0 %v3341_v30 }
 0x169   : > { %2005 = vmatpush1.bf16.msra.mxu0 %v4408_v31  ;;  %2036 = vmatprep.mubr.bf16.mxu0 %v3659_v62 }
 0x16a   : > { %1953 = vmatmul.mubr.bf16.vlgmr.msra.gmra.mrb[28].mxu1 %v3341_v30  ;;  %2006 = vmatprep.subr.bf16.mxu0 %v4412_v33 }
 0x16b   : > { %2046 = vmatpush1.bf16.msra.mxu1 %v4410_v32  ;;  %2077 = vmatprep.mubr.bf16.mxu1 %v3659_v62 }
 0x16c   : > { %2047 = vmatprep.subr.bf16.mxu1 %v4414_v34 }
 0x16d   : > { %2007 = vmatpush1.bf16.msra.mxu0 %v4420_v35 }
 0x16e   : > { %2008 = vmatprep.subr.bf16.mxu0 %v4424_v37 }
 0x16f   : > { %2048 = vmatpush1.bf16.msra.mxu1 %v4422_v36 }
 0x170   : > { %2049 = vmatprep.subr.bf16.mxu1 %v4426_v38 }
 0x171   : > { %2009 = vmatpush1.bf16.msra.mxu0 %v4434_v39 }
 0x172   : > { %2010 = vmatprep.subr.bf16.mxu0 %v4438_v41 }
 0x173   : > { %2050 = vmatpush1.bf16.msra.mxu1 %v4436_v40 }
 0x174   : > { %2051 = vmatprep.subr.bf16.mxu1 %v4440_v42 }
 0x175   : > { %2011 = vmatpush1.bf16.msra.mxu0 %v4446_v43 }
 0x176   : > { %2012 = vmatprep.subr.bf16.mxu0 %v4450_v45 }
 0x177   : > { %2052 = vmatpush1.bf16.msra.mxu1 %v4448_v44 }
 0x178   : > { %2053 = vmatprep.subr.bf16.mxu1 %v4452_v46 }
 0x179   : > { %2013 = vmatpush1.bf16.msra.mxu0 %v4458_v47 }
 0x17a   : > { %2014 = vmatprep.subr.bf16.mxu0 %v4462_v49 }
 0x17b   : > { %2054 = vmatpush1.bf16.msra.mxu1 %v4460_v48 }
 0x17c   : > { %2055 = vmatprep.subr.bf16.mxu1 %v4464_v50 }
 0x17d   : > { %2015 = vmatpush1.bf16.msra.mxu0 %v4470_v51 }
 0x17e   : > { %2016 = vmatprep.subr.bf16.mxu0 %v4474_v53 }
 0x17f   : > { %2056 = vmatpush1.bf16.msra.mxu1 %v4472_v52 }
 0x180   : > { %2057 = vmatprep.subr.bf16.mxu1 %v4476_v54 }
 0x181   : > { %2017 = vmatpush1.bf16.msra.mxu0 %v4482_v55 }
 0x182   : > { %2018 = vmatprep.subr.bf16.mxu0 %v4486_v57 }
 0x183   : > { %2058 = vmatpush1.bf16.msra.mxu1 %v4484_v56 }
 0x184   : > { %2059 = vmatprep.subr.bf16.mxu1 %v4488_v58 }
 0x185   : > { %2019 = vmatpush1.bf16.msra.mxu0 %v4494_v60 }
 0x186   : > { %2156 = vmatprep.subr.bf16.mxu0 %v4399_v28 }
 0x187   : > { %2060 = vmatpush1.bf16.msra.mxu1 %v4496_v61 }
 0x188   : > { %2197 = vmatprep.subr.bf16.mxu1 %v4401_v29  ;;  %2037 = vmatmul.mubr.bf16.vlgmr.msra.gmra.mrb[0].mxu0 %v1971_v63 }
 0x189   : > { %2157 = vmatpush1.bf16.msra.mxu0 %v4408_v31  ;;  %2188 = vmatprep.mubr.bf16.mxu0 %v3659_v62 }
 0x18a   : > { %2078 = vmatmul.mubr.bf16.vlgmr.msra.gmra.mrb[0].mxu1 %v1971_v63  ;;  %2158 = vmatprep.subr.bf16.mxu0 %v4412_v33 }
 0x18b   : > { %2198 = vmatpush1.bf16.msra.mxu1 %v4410_v32  ;;  %2229 = vmatprep.mubr.bf16.mxu1 %v3659_v62 }
 0x18c   : > { %2199 = vmatprep.subr.bf16.mxu1 %v4414_v34 }
 0x18d   : > { %2159 = vmatpush1.bf16.msra.mxu0 %v4420_v35 }
 0x18e   : > { %2160 = vmatprep.subr.bf16.mxu0 %v4424_v37 }
 0x18f   : > { %2200 = vmatpush1.bf16.msra.mxu1 %v4422_v36 }
 0x190   : > { %2201 = vmatprep.subr.bf16.mxu1 %v4426_v38 }
 0x191   : > { %2161 = vmatpush1.bf16.msra.mxu0 %v4434_v39 }
 0x192   : > { %2162 = vmatprep.subr.bf16.mxu0 %v4438_v41 }
 0x193   : > { %2202 = vmatpush1.bf16.msra.mxu1 %v4436_v40 }
 0x194   : > { %2203 = vmatprep.subr.bf16.mxu1 %v4440_v42 }
 0x195   : > { %2163 = vmatpush1.bf16.msra.mxu0 %v4446_v43 }
 0x196   : > { %2164 = vmatprep.subr.bf16.mxu0 %v4450_v45 }
 0x197   : > { %2204 = vmatpush1.bf16.msra.mxu1 %v4448_v44 }
 0x198   : > { %2205 = vmatprep.subr.bf16.mxu1 %v4452_v46 }
 0x199   : > { %2165 = vmatpush1.bf16.msra.mxu0 %v4458_v47 }
 0x19a   : > { %2166 = vmatprep.subr.bf16.mxu0 %v4462_v49 }
 0x19b   : > { %2206 = vmatpush1.bf16.msra.mxu1 %v4460_v48 }
 0x19c   : > { %2207 = vmatprep.subr.bf16.mxu1 %v4464_v50 }
 0x19d   : > { %2167 = vmatpush1.bf16.msra.mxu0 %v4470_v51 }
 0x19e   : > { %2168 = vmatprep.subr.bf16.mxu0 %v4474_v53 }
 0x19f   : > { %2208 = vmatpush1.bf16.msra.mxu1 %v4472_v52 }
 0x1a0   : > { %2209 = vmatprep.subr.bf16.mxu1 %v4476_v54 }
 0x1a1   : > { %2169 = vmatpush1.bf16.msra.mxu0 %v4482_v55 }
 0x1a2   : > { %2170 = vmatprep.subr.bf16.mxu0 %v4486_v57 }
 0x1a3   : > { %2210 = vmatpush1.bf16.msra.mxu1 %v4484_v56 }
 0x1a4   : > { %2211 = vmatprep.subr.bf16.mxu1 %v4488_v58 }
 0x1a5   : > { %2171 = vmatpush1.bf16.msra.mxu0 %v4494_v60 }
 0x1a6   : > { %2309 = vmatprep.subr.bf16.mxu0 %v4399_v28 }
 0x1a7   : > { %2212 = vmatpush1.bf16.msra.mxu1 %v4496_v61 }
 0x1a8   : > { %2350 = vmatprep.subr.bf16.mxu1 %v4401_v29 }
 0x25b   : > { %v2038_v7 = vpop.f32.mrb[0].mxu0 }
 0x25c   : > { %v3378_v10 = vadd.f32 %v2038_v7, %v862_v5  ;;  %v2040_v11 = vpop.f32.mrb[1].mxu0  ;;  %v2109_v5 = vld [vmem:[#allocation8] sm:$0xff] }
 0x25d   : > { %v2079_v8 = vpop.f32.mrb[0].mxu1  ;;  %v3379_v13 = vadd.f32 %v2040_v11, %v866_v6  ;;  %v2042_v14 = vpop.f32.mrb[2].mxu0 }
 0x25e   : > { %v2081_v12 = vpop.f32.mrb[1].mxu1  ;;  %v3342_v16 = vmul.f32 -1.442695, %v3378_v10  ;;  %v2043_v17 = vpop.f32.mrb[3].mxu0  ;;  %v3380_v25 = vadd.f32 %v2079_v8, %v870_v23 }
 0x25f   : > { %v2083_v15 = vpop.f32.mrb[2].mxu1  ;;  %v3343_v19 = vmul.f32 -1.442695, %v3379_v13  ;;  %v3381_v22 = vadd.f32 %v2081_v12, %v874_v20 }
 0x260   : > { %v2084_v18 = vpop.f32.mrb[3].mxu1  ;;  %3500 = vpow2.f32 %v3342_v16  ;;  %v999_v15 = vld [vmem:[#allocation4] sm:$0xf] }
 0x261   : > { %3502 = vpow2.f32 %v3343_v19  ;;  %v3344_v24 = vmul.f32 -1.442695, %v3381_v22  ;;  %v1004_v16 = vrot.slane %v999_v15, %v4536_v2  ;;  %v1008_v17 = vrot.slane %v999_v15, %v4538_v4 }
 0x263   : > { %3504 = vpow2.f32 %v3344_v24 }
 0x264   : > { %3506 = vtanh.f32 %v3380_v25 }
 0x26a   : > { %v3501_v26 = vpop.eup %3500 }
 0x26b   : > { %v3503_v27 = vpop.eup %3502  ;;  %v2093_v30 = vadd.f32 1.0, %v3501_v26 }
 0x26c   : > { %v2099_v59 = vadd.f32 1.0, %v3503_v27 }
 0x26d   : > { %3508 = vrcp.f32 %v2093_v30  ;;  %v3505_v63 = vpop.eup %3504 }
 0x26e   : > { %3510 = vrcp.f32 %v2099_v59  ;;  %v3507_v0 = vpop.eup %3506  ;;  %v2106_v10 = vadd.f32 1.0, %v3505_v63 }
 0x270   : > { %3512 = vrcp.f32 %v2106_v10 }
 0x277   : > { %v3509_v1 = vpop.eup %3508 }
 0x278   : > { %v3511_v6 = vpop.eup %3510  ;;  %v2111_v7 = vmul.f32 %v3509_v1, %v3507_v0  ;;  %v1016_v0 = vrot.slane %v999_v15, %v4542_v9  ;;  %v1012_v1 = vrot.slane %v999_v15, %v4545_v21 }
 0x279   : > { %v2110_v11 = vmul.f32 %v3511_v6, %v2109_v5 }
 0x27a   : > { %v3513_v8 = vpop.eup %3512 }
 0x27b   : > { %v4548_v3 = vadd.f32 %v2111_v7, %v2110_v11 }
 0x27d   : > { %3514 = vtanh.f32 %v4548_v3 }
 0x287   : > { %v3515_v12 = vpop.eup %3514 }
 0x288   : > { %v2114_v13 = vmul.f32 %v3515_v12, %v3513_v8 }
 0x28a   : > { %2117 = vst [vmem:[%s3711_s27] sm:$0xff] %v2114_v13  ;;  %v2123_v14 = vpack.c.bf16 %v2114_v13, %v2114_v13 }
 0x28c   : > { %2189 = vmatmul.mubr.bf16.vlgmr.msra.gmra.mrb[4].mxu0 %v2123_v14  ;;  %2230 = vmatmul.mubr.bf16.vlgmr.msra.gmra.mrb[4].mxu1 %v2123_v14 }
 0x28d   : > { %2310 = vmatpush1.bf16.msra.mxu0 %v4408_v31  ;;  %2351 = vmatpush1.bf16.msra.mxu1 %v4410_v32 }
 0x28e   : > { %2311 = vmatprep.subr.bf16.mxu0 %v4412_v33  ;;  %2352 = vmatprep.subr.bf16.mxu1 %v4414_v34 }
 0x28f   : > { %2341 = vmatprep.mubr.bf16.mxu0 %v3659_v62  ;;  %2382 = vmatprep.mubr.bf16.mxu1 %v3659_v62 }
 0x291   : > { %2312 = vmatpush1.bf16.msra.mxu0 %v4420_v35  ;;  %2353 = vmatpush1.bf16.msra.mxu1 %v4422_v36 }
 0x292   : > { %2313 = vmatprep.subr.bf16.mxu0 %v4424_v37  ;;  %2354 = vmatprep.subr.bf16.mxu1 %v4426_v38 }
 0x295   : > { %2314 = vmatpush1.bf16.msra.mxu0 %v4434_v39  ;;  %2355 = vmatpush1.bf16.msra.mxu1 %v4436_v40 }
 0x296   : > { %2315 = vmatprep.subr.bf16.mxu0 %v4438_v41  ;;  %2356 = vmatprep.subr.bf16.mxu1 %v4440_v42 }
 0x299   : > { %2316 = vmatpush1.bf16.msra.mxu0 %v4446_v43  ;;  %2357 = vmatpush1.bf16.msra.mxu1 %v4448_v44 }
 0x29a   : > { %2317 = vmatprep.subr.bf16.mxu0 %v4450_v45  ;;  %2358 = vmatprep.subr.bf16.mxu1 %v4452_v46 }
 0x29d   : > { %2318 = vmatpush1.bf16.msra.mxu0 %v4458_v47  ;;  %2359 = vmatpush1.bf16.msra.mxu1 %v4460_v48 }
 0x29e   : > { %2319 = vmatprep.subr.bf16.mxu0 %v4462_v49  ;;  %2360 = vmatprep.subr.bf16.mxu1 %v4464_v50 }
 0x2a1   : > { %2320 = vmatpush1.bf16.msra.mxu0 %v4470_v51  ;;  %2361 = vmatpush1.bf16.msra.mxu1 %v4472_v52 }
 0x2a2   : > { %2321 = vmatprep.subr.bf16.mxu0 %v4474_v53  ;;  %2362 = vmatprep.subr.bf16.mxu1 %v4476_v54 }
 0x2a5   : > { %2322 = vmatpush1.bf16.msra.mxu0 %v4482_v55  ;;  %2363 = vmatpush1.bf16.msra.mxu1 %v4484_v56 }
 0x2a6   : > { %2323 = vmatprep.subr.bf16.mxu0 %v4486_v57  ;;  %2364 = vmatprep.subr.bf16.mxu1 %v4488_v58 }
 0x2a9   : > { %2324 = vmatpush1.bf16.msra.mxu0 %v4494_v60  ;;  %2365 = vmatpush1.bf16.msra.mxu1 %v4496_v61 }
 0x2aa   : > { %2462 = vmatprep.subr.bf16.mxu0 %v4399_v28  ;;  %2503 = vmatprep.subr.bf16.mxu1 %v4401_v29 }
 0x35f   : > { %v2190_v18 = vpop.f32.mrb[4].mxu0  ;;  %v2231_v19 = vpop.f32.mrb[4].mxu1 }
 0x360   : > { %v3382_v20 = vadd.f32 %v2190_v18, %v1004_v16  ;;  %v2192_v22 = vpop.f32.mrb[5].mxu0  ;;  %v2233_v23 = vpop.f32.mrb[5].mxu1  ;;  %v3384_v7 = vadd.f32 %v2231_v19, %v1012_v1 }
 0x361   : > { %v3383_v24 = vadd.f32 %v2192_v22, %v1008_v17  ;;  %v2194_v25 = vpop.f32.mrb[6].mxu0  ;;  %v2235_v26 = vpop.f32.mrb[6].mxu1  ;;  %v3385_v5 = vadd.f32 %v2233_v23, %v1016_v0 }
 0x362   : > { %v3345_v27 = vmul.f32 -1.442695, %v3382_v20  ;;  %v2195_v30 = vpop.f32.mrb[7].mxu0  ;;  %v2236_v59 = vpop.f32.mrb[7].mxu1 }
 0x363   : > { %v3346_v63 = vmul.f32 -1.442695, %v3383_v24  ;;  %v3347_v6 = vmul.f32 -1.442695, %v3385_v5 }
 0x364   : > { %3516 = vpow2.f32 %v3345_v27 }
 0x365   : > { %3518 = vpow2.f32 %v3346_v63 }
 0x366   : > { %3520 = vpow2.f32 %v3347_v6 }
 0x367   : > { %3522 = vtanh.f32 %v3384_v7 }
 0x36e   : > { %v3517_v10 = vpop.eup %3516 }
 0x36f   : > { %v3519_v11 = vpop.eup %3518  ;;  %v2245_v8 = vadd.f32 1.0, %v3517_v10 }
 0x370   : > { %v2251_v12 = vadd.f32 1.0, %v3519_v11  ;;  %v3521_v13 = vpop.eup %3520 }
 0x371   : > { %3524 = vrcp.f32 %v2245_v8  ;;  %v3523_v14 = vpop.eup %3522  ;;  %v2258_v20 = vadd.f32 1.0, %v3521_v13 }
 0x372   : > { %3526 = vrcp.f32 %v2251_v12 }
 0x373   : > { %3528 = vrcp.f32 %v2258_v20 }
 0x37b   : > { %v3525_v16 = vpop.eup %3524 }
 0x37c   : > { %v3527_v17 = vpop.eup %3526  ;;  %v2263_v18 = vmul.f32 %v3525_v16, %v3523_v14 }
 0x37d   : > { %v2262_v22 = vmul.f32 %v3527_v17, %v4548_v3  ;;  %v3529_v19 = vpop.eup %3528  ;;  %v1142_v3 = vld [vmem:[#allocation4] sm:$0xf] }
 0x37e   : > { %v1147_v26 = vrot.slane %v1142_v3, %v4536_v2  ;;  %v1151_v27 = vrot.slane %v1142_v3, %v4538_v4  ;;  %v1155_v13 = vrot.slane %v1142_v3, %v4545_v21 }
 0x37f   : > { %v4591_v15 = vadd.f32 %v2263_v18, %v2262_v22 }
 0x381   : > { %3530 = vtanh.f32 %v4591_v15 }
 0x38b   : > { %v3531_v23 = vpop.eup %3530 }
 0x38c   : > { %v2266_v24 = vmul.f32 %v3531_v23, %v3529_v19 }
 0x38e   : > { %3348 = vst [vmem:[%s3711_s27 + $0x8] sm:$0xff] %v2266_v24  ;;  %v2276_v25 = vpack.c.bf16 %v2266_v24, %v2266_v24 }
 0x390   : > { %2342 = vmatmul.mubr.bf16.vlgmr.msra.gmra.mrb[8].mxu0 %v2276_v25  ;;  %2383 = vmatmul.mubr.bf16.vlgmr.msra.gmra.mrb[8].mxu1 %v2276_v25 }
 0x391   : > { %2463 = vmatpush1.bf16.msra.mxu0 %v4408_v31  ;;  %2504 = vmatpush1.bf16.msra.mxu1 %v4410_v32 }
 0x392   : > { %2464 = vmatprep.subr.bf16.mxu0 %v4412_v33  ;;  %2505 = vmatprep.subr.bf16.mxu1 %v4414_v34 }
 0x393   : > { %2494 = vmatprep.mubr.bf16.mxu0 %v3659_v62  ;;  %2535 = vmatprep.mubr.bf16.mxu1 %v3659_v62 }
 0x395   : > { %2465 = vmatpush1.bf16.msra.mxu0 %v4420_v35  ;;  %2506 = vmatpush1.bf16.msra.mxu1 %v4422_v36 }
 0x396   : > { %2466 = vmatprep.subr.bf16.mxu0 %v4424_v37  ;;  %2507 = vmatprep.subr.bf16.mxu1 %v4426_v38 }
 0x399   : > { %2467 = vmatpush1.bf16.msra.mxu0 %v4434_v39  ;;  %2508 = vmatpush1.bf16.msra.mxu1 %v4436_v40 }
 0x39a   : > { %2468 = vmatprep.subr.bf16.mxu0 %v4438_v41  ;;  %2509 = vmatprep.subr.bf16.mxu1 %v4440_v42 }
 0x39d   : > { %2469 = vmatpush1.bf16.msra.mxu0 %v4446_v43  ;;  %2510 = vmatpush1.bf16.msra.mxu1 %v4448_v44 }
 0x39e   : > { %2470 = vmatprep.subr.bf16.mxu0 %v4450_v45  ;;  %2511 = vmatprep.subr.bf16.mxu1 %v4452_v46 }
 0x3a1   : > { %2471 = vmatpush1.bf16.msra.mxu0 %v4458_v47  ;;  %2512 = vmatpush1.bf16.msra.mxu1 %v4460_v48 }
 0x3a2   : > { %2472 = vmatprep.subr.bf16.mxu0 %v4462_v49  ;;  %2513 = vmatprep.subr.bf16.mxu1 %v4464_v50 }
 0x3a5   : > { %2473 = vmatpush1.bf16.msra.mxu0 %v4470_v51  ;;  %2514 = vmatpush1.bf16.msra.mxu1 %v4472_v52 }
 0x3a6   : > { %2474 = vmatprep.subr.bf16.mxu0 %v4474_v53  ;;  %2515 = vmatprep.subr.bf16.mxu1 %v4476_v54 }
 0x3a9   : > { %2475 = vmatpush1.bf16.msra.mxu0 %v4482_v55  ;;  %2516 = vmatpush1.bf16.msra.mxu1 %v4484_v56 }
 0x3aa   : > { %2476 = vmatprep.subr.bf16.mxu0 %v4486_v57  ;;  %2517 = vmatprep.subr.bf16.mxu1 %v4488_v58 }
 0x3ad   : > { %2477 = vmatpush1.bf16.msra.mxu0 %v4494_v60  ;;  %2518 = vmatpush1.bf16.msra.mxu1 %v4496_v61 }
 0x3ae   : > { %2615 = vmatprep.subr.bf16.mxu0 %v4399_v28  ;;  %2656 = vmatprep.subr.bf16.mxu1 %v4401_v29  ;;  %v1159_v28 = vrot.slane %v1142_v3, %v4542_v9 }
 0x463   : > { %v2343_v30 = vpop.f32.mrb[8].mxu0  ;;  %v2384_v59 = vpop.f32.mrb[8].mxu1 }
 0x464   : > { %v3386_v63 = vadd.f32 %v2343_v30, %v1147_v26  ;;  %v2345_v0 = vpop.f32.mrb[9].mxu0  ;;  %v2386_v5 = vpop.f32.mrb[9].mxu1  ;;  %v3388_v16 = vadd.f32 %v2384_v59, %v1155_v13  ;;  %v4693_v13 = vld [vmem:[#allocation3 + $0x28] sm:$0xff] }
 0x465   : > { %v3387_v1 = vadd.f32 %v2345_v0, %v1151_v27  ;;  %v2347_v6 = vpop.f32.mrb[10].mxu0  ;;  %v2388_v7 = vpop.f32.mrb[10].mxu1  ;;  %v3389_v29 = vadd.f32 %v2386_v5, %v1159_v28  ;;  %v4687_v28 = vld [vmem:[#allocation3] sm:$0xff] }
 0x466   : > { %v3349_v10 = vmul.f32 -1.442695, %v3386_v63  ;;  %v2348_v11 = vpop.f32.mrb[11].mxu0  ;;  %v2389_v8 = vpop.f32.mrb[11].mxu1 }
 0x467   : > { %v3350_v12 = vmul.f32 -1.442695, %v3387_v1  ;;  %v3351_v14 = vmul.f32 -1.442695, %v3389_v29  ;;  %v4681_v8 = vld [vmem:[#allocation3 + $0x8] sm:$0xff]  ;;  %v4689_v29 = vld [vmem:[#allocation3 + $0x10] sm:$0xff] }
 0x468   : > { %3532 = vpow2.f32 %v3349_v10 }
 0x469   : > { %3534 = vpow2.f32 %v3350_v12  ;;  %v4683_v12 = vld [vmem:[#allocation3 + $0x18] sm:$0xff] }
 0x46a   : > { %3536 = vpow2.f32 %v3351_v14  ;;  %v4695_v14 = vld [vmem:[#allocation3 + $0x38] sm:$0xff] }
 0x46b   : > { %3538 = vtanh.f32 %v3388_v16  ;;  %v4699_v16 = vld [vmem:[#allocation3 + $0x20] sm:$0xff] }
 0x472   : > { %v3533_v17 = vpop.eup %3532 }
 0x473   : > { %v3535_v18 = vpop.eup %3534  ;;  %v2398_v20 = vadd.f32 1.0, %v3533_v17  ;;  %v4701_v17 = vld [vmem:[#allocation3 + $0x30] sm:$0xff] }
 0x474   : > { %v2404_v22 = vadd.f32 1.0, %v3535_v18  ;;  %v3537_v19 = vpop.eup %3536  ;;  %v4705_v18 = vld [vmem:[#allocation3 + $0x48] sm:$0xff] }
 0x475   : > { %3540 = vrcp.f32 %v2398_v20  ;;  %v3539_v23 = vpop.eup %3538  ;;  %v2411_v27 = vadd.f32 1.0, %v3537_v19  ;;  %v4707_v20 = vld [vmem:[#allocation3 + $0x58] sm:$0xff]  ;;  %v4713_v19 = vld [vmem:[#allocation3 + $0x50] sm:$0xff] }
 0x476   : > { %3542 = vrcp.f32 %v2404_v22  ;;  %v4711_v22 = vld [vmem:[#allocation3 + $0x40] sm:$0xff] }
 0x477   : > { %3544 = vrcp.f32 %v2411_v27  ;;  %v4729_v27 = vld [vmem:[#allocation3 + $0x88] sm:$0xff] }
 0x47f   : > { %v3541_v24 = vpop.eup %3540 }
 0x480   : > { %v3543_v25 = vpop.eup %3542  ;;  %v2416_v26 = vmul.f32 %v3541_v24, %v3539_v23  ;;  %v4717_v23 = vld [vmem:[#allocation3 + $0x68] sm:$0xff]  ;;  %v4719_v24 = vld [vmem:[#allocation3 + $0x78] sm:$0xff] }
 0x481   : > { %v2415_v30 = vmul.f32 %v3543_v25, %v4591_v15  ;;  %v3545_v59 = vpop.eup %3544  ;;  %v4723_v25 = vld [vmem:[#allocation3 + $0x60] sm:$0xff] }
 0x483   : > { %v4634_v3 = vadd.f32 %v2416_v26, %v2415_v30  ;;  %v4725_v26 = vld [vmem:[#allocation3 + $0x70] sm:$0xff]  ;;  %v4731_v30 = vld [vmem:[#allocation3 + $0x98] sm:$0xff] }
 0x485   : > { %3546 = vtanh.f32 %v4634_v3 }
 0x48f   : > { %v3547_v63 = vpop.eup %3546 }
 0x490   : > { %v2419_v0 = vmul.f32 %v3547_v63, %v3545_v59  ;;  %v4737_v59 = vld [vmem:[#allocation3 + $0x90] sm:$0xff]  ;;  %v4741_v63 = vld [vmem:[#allocation3 + $0xa8] sm:$0xff] }
 0x492   : > { %3352 = vst [vmem:[%s3711_s27 + $0x10] sm:$0xff] %v2419_v0  ;;  %v2429_v5 = vpack.c.bf16 %v2419_v0, %v2419_v0  ;;  %v4743_v0 = vld [vmem:[#allocation3 + $0xb8] sm:$0xff] }
 0x494   : > { %2495 = vmatmul.mubr.bf16.vlgmr.msra.gmra.mrb[12].mxu0 %v2429_v5  ;;  %2536 = vmatmul.mubr.bf16.vlgmr.msra.gmra.mrb[12].mxu1 %v2429_v5  ;;  %v4747_v5 = vld [vmem:[#allocation3 + $0xa0] sm:$0xff] }
 0x495   : > { %2616 = vmatpush1.bf16.msra.mxu0 %v4408_v31  ;;  %2657 = vmatpush1.bf16.msra.mxu1 %v4410_v32  ;;  %v1285_v31 = vld [vmem:[#allocation4] sm:$0xf] }
 0x496   : > { %2617 = vmatprep.subr.bf16.mxu0 %v4412_v33  ;;  %2658 = vmatprep.subr.bf16.mxu1 %v4414_v34  ;;  %v1290_v32 = vrot.slane %v1285_v31, %v4536_v2  ;;  %v1294_v33 = vrot.slane %v1285_v31, %v4538_v4 }
 0x497   : > { %2647 = vmatprep.mubr.bf16.mxu0 %v3659_v62  ;;  %2688 = vmatprep.mubr.bf16.mxu1 %v3659_v62 }
 0x499   : > { %2618 = vmatpush1.bf16.msra.mxu0 %v4420_v35  ;;  %2659 = vmatpush1.bf16.msra.mxu1 %v4422_v36 }
 0x49a   : > { %2619 = vmatprep.subr.bf16.mxu0 %v4424_v37  ;;  %2660 = vmatprep.subr.bf16.mxu1 %v4426_v38 }
 0x49d   : > { %2620 = vmatpush1.bf16.msra.mxu0 %v4434_v39  ;;  %2661 = vmatpush1.bf16.msra.mxu1 %v4436_v40 }
 0x49e   : > { %2621 = vmatprep.subr.bf16.mxu0 %v4438_v41  ;;  %2662 = vmatprep.subr.bf16.mxu1 %v4440_v42 }
 0x4a1   : > { %2622 = vmatpush1.bf16.msra.mxu0 %v4446_v43  ;;  %2663 = vmatpush1.bf16.msra.mxu1 %v4448_v44 }
 0x4a2   : > { %2623 = vmatprep.subr.bf16.mxu0 %v4450_v45  ;;  %2664 = vmatprep.subr.bf16.mxu1 %v4452_v46  ;;  %v1302_v46 = vrot.slane %v1285_v31, %v4542_v9 }
 0x4a5   : > { %2624 = vmatpush1.bf16.msra.mxu0 %v4458_v47  ;;  %2665 = vmatpush1.bf16.msra.mxu1 %v4460_v48  ;;  %v1298_v48 = vrot.slane %v1285_v31, %v4545_v21  ;;  %v4749_v31 = vld [vmem:[#allocation3 + $0xb0] sm:$0xff] }
 0x4a6   : > { %2625 = vmatprep.subr.bf16.mxu0 %v4462_v49  ;;  %2666 = vmatprep.subr.bf16.mxu1 %v4464_v50 }
 0x4a9   : > { %2626 = vmatpush1.bf16.msra.mxu0 %v4470_v51  ;;  %2667 = vmatpush1.bf16.msra.mxu1 %v4472_v52 }
 0x4aa   : > { %2627 = vmatprep.subr.bf16.mxu0 %v4474_v53  ;;  %2668 = vmatprep.subr.bf16.mxu1 %v4476_v54 }
 0x4ad   : > { %2628 = vmatpush1.bf16.msra.mxu0 %v4482_v55  ;;  %2669 = vmatpush1.bf16.msra.mxu1 %v4484_v56 }
 0x4ae   : > { %2629 = vmatprep.subr.bf16.mxu0 %v4486_v57  ;;  %2670 = vmatprep.subr.bf16.mxu1 %v4488_v58 }
 0x4b1   : > { %2630 = vmatpush1.bf16.msra.mxu0 %v4494_v60  ;;  %2671 = vmatpush1.bf16.msra.mxu1 %v4496_v61 }
 0x4b2   : > { %2768 = vmatprep.subr.bf16.mxu0 %v4681_v8  ;;  %2809 = vmatprep.subr.bf16.mxu1 %v4683_v12 }
 0x567   : > { %v2496_v34 = vpop.f32.mrb[12].mxu0  ;;  %v2537_v35 = vpop.f32.mrb[12].mxu1 }
 0x568   : > { %v3390_v36 = vadd.f32 %v2496_v34, %v1290_v32  ;;  %v2498_v37 = vpop.f32.mrb[13].mxu0  ;;  %v2539_v38 = vpop.f32.mrb[13].mxu1  ;;  %v3392_v50 = vadd.f32 %v2537_v35, %v1298_v48  ;;  %v4753_v32 = vld [vmem:[#allocation3 + $0xc8] sm:$0xff]  ;;  %v4759_v34 = vld [vmem:[#allocation3 + $0xc0] sm:$0xff]  ;;  %v4761_v35 = vld [vmem:[#allocation3 + $0xd0] sm:$0xff] }
 0x569   : > { %v3391_v39 = vadd.f32 %v2498_v37, %v1294_v33  ;;  %v2500_v40 = vpop.f32.mrb[14].mxu0  ;;  %v2541_v41 = vpop.f32.mrb[14].mxu1  ;;  %v3393_v47 = vadd.f32 %v2539_v38, %v1302_v46  ;;  %v4755_v33 = vld [vmem:[#allocation3 + $0xd8] sm:$0xff]  ;;  %v4771_v38 = vld [vmem:[#allocation3 + $0xe0] sm:$0xff] }
 0x56a   : > { %v3353_v42 = vmul.f32 -1.442695, %v3390_v36  ;;  %v2501_v43 = vpop.f32.mrb[15].mxu0  ;;  %v2542_v44 = vpop.f32.mrb[15].mxu1  ;;  %v4765_v36 = vld [vmem:[#allocation3 + $0xe8] sm:$0xff]  ;;  %v4767_v37 = vld [vmem:[#allocation3 + $0xf8] sm:$0xff] }
 0x56b   : > { %v3354_v45 = vmul.f32 -1.442695, %v3391_v39  ;;  %v3355_v49 = vmul.f32 -1.442695, %v3393_v47  ;;  %v4773_v39 = vld [vmem:[#allocation3 + $0xf0] sm:$0xff] }
 0x56c   : > { %3548 = vpow2.f32 %v3353_v42  ;;  %v1428_v40 = vld [vmem:[#allocation4] sm:$0xf] }
 0x56d   : > { %3550 = vpow2.f32 %v3354_v45  ;;  %v1433_v41 = vrot.slane %v1428_v40, %v4536_v2  ;;  %v1437_v42 = vrot.slane %v1428_v40, %v4538_v4 }
 0x56e   : > { %3552 = vpow2.f32 %v3355_v49 }
 0x56f   : > { %3554 = vtanh.f32 %v3392_v50 }
 0x576   : > { %v3549_v51 = vpop.eup %3548 }
 0x577   : > { %v3551_v52 = vpop.eup %3550  ;;  %v2551_v53 = vadd.f32 1.0, %v3549_v51 }
 0x578   : > { %v2557_v54 = vadd.f32 1.0, %v3551_v52  ;;  %v3553_v55 = vpop.eup %3552 }
 0x579   : > { %3556 = vrcp.f32 %v2551_v53  ;;  %v3555_v56 = vpop.eup %3554  ;;  %v2564_v61 = vadd.f32 1.0, %v3553_v55  ;;  %v1445_v55 = vrot.slane %v1428_v40, %v4542_v9 }
 0x57a   : > { %3558 = vrcp.f32 %v2557_v54 }
 0x57b   : > { %3560 = vrcp.f32 %v2564_v61 }
 0x583   : > { %v3557_v57 = vpop.eup %3556 }
 0x584   : > { %v3559_v58 = vpop.eup %3558  ;;  %v2569_v60 = vmul.f32 %v3557_v57, %v3555_v56  ;;  %v1441_v57 = vrot.slane %v1428_v40, %v4545_v21 }
 0x585   : > { %v2568_v15 = vmul.f32 %v3559_v58, %v4634_v3  ;;  %v3561_v6 = vpop.eup %3560  ;;  %v4735_v3 = vld [vmem:[#allocation3 + $0x80] sm:$0xff] }
 0x587   : > { %v4675_v1 = vadd.f32 %v2569_v60, %v2568_v15 }
 0x589   : > { %3562 = vtanh.f32 %v4675_v1 }
 0x593   : > { %v3563_v7 = vpop.eup %3562 }
 0x594   : > { %v2572_v10 = vmul.f32 %v3563_v7, %v3561_v6 }
 0x596   : > { %3356 = vst [vmem:[%s3711_s27 + $0x18] sm:$0xff] %v2572_v10  ;;  %v2582_v11 = vpack.c.bf16 %v2572_v10, %v2572_v10 }
 0x598   : > { %2648 = vmatmul.mubr.bf16.vlgmr.msra.gmra.mrb[16].mxu0 %v2582_v11  ;;  %2689 = vmatmul.mubr.bf16.vlgmr.msra.gmra.mrb[16].mxu1 %v2582_v11 }
 0x599   : > { %2800 = vmatprep.mubr.bf16.mxu0 %v3659_v62  ;;  %2841 = vmatprep.mubr.bf16.mxu1 %v3659_v62 }
 0x59a   : > { %2769 = vmatpush1.bf16.msra.mxu0 %v4687_v28  ;;  %2810 = vmatpush1.bf16.msra.mxu1 %v4689_v29 }
 0x59b   : > { %2770 = vmatprep.subr.bf16.mxu0 %v4693_v13  ;;  %2811 = vmatprep.subr.bf16.mxu1 %v4695_v14 }
 0x59e   : > { %2771 = vmatpush1.bf16.msra.mxu0 %v4699_v16  ;;  %2812 = vmatpush1.bf16.msra.mxu1 %v4701_v17 }
 0x59f   : > { %2772 = vmatprep.subr.bf16.mxu0 %v4705_v18  ;;  %2813 = vmatprep.subr.bf16.mxu1 %v4707_v20 }
 0x5a2   : > { %2773 = vmatpush1.bf16.msra.mxu0 %v4711_v22  ;;  %2814 = vmatpush1.bf16.msra.mxu1 %v4713_v19 }
 0x5a3   : > { %2774 = vmatprep.subr.bf16.mxu0 %v4717_v23  ;;  %2815 = vmatprep.subr.bf16.mxu1 %v4719_v24 }
 0x5a6   : > { %2775 = vmatpush1.bf16.msra.mxu0 %v4723_v25  ;;  %2816 = vmatpush1.bf16.msra.mxu1 %v4725_v26 }
 0x5a7   : > { %2776 = vmatprep.subr.bf16.mxu0 %v4729_v27  ;;  %2817 = vmatprep.subr.bf16.mxu1 %v4731_v30 }
 0x5aa   : > { %2777 = vmatpush1.bf16.msra.mxu0 %v4735_v3  ;;  %2818 = vmatpush1.bf16.msra.mxu1 %v4737_v59 }
 0x5ab   : > { %2778 = vmatprep.subr.bf16.mxu0 %v4741_v63  ;;  %2819 = vmatprep.subr.bf16.mxu1 %v4743_v0 }
 0x5ae   : > { %2779 = vmatpush1.bf16.msra.mxu0 %v4747_v5  ;;  %2820 = vmatpush1.bf16.msra.mxu1 %v4749_v31 }
 0x5af   : > { %2780 = vmatprep.subr.bf16.mxu0 %v4753_v32  ;;  %2821 = vmatprep.subr.bf16.mxu1 %v4755_v33 }
 0x5b2   : > { %2781 = vmatpush1.bf16.msra.mxu0 %v4759_v34  ;;  %2822 = vmatpush1.bf16.msra.mxu1 %v4761_v35 }
 0x5b3   : > { %2782 = vmatprep.subr.bf16.mxu0 %v4765_v36  ;;  %2823 = vmatprep.subr.bf16.mxu1 %v4767_v37 }
 0x5b6   : > { %2783 = vmatpush1.bf16.msra.mxu0 %v4771_v38  ;;  %2824 = vmatpush1.bf16.msra.mxu1 %v4773_v39 }
 0x5b7   : > { %2921 = vmatprep.subr.bf16.mxu0 %v4681_v8  ;;  %2962 = vmatprep.subr.bf16.mxu1 %v4683_v12 }
 0x66b   : > { %v2649_v43 = vpop.f32.mrb[16].mxu0  ;;  %v2690_v44 = vpop.f32.mrb[16].mxu1 }
 0x66c   : > { %v3394_v45 = vadd.f32 %v2649_v43, %v1433_v41  ;;  %v2651_v46 = vpop.f32.mrb[17].mxu0  ;;  %v2692_v47 = vpop.f32.mrb[17].mxu1  ;;  %v3396_v60 = vadd.f32 %v2690_v44, %v1441_v57 }
 0x66d   : > { %v3395_v48 = vadd.f32 %v2651_v46, %v1437_v42  ;;  %v2653_v49 = vpop.f32.mrb[18].mxu0  ;;  %v2694_v50 = vpop.f32.mrb[18].mxu1  ;;  %v3397_v56 = vadd.f32 %v2692_v47, %v1445_v55 }
 0x66e   : > { %v3357_v51 = vmul.f32 -1.442695, %v3394_v45  ;;  %v2654_v52 = vpop.f32.mrb[19].mxu0  ;;  %v2695_v53 = vpop.f32.mrb[19].mxu1 }
 0x66f   : > { %v3358_v54 = vmul.f32 -1.442695, %v3395_v48  ;;  %v3359_v58 = vmul.f32 -1.442695, %v3397_v56 }
 0x670   : > { %3564 = vpow2.f32 %v3357_v51 }
 0x671   : > { %3566 = vpow2.f32 %v3358_v54 }
 0x672   : > { %3568 = vpow2.f32 %v3359_v58 }
 0x673   : > { %3570 = vtanh.f32 %v3396_v60 }
 0x67a   : > { %v3565_v61 = vpop.eup %3564 }
 0x67b   : > { %v3567_v15 = vpop.eup %3566  ;;  %v2704_v6 = vadd.f32 1.0, %v3565_v61 }
 0x67c   : > { %v2710_v7 = vadd.f32 1.0, %v3567_v15  ;;  %v3569_v10 = vpop.eup %3568 }
 0x67d   : > { %3572 = vrcp.f32 %v2704_v6  ;;  %v3571_v11 = vpop.eup %3570  ;;  %v2717_v45 = vadd.f32 1.0, %v3569_v10 }
 0x67e   : > { %3574 = vrcp.f32 %v2710_v7 }
 0x67f   : > { %3576 = vrcp.f32 %v2717_v45 }
 0x687   : > { %v3573_v41 = vpop.eup %3572 }
 0x688   : > { %v3575_v42 = vpop.eup %3574  ;;  %v2722_v43 = vmul.f32 %v3573_v41, %v3571_v11 }
 0x689   : > { %v2721_v46 = vmul.f32 %v3575_v42, %v4675_v1  ;;  %v3577_v44 = vpop.eup %3576  ;;  %v1571_v1 = vld [vmem:[#allocation4] sm:$0xf] }
 0x68a   : > { %v1576_v50 = vrot.slane %v1571_v1, %v4536_v2  ;;  %v1580_v51 = vrot.slane %v1571_v1, %v4538_v4  ;;  %v1584_v10 = vrot.slane %v1571_v1, %v4545_v21 }
 0x68b   : > { %v4784_v40 = vadd.f32 %v2722_v43, %v2721_v46 }
 0x68d   : > { %3578 = vtanh.f32 %v4784_v40 }
 0x697   : > { %v3579_v47 = vpop.eup %3578 }
 0x698   : > { %v2725_v48 = vmul.f32 %v3579_v47, %v3577_v44 }
 0x69a   : > { %3360 = vst [vmem:[%s3711_s27 + $0x20] sm:$0xff] %v2725_v48  ;;  %v2735_v49 = vpack.c.bf16 %v2725_v48, %v2725_v48 }
 0x69c   : > { %2801 = vmatmul.mubr.bf16.vlgmr.msra.gmra.mrb[20].mxu0 %v2735_v49  ;;  %2842 = vmatmul.mubr.bf16.vlgmr.msra.gmra.mrb[20].mxu1 %v2735_v49 }
 0x69d   : > { %2922 = vmatpush1.bf16.msra.mxu0 %v4687_v28  ;;  %2963 = vmatpush1.bf16.msra.mxu1 %v4689_v29 }
 0x69e   : > { %2923 = vmatprep.subr.bf16.mxu0 %v4693_v13  ;;  %2964 = vmatprep.subr.bf16.mxu1 %v4695_v14 }
 0x69f   : > { %2953 = vmatprep.mubr.bf16.mxu0 %v3659_v62  ;;  %2994 = vmatprep.mubr.bf16.mxu1 %v3659_v62 }
 0x6a1   : > { %2924 = vmatpush1.bf16.msra.mxu0 %v4699_v16  ;;  %2965 = vmatpush1.bf16.msra.mxu1 %v4701_v17 }
 0x6a2   : > { %2925 = vmatprep.subr.bf16.mxu0 %v4705_v18  ;;  %2966 = vmatprep.subr.bf16.mxu1 %v4707_v20 }
 0x6a5   : > { %2926 = vmatpush1.bf16.msra.mxu0 %v4711_v22  ;;  %2967 = vmatpush1.bf16.msra.mxu1 %v4713_v19 }
 0x6a6   : > { %2927 = vmatprep.subr.bf16.mxu0 %v4717_v23  ;;  %2968 = vmatprep.subr.bf16.mxu1 %v4719_v24 }
 0x6a9   : > { %2928 = vmatpush1.bf16.msra.mxu0 %v4723_v25  ;;  %2969 = vmatpush1.bf16.msra.mxu1 %v4725_v26 }
 0x6aa   : > { %2929 = vmatprep.subr.bf16.mxu0 %v4729_v27  ;;  %2970 = vmatprep.subr.bf16.mxu1 %v4731_v30 }
 0x6ad   : > { %2930 = vmatpush1.bf16.msra.mxu0 %v4735_v3  ;;  %2971 = vmatpush1.bf16.msra.mxu1 %v4737_v59 }
 0x6ae   : > { %2931 = vmatprep.subr.bf16.mxu0 %v4741_v63  ;;  %2972 = vmatprep.subr.bf16.mxu1 %v4743_v0 }
 0x6b1   : > { %2932 = vmatpush1.bf16.msra.mxu0 %v4747_v5  ;;  %2973 = vmatpush1.bf16.msra.mxu1 %v4749_v31 }
 0x6b2   : > { %2933 = vmatprep.subr.bf16.mxu0 %v4753_v32  ;;  %2974 = vmatprep.subr.bf16.mxu1 %v4755_v33 }
 0x6b5   : > { %2934 = vmatpush1.bf16.msra.mxu0 %v4759_v34  ;;  %2975 = vmatpush1.bf16.msra.mxu1 %v4761_v35 }
 0x6b6   : > { %2935 = vmatprep.subr.bf16.mxu0 %v4765_v36  ;;  %2976 = vmatprep.subr.bf16.mxu1 %v4767_v37 }
 0x6b9   : > { %2936 = vmatpush1.bf16.msra.mxu0 %v4771_v38  ;;  %2977 = vmatpush1.bf16.msra.mxu1 %v4773_v39 }
 0x6ba   : > { %3074 = vmatprep.subr.bf16.mxu0 %v4681_v8  ;;  %3115 = vmatprep.subr.bf16.mxu1 %v4683_v12  ;;  %v1588_v8 = vrot.slane %v1571_v1, %v4542_v9 }
 0x76f   : > { %v2802_v52 = vpop.f32.mrb[20].mxu0  ;;  %v2843_v53 = vpop.f32.mrb[20].mxu1 }
 0x770   : > { %v3398_v54 = vadd.f32 %v2802_v52, %v1576_v50  ;;  %v2804_v55 = vpop.f32.mrb[21].mxu0  ;;  %v2845_v56 = vpop.f32.mrb[21].mxu1  ;;  %v3400_v41 = vadd.f32 %v2843_v53, %v1584_v10 }
 0x771   : > { %v3399_v57 = vadd.f32 %v2804_v55, %v1580_v51  ;;  %v2806_v58 = vpop.f32.mrb[22].mxu0  ;;  %v2847_v60 = vpop.f32.mrb[22].mxu1  ;;  %v3401_v12 = vadd.f32 %v2845_v56, %v1588_v8 }
 0x772   : > { %v3361_v61 = vmul.f32 -1.442695, %v3398_v54  ;;  %v2807_v15 = vpop.f32.mrb[23].mxu0  ;;  %v2848_v6 = vpop.f32.mrb[23].mxu1 }
 0x773   : > { %v3362_v7 = vmul.f32 -1.442695, %v3399_v57  ;;  %v3363_v11 = vmul.f32 -1.442695, %v3401_v12  ;;  %v1857_v15 = vld [vmem:[#allocation4] sm:$0xf] }
 0x774   : > { %3580 = vpow2.f32 %v3361_v61  ;;  %v1862_v6 = vrot.slane %v1857_v15, %v4536_v2 }
 0x775   : > { %3582 = vpow2.f32 %v3362_v7  ;;  %v1866_v7 = vrot.slane %v1857_v15, %v4538_v4 }
 0x776   : > { %3584 = vpow2.f32 %v3363_v11 }
 0x777   : > { %3586 = vtanh.f32 %v3400_v41 }
 0x77e   : > { %v3581_v42 = vpop.eup %3580 }
 0x77f   : > { %v3583_v43 = vpop.eup %3582  ;;  %v2857_v45 = vadd.f32 1.0, %v3581_v42 }
 0x780   : > { %v2863_v46 = vadd.f32 1.0, %v3583_v43  ;;  %v3585_v44 = vpop.eup %3584 }
 0x781   : > { %3588 = vrcp.f32 %v2857_v45  ;;  %v3587_v47 = vpop.eup %3586  ;;  %v2870_v51 = vadd.f32 1.0, %v3585_v44 }
 0x782   : > { %3590 = vrcp.f32 %v2863_v46 }
 0x783   : > { %3592 = vrcp.f32 %v2870_v51 }
 0x78b   : > { %v3589_v48 = vpop.eup %3588 }
 0x78c   : > { %v3591_v49 = vpop.eup %3590  ;;  %v2875_v50 = vmul.f32 %v3589_v48, %v3587_v47 }
 0x78d   : > { %v2874_v52 = vmul.f32 %v3591_v49, %v4784_v40  ;;  %v3593_v53 = vpop.eup %3592  ;;  %v1874_v49 = vrot.slane %v1857_v15, %v4542_v9 }
 0x78f   : > { %v4827_v1 = vadd.f32 %v2875_v50, %v2874_v52 }
 0x791   : > { %3594 = vtanh.f32 %v4827_v1 }
 0x79b   : > { %v3595_v54 = vpop.eup %3594 }
 0x79c   : > { %v2878_v55 = vmul.f32 %v3595_v54, %v3593_v53 }
 0x79e   : > { %3364 = vst [vmem:[%s3711_s27 + $0x28] sm:$0xff] %v2878_v55  ;;  %v2888_v56 = vpack.c.bf16 %v2878_v55, %v2878_v55 }
 0x7a0   : > { %2954 = vmatmul.mubr.bf16.vlgmr.msra.gmra.mrb[24].mxu0 %v2888_v56  ;;  %2995 = vmatmul.mubr.bf16.vlgmr.msra.gmra.mrb[24].mxu1 %v2888_v56 }
 0x7a1   : > { %3075 = vmatpush1.bf16.msra.mxu0 %v4687_v28  ;;  %3116 = vmatpush1.bf16.msra.mxu1 %v4689_v29 }
 0x7a2   : > { %3076 = vmatprep.subr.bf16.mxu0 %v4693_v13  ;;  %3117 = vmatprep.subr.bf16.mxu1 %v4695_v14 }
 0x7a3   : > { %3106 = vmatprep.mubr.bf16.mxu0 %v3659_v62  ;;  %3147 = vmatprep.mubr.bf16.mxu1 %v3659_v62  ;;  %v1714_v62 = vld [vmem:[#allocation4] sm:$0xf] }
 0x7a4   : > { %v1719_v28 = vrot.slane %v1714_v62, %v4536_v2  ;;  %v1723_v29 = vrot.slane %v1714_v62, %v4538_v4  ;;  %v1870_v2 = vrot.slane %v1857_v15, %v4545_v21 }
 0x7a5   : > { %3077 = vmatpush1.bf16.msra.mxu0 %v4699_v16  ;;  %3118 = vmatpush1.bf16.msra.mxu1 %v4701_v17 }
 0x7a6   : > { %3078 = vmatprep.subr.bf16.mxu0 %v4705_v18  ;;  %3119 = vmatprep.subr.bf16.mxu1 %v4707_v20 }
 0x7a9   : > { %3079 = vmatpush1.bf16.msra.mxu0 %v4711_v22  ;;  %3120 = vmatpush1.bf16.msra.mxu1 %v4713_v19 }
 0x7aa   : > { %3080 = vmatprep.subr.bf16.mxu0 %v4717_v23  ;;  %3121 = vmatprep.subr.bf16.mxu1 %v4719_v24 }
 0x7ad   : > { %3081 = vmatpush1.bf16.msra.mxu0 %v4723_v25  ;;  %3122 = vmatpush1.bf16.msra.mxu1 %v4725_v26 }
 0x7ae   : > { %3082 = vmatprep.subr.bf16.mxu0 %v4729_v27  ;;  %3123 = vmatprep.subr.bf16.mxu1 %v4731_v30  ;;  %v1731_v27 = vrot.slane %v1714_v62, %v4542_v9 }
 0x7b1   : > { %3083 = vmatpush1.bf16.msra.mxu0 %v4735_v3  ;;  %3124 = vmatpush1.bf16.msra.mxu1 %v4737_v59  ;;  %v1727_v3 = vrot.slane %v1714_v62, %v4545_v21 }
 0x7b2   : > { %3084 = vmatprep.subr.bf16.mxu0 %v4741_v63  ;;  %3125 = vmatprep.subr.bf16.mxu1 %v4743_v0 }
 0x7b5   : > { %3085 = vmatpush1.bf16.msra.mxu0 %v4747_v5  ;;  %3126 = vmatpush1.bf16.msra.mxu1 %v4749_v31 }
 0x7b6   : > { %3086 = vmatprep.subr.bf16.mxu0 %v4753_v32  ;;  %3127 = vmatprep.subr.bf16.mxu1 %v4755_v33 }
 0x7b9   : > { %3087 = vmatpush1.bf16.msra.mxu0 %v4759_v34  ;;  %3128 = vmatpush1.bf16.msra.mxu1 %v4761_v35 }
 0x7ba   : > { %3088 = vmatprep.subr.bf16.mxu0 %v4765_v36  ;;  %3129 = vmatprep.subr.bf16.mxu1 %v4767_v37 }
 0x7bd   : > { %3089 = vmatpush1.bf16.msra.mxu0 %v4771_v38  ;;  %3130 = vmatpush1.bf16.msra.mxu1 %v4773_v39 }
 0x873   : > { %v2955_v13 = vpop.f32.mrb[24].mxu0  ;;  %v2996_v14 = vpop.f32.mrb[24].mxu1 }
 0x874   : > { %v3402_v16 = vadd.f32 %v2955_v13, %v1719_v28  ;;  %v2957_v17 = vpop.f32.mrb[25].mxu0  ;;  %v2998_v18 = vpop.f32.mrb[25].mxu1  ;;  %v3404_v63 = vadd.f32 %v2996_v14, %v1727_v3 }
 0x875   : > { %v3403_v20 = vadd.f32 %v2957_v17, %v1723_v29  ;;  %v2959_v22 = vpop.f32.mrb[26].mxu0  ;;  %v3000_v19 = vpop.f32.mrb[26].mxu1  ;;  %v3405_v30 = vadd.f32 %v2998_v18, %v1731_v27 }
 0x876   : > { %v3365_v23 = vmul.f32 -1.442695, %v3402_v16  ;;  %v2960_v24 = vpop.f32.mrb[27].mxu0  ;;  %v3001_v25 = vpop.f32.mrb[27].mxu1 }
 0x877   : > { %v3366_v26 = vmul.f32 -1.442695, %v3403_v20  ;;  %v3367_v59 = vmul.f32 -1.442695, %v3405_v30 }
 0x878   : > { %3596 = vpow2.f32 %v3365_v23 }
 0x879   : > { %3598 = vpow2.f32 %v3366_v26 }
 0x87a   : > { %3600 = vpow2.f32 %v3367_v59 }
 0x87b   : > { %3602 = vtanh.f32 %v3404_v63 }
 0x882   : > { %v3597_v0 = vpop.eup %3596 }
 0x883   : > { %v3599_v5 = vpop.eup %3598  ;;  %v3010_v31 = vadd.f32 1.0, %v3597_v0 }
 0x884   : > { %v3016_v32 = vadd.f32 1.0, %v3599_v5  ;;  %v3601_v33 = vpop.eup %3600 }
 0x885   : > { %3604 = vrcp.f32 %v3010_v31  ;;  %v3603_v34 = vpop.eup %3602  ;;  %v3023_v38 = vadd.f32 1.0, %v3601_v33 }
 0x886   : > { %3606 = vrcp.f32 %v3016_v32 }
 0x887   : > { %3608 = vrcp.f32 %v3023_v38 }
 0x88f   : > { %v3605_v35 = vpop.eup %3604 }
 0x890   : > { %v3607_v36 = vpop.eup %3606  ;;  %v3028_v37 = vmul.f32 %v3605_v35, %v3603_v34 }
 0x891   : > { %v3027_v39 = vmul.f32 %v3607_v36, %v4827_v1  ;;  %v3609_v57 = vpop.eup %3608 }
 0x893   : > { %v3029_v40 = vadd.f32 %v3028_v37, %v3027_v39 }
 0x895   : > { %3610 = vtanh.f32 %v3029_v40 }
 0x89f   : > { %v3611_v58 = vpop.eup %3610 }
 0x8a0   : > { %v3031_v60 = vmul.f32 %v3611_v58, %v3609_v57 }
 0x8a2   : > { %3368 = vst [vmem:[%s3711_s27 + $0x30] sm:$0xff] %v3031_v60  ;;  %v3041_v61 = vpack.c.bf16 %v3031_v60, %v3031_v60 }
 0x8a4   : > { %3107 = vmatmul.mubr.bf16.vlgmr.msra.gmra.mrb[28].mxu0 %v3041_v61  ;;  %3148 = vmatmul.mubr.bf16.vlgmr.msra.gmra.mrb[28].mxu1 %v3041_v61 }
 0x977   : > { %v3108_v8 = vpop.f32.mrb[28].mxu0  ;;  %v3149_v12 = vpop.f32.mrb[28].mxu1 }
 0x978   : > { %v3406_v10 = vadd.f32 %v3108_v8, %v1862_v6  ;;  %v3110_v11 = vpop.f32.mrb[29].mxu0  ;;  %v3151_v41 = vpop.f32.mrb[29].mxu1  ;;  %v3408_v51 = vadd.f32 %v3149_v12, %v1870_v2 }
 0x979   : > { %v3407_v42 = vadd.f32 %v3110_v11, %v1866_v7  ;;  %v3112_v43 = vpop.f32.mrb[30].mxu0  ;;  %v3153_v45 = vpop.f32.mrb[30].mxu1  ;;  %v3409_v50 = vadd.f32 %v3151_v41, %v1874_v49 }
 0x97a   : > { %v3369_v46 = vmul.f32 -1.442695, %v3406_v10  ;;  %v3113_v44 = vpop.f32.mrb[31].mxu0  ;;  %v3154_v47 = vpop.f32.mrb[31].mxu1 }
 0x97b   : > { %v3370_v48 = vmul.f32 -1.442695, %v3407_v42  ;;  %v3371_v4 = vmul.f32 -1.442695, %v3409_v50 }
 0x97c   : > { %3612 = vpow2.f32 %v3369_v46 }
 0x97d   : > { %3614 = vpow2.f32 %v3370_v48 }
 0x97e   : > { %3616 = vpow2.f32 %v3371_v4 }
 0x97f   : > { %3618 = vtanh.f32 %v3408_v51 }
 0x986   : > { %v3613_v52 = vpop.eup %3612 }
 0x987   : > { %v3615_v1 = vpop.eup %3614  ;;  %v3163_v53 = vadd.f32 1.0, %v3613_v52 }
 0x988   : > { %v3169_v54 = vadd.f32 1.0, %v3615_v1  ;;  %v3617_v55 = vpop.eup %3616 }
 0x989   : > { %3620 = vrcp.f32 %v3163_v53  ;;  %v3619_v56 = vpop.eup %3618  ;;  %v3176_v29 = vadd.f32 1.0, %v3617_v55 }
 0x98a   : > { %3622 = vrcp.f32 %v3169_v54 }
 0x98b   : > { %3624 = vrcp.f32 %v3176_v29 }
 0x993   : > { %v3621_v62 = vpop.eup %3620 }
 0x994   : > { %v3623_v9 = vpop.eup %3622  ;;  %v3181_v28 = vmul.f32 %v3621_v62, %v3619_v56 }
 0x995   : > { %v3180_v13 = vmul.f32 %v3623_v9, %v3029_v40  ;;  %v3625_v21 = vpop.eup %3624 }
 0x997   : > { %v3182_v14 = vadd.f32 %v3181_v28, %v3180_v13 }
 0x999   : > { %3626 = vtanh.f32 %v3182_v14  ;;  %3185 = vst [vmem:[#allocation8] sm:$0xff] %v3182_v14 }
 0x9a3   : > { %v3627_v16 = vpop.eup %3626 }
 0x9a4   : > { %v3184_v17 = vmul.f32 %v3627_v16, %v3625_v21 }
 0x9a6   : > { %3186 = vst [vmem:[#allocation7] sm:$0xff] %v3184_v17  ;;  %3372 = vst [vmem:[%s3711_s27 + $0x38] sm:$0xff] %v3184_v17 }
 0x9a7 PF: > { %s14_s17 = sadd.s32 1, %s3656_s17   ;;  %s4888_s15 = smov %s3652_s16 }
 0x9a8   : > { %p11_p6 = scmp.ge.s32.totalorder %s14_s17, 4   ;;  %s4889_s16 = smov %s4891_s18 }
 0x9aa   :  { %13 = sbr.rel (!%p11_p6) target bundleno = 2 (0x2), region = 225 }
 0x9b1   :  { %3217 = vsyncmov [#allocation5] }
 0x9b4   :  { %s3218_s24 = vpop.sfrf %3217 }
 0x9b5   :  { %p3375_p7 = scmp.ne.s32.totalorder %s3218_s24, 0 }
 0x9b7   :  { %3222 = shalt.err (%p3375_p7)  }
 0x9b8   :  { %3224 = vsyncmov [#allocation5 + $0x1] }
 0x9bb   :  { %s3225_s26 = vpop.sfrf %3224 }
 0x9bc   :  { %p3376_p8 = scmp.ne.s32.totalorder %s3225_s26, 0 }
 0x9be   :  { %3229 = shalt.err (%p3376_p8)  }
 0x9bf   :  { %3231 = vsyncmov [#allocation5 + $0x2] }
 0x9c2   :  { %s3232_s27 = vpop.sfrf %3231 }
 0x9c3   :  { %p3377_p9 = scmp.ne.s32.totalorder %s3232_s27, 0 }
 0x9c5   :  { %3236 = shalt.err (%p3377_p9)  }

</bundles_post_ra>
